<compile_context>
chip_gen: v5e
topology: v5e:2x2
jax: 0.10.0
libtpu: 0.0.40
codegen_flags: <defaults>
</compile_context>

<pallas_src>
import functools
import numpy as np
import jax
import jax.numpy as jnp
from jax import lax
from jax.experimental import pallas as pl
from jax.experimental.pallas import tpu as pltpu

W_IMG = 16        # fc1 output dim == conv image width
C_CONV = 16       # conv channels
KH = KW = 3
MAR = W_IMG + 1   # zero-margin rows around the flattened spatial axis

# Set to jnp.bfloat16 on v6e/v7x for ~2x MXU rate (accumulation stays f32);
# kept f32 here so the demo matches the f32 reference tightly on any chip.
CONV_W_DTYPE = jnp.float32


def _conv_layer(buf_ref, w_ref, b_ref, mask_l, mask_r, nsp, n_out_lanes):
    """3x3 / pad=1 conv (+bias, +ReLU) over the zero-margined, lane-packed buffer.

    buf_ref : (nsp + 2*MAR, L_in)      lane-packed input (margin rows are zero)
    w_ref   : (9, L_in, n_out_lanes)   block-diagonal per-tap weights
    returns : (nsp, n_out_lanes)
    """
    acc = jnp.zeros((nsp, n_out_lanes), jnp.float32)
    for k in range(KH * KW):                       # fully unrolled: 9 static taps
        dy, dx = k // KW, k % KW
        off = (dy - 1) * W_IMG + (dx - 1)
        sh = buf_ref[pl.ds(MAR + off, nsp), :]     # static, in-bounds row shift
        if dx == 0:
            sh = sh * mask_l                       # tap reads x-1: invalid at x == 0
        elif dx == 2:
            sh = sh * mask_r                       # tap reads x+1: invalid at x == W-1
        wk = w_ref[k]                              # (L_in, n_out_lanes)
        acc = acc + jnp.dot(sh.astype(wk.dtype), wk,
                            preferred_element_type=jnp.float32)
    return jnp.maximum(acc + b_ref[...], 0.0)


def _qnet_kernel(nsp, tb, hist,
                 xT_ref, w1_ref, b1_ref, sel_ref, ymask_ref, ml_ref, mr_ref,
                 wc1_ref, bc1_ref, wc2_ref, bc2_ref, wc3_ref, bc3_ref,
                 w2a_ref, w2b_ref, ind_ref, b2_ref,
                 o_ref, bufe_ref, bufc_ref):
    lanes_e = tb * hist
    lanes_c = tb * C_CONV

    # Re-zero only the margin rows each step (interior is fully overwritten
    # below); cheap, and valid under "parallel" megacore sharding.
    bufe_ref[pl.ds(0, MAR), :] = jnp.zeros((MAR, lanes_e), jnp.float32)
    bufe_ref[pl.ds(MAR + nsp, MAR), :] = jnp.zeros((MAR, lanes_e), jnp.float32)
    bufc_ref[pl.ds(0, MAR), :] = jnp.zeros((MAR, lanes_c), jnp.float32)
    bufc_ref[pl.ds(MAR + nsp, MAR), :] = jnp.zeros((MAR, lanes_c), jnp.float32)

    # --- fc1 + ReLU in transposed layout: (16, in_dim) @ (in_dim, tb*hist) ---
    h1t = jnp.dot(w1_ref[...], xT_ref[...], preferred_element_type=jnp.float32)
    h1t = jnp.maximum(h1t + b1_ref[...], 0.0)                     # (16, tb*hist)

    # Scatter into the conv1-input layout: row i = y*W + x (sublanes),
    # lane = s*hist + y' with the value only at y' == i // W (zero elsewhere).
    d = jnp.dot(sel_ref[...], h1t, preferred_element_type=jnp.float32)
    bufe_ref[pl.ds(MAR, nsp), :] = d * ymask_ref[...]

    ml = ml_ref[...]
    mr = mr_ref[...]

    # --- conv stack (conv1's block weights absorb the s*hist+y lane layout) ---
    h = _conv_layer(bufe_ref, wc1_ref, bc1_ref, ml, mr, nsp, lanes_c)
    bufc_ref[pl.ds(MAR, nsp), :] = h
    h = _conv_layer(bufc_ref, wc2_ref, bc2_ref, ml, mr, nsp, lanes_c)
    bufc_ref[pl.ds(MAR, nsp), :] = h
    feat = _conv_layer(bufc_ref, wc3_ref, bc3_ref, ml, mr, nsp, lanes_c)

    # --- fc2: multiply with lane-tiled weights, reduce over spatial (sublanes),
    #     then per-sample lane-group sum via a constant indicator -> (tb, 2). ---
    r0 = jnp.sum(feat * w2a_ref[...], axis=0, keepdims=True)      # (1, tb*16)
    r1 = jnp.sum(feat * w2b_ref[...], axis=0, keepdims=True)
    q0 = jnp.sum(ind_ref[...] * r0, axis=1, keepdims=True)        # (tb, 1)
    q1 = jnp.sum(ind_ref[...] * r1, axis=1, keepdims=True)
    ocol = lax.broadcasted_iota(jnp.int32, (tb, 2), 1)
    o_ref[...] = jnp.where(ocol == 0, q0, q1) + b2_ref[...]


def qnetwork_forward_pallas(x, params, tb=8):
    """QNetwork forward.  x: (B, history_num, input_dim) -> (B, 2).

    tb = samples per grid step (lane-packing factor): 8 fills the 128-wide MXU
    on v5e/v6e; use 16 on v7x (256-wide MXU).
    """
    (w_fc1, b_fc1, wc1, bc1, wc2, bc2, wc3, bc3, w_fc2, b_fc2) = params
    B, hist, in_dim = x.shape
    nsp = hist * W_IMG

    # ---- pad batch to a multiple of tb and build per-step input tiles ----
    nblk = -(-B // tb)
    Bp = nblk * tb
    if Bp != B:
        x = jnp.concatenate([x, jnp.zeros((Bp - B, hist, in_dim), x.dtype)], 0)
    # (nblk, in_dim, tb*hist): each grid step reads one full (in_dim, tb*hist) tile.
    xT = jnp.transpose(x.reshape(nblk, tb * hist, in_dim), (0, 2, 1)).astype(jnp.float32)

    # ---- plain-JAX glue: rearrange PyTorch-layout weights, build constants ----
    w1k = w_fc1.astype(jnp.float32)                        # (16, in_dim), used as-is
    b1k = b_fc1.reshape(C_CONV, 1).astype(jnp.float32)     # (16, 1)

    ii = np.arange(nsp)
    sel = jnp.asarray(ii[:, None] % W_IMG == np.arange(W_IMG)[None, :],
                      dtype=jnp.float32)                                  # (nsp, 16)
    ymask = jnp.asarray(
        ii[:, None] // W_IMG == (np.arange(tb * hist)[None, :] % hist),
        dtype=jnp.float32)                                                # (nsp, tb*hist)
    mask_l = jnp.asarray(ii % W_IMG != 0, dtype=jnp.float32).reshape(nsp, 1)
    mask_r = jnp.asarray(ii % W_IMG != W_IMG - 1, dtype=jnp.float32).reshape(nsp, 1)
    eye_tb = jnp.eye(tb, dtype=jnp.float32)

    def conv1_bd(w):     # (16,1,3,3) -> (9, tb*hist, tb*16): Cin=1 block weights
        taps = jnp.transpose(w[:, 0], (1, 2, 0)).reshape(KH * KW, C_CONV)
        bd = jnp.einsum('ko,st->ksto', taps, eye_tb)       # (9, tb, tb, 16)
        bd = jnp.broadcast_to(bd[:, :, None, :, :],
                              (KH * KW, tb, hist, tb, C_CONV))
        return bd.reshape(KH * KW, tb * hist, tb * C_CONV).astype(CONV_W_DTYPE)

    def conv_bd(w):      # (16,16,3,3) -> (9, tb*16, tb*16): block-diagonal
        taps = jnp.transpose(w, (2, 3, 1, 0)).reshape(KH * KW, C_CONV, C_CONV)
        bd = jnp.einsum('kio,st->ksito', taps, eye_tb)
        return bd.reshape(KH * KW, tb * C_CONV, tb * C_CONV).astype(CONV_W_DTYPE)

    wc1k, wc2k, wc3k = conv1_bd(wc1), conv_bd(wc2), conv_bd(wc3)
    bc1k = jnp.tile(bc1.reshape(1, C_CONV), (1, tb)).astype(jnp.float32)
    bc2k = jnp.tile(bc2.reshape(1, C_CONV), (1, tb)).astype(jnp.float32)
    bc3k = jnp.tile(bc3.reshape(1, C_CONV), (1, tb)).astype(jnp.float32)

    # fc2: PyTorch flattens (c, y, x); our features are [y*W + x, 16*s + c].
    w2p = w_fc2.reshape(2, C_CONV, hist, W_IMG)
    w2a = jnp.tile(jnp.transpose(w2p[0], (1, 2, 0)).reshape(nsp, C_CONV), (1, tb))
    w2b = jnp.tile(jnp.transpose(w2p[1], (1, 2, 0)).reshape(nsp, C_CONV), (1, tb))
    ind = jnp.asarray(np.kron(np.eye(tb, dtype=np.float32),
                              np.ones((1, C_CONV), np.float32)))          # (tb, tb*16)
    b2k = b_fc2.reshape(1, 2).astype(jnp.float32)

    zi2 = lambda b: (0, 0)
    zi3 = lambda b: (0, 0, 0)
    in_specs = [
        pl.BlockSpec((None, in_dim, tb * hist), lambda b: (b, 0, 0)),   # x (transposed tiles)
        pl.BlockSpec((C_CONV, in_dim), zi2),                            # fc1 weight
        pl.BlockSpec((C_CONV, 1), zi2),                                 # fc1 bias
        pl.BlockSpec((nsp, W_IMG), zi2),                                # x-select matrix
        pl.BlockSpec((nsp, tb * hist), zi2),                            # y-mask
        pl.BlockSpec((nsp, 1), zi2),                                    # mask_l
        pl.BlockSpec((nsp, 1), zi2),                                    # mask_r
        pl.BlockSpec((KH * KW, tb * hist, tb * C_CONV), zi3),           # conv1 weights
        pl.BlockSpec((1, tb * C_CONV), zi2),                            # conv1 bias
        pl.BlockSpec((KH * KW, tb * C_CONV, tb * C_CONV), zi3),         # conv2 weights
        pl.BlockSpec((1, tb * C_CONV), zi2),                            # conv2 bias
        pl.BlockSpec((KH * KW, tb * C_CONV, tb * C_CONV), zi3),         # conv3 weights
        pl.BlockSpec((1, tb * C_CONV), zi2),                            # conv3 bias
        pl.BlockSpec((nsp, tb * C_CONV), zi2),                          # fc2 weight, out 0
        pl.BlockSpec((nsp, tb * C_CONV), zi2),                          # fc2 weight, out 1
        pl.BlockSpec((tb, tb * C_CONV), zi2),                           # sample indicator
        pl.BlockSpec((1, 2), zi2),                                      # fc2 bias
    ]
    out_spec = pl.BlockSpec((tb, 2), lambda b: (b, 0))

    kernel = functools.partial(_qnet_kernel, nsp, tb, hist)
    out = pl.pallas_call(
        kernel,
        out_shape=jax.ShapeDtypeStruct((Bp, 2), jnp.float32),
        grid=(nblk,),
        in_specs=in_specs,
        out_specs=out_spec,
        scratch_shapes=[
            pltpu.VMEM((nsp + 2 * MAR, tb * hist), jnp.float32),    # conv1 input buffer
            pltpu.VMEM((nsp + 2 * MAR, tb * C_CONV), jnp.float32),  # conv activation buffer
        ],
        compiler_params=pltpu.CompilerParams(dimension_semantics=("parallel",)),
    )(xT, w1k, b1k, sel, ymask, mask_l, mask_r,
      wc1k, bc1k, wc2k, bc2k, wc3k, bc3k, w2a, w2b, ind, b2k)
    return out[:B]


def init_params(key, input_dim, history_num):
    """Deterministic synthetic init (PyTorch tensor layouts)."""
    ks = jax.random.split(key, 12)

    def xavier(k, shape):
        fan_out, fan_in = shape[0], shape[1]
        rf = 1
        for d in shape[2:]:
            rf *= d
        limit = (6.0 / ((fan_in + fan_out) * rf)) ** 0.5
        return jax.random.uniform(k, shape, jnp.float32, -limit, limit)

    w_fc1 = xavier(ks[0], (16, input_dim))
    b_fc1 = 0.05 * jax.random.normal(ks[1], (16,), jnp.float32)
    wc1 = xavier(ks[2], (16, 1, 3, 3))
    bc1 = 0.05 * jax.random.normal(ks[3], (16,), jnp.float32)
    wc2 = xavier(ks[4], (16, 16, 3, 3))
    bc2 = 0.05 * jax.random.normal(ks[5], (16,), jnp.float32)
    wc3 = xavier(ks[6], (16, 16, 3, 3))
    bc3 = 0.05 * jax.random.normal(ks[7], (16,), jnp.float32)
    w_fc2 = xavier(ks[8], (2, 256 * history_num))
    b_fc2 = 0.05 * jax.random.normal(ks[9], (2,), jnp.float32)
    return (w_fc1, b_fc1, wc1, bc1, wc2, bc2, wc3, bc3, w_fc2, b_fc2)


def qnetwork_forward_ref(x, params):
    """Pure-JAX reference with PyTorch semantics (for validation)."""
    (w_fc1, b_fc1, wc1, bc1, wc2, bc2, wc3, bc3, w_fc2, b_fc2) = params
    hp = jax.lax.Precision.HIGHEST
    h = jax.nn.relu(jnp.einsum("bhd,od->bho", x, w_fc1, precision=hp) + b_fc1)
    z = h[:, None, :, :]                                    # NCHW, C=1

    def conv(z, w, b):
        y = lax.conv_general_dilated(z, w, (1, 1), ((1, 1), (1, 1)),
                                     dimension_numbers=("NCHW", "OIHW", "NCHW"),
                                     precision=hp)
        return jax.nn.relu(y + b[None, :, None, None])

    z = conv(z, wc1, bc1)
    z = conv(z, wc2, bc2)
    z = conv(z, wc3, bc3)
    flat = z.reshape(x.shape[0], -1)                        # (B, 256*hist) in (c,y,x) order
    return jnp.einsum("bf,of->bo", flat, w_fc2, precision=hp) + b_fc2


if __name__ == "__main__":
    INPUT_DIM, HISTORY_NUM, BATCH = 32, 8, 16
    key = jax.random.PRNGKey(0)
    kx, kp = jax.random.split(key)
    x = jax.random.normal(kx, (BATCH, HISTORY_NUM, INPUT_DIM), jnp.float32)
    params = init_params(kp, INPUT_DIM, HISTORY_NUM)

    out = qnetwork_forward_pallas(x, params, tb=8)
    out = jax.block_until_ready(out)
    assert out.shape == (BATCH, 2) and out.dtype == jnp.float32

    ref = np.asarray(qnetwork_forward_ref(x, params))
    got = np.asarray(out)
    if not np.allclose(got, ref, rtol=2e-2, atol=2e-2):
        raise AssertionError(f"mismatch:\npallas={got}\nref={ref}")
    print("KERNEL_OK")
</pallas_src>

<mosaic_0001>
module attributes {stable_mosaic.version = 11 : i64} {
  func.func @_qnet_kernel(%arg0: i32, %arg1: memref<1x32x64xf32, #tpu.memory_space<vmem>>, %arg2: memref<16x32xf32, #tpu.memory_space<vmem>>, %arg3: memref<16x1xf32, #tpu.memory_space<vmem>>, %arg4: memref<128x16xf32, #tpu.memory_space<vmem>>, %arg5: memref<128x64xf32, #tpu.memory_space<vmem>>, %arg6: memref<128x1xf32, #tpu.memory_space<vmem>>, %arg7: memref<128x1xf32, #tpu.memory_space<vmem>>, %arg8: memref<9x64x128xf32, #tpu.memory_space<vmem>>, %arg9: memref<1x128xf32, #tpu.memory_space<vmem>>, %arg10: memref<9x128x128xf32, #tpu.memory_space<vmem>>, %arg11: memref<1x128xf32, #tpu.memory_space<vmem>>, %arg12: memref<9x128x128xf32, #tpu.memory_space<vmem>>, %arg13: memref<1x128xf32, #tpu.memory_space<vmem>>, %arg14: memref<128x128xf32, #tpu.memory_space<vmem>>, %arg15: memref<128x128xf32, #tpu.memory_space<vmem>>, %arg16: memref<8x128xf32, #tpu.memory_space<vmem>>, %arg17: memref<1x2xf32, #tpu.memory_space<vmem>>, %arg18: memref<8x2xf32, #tpu.memory_space<vmem>>, %arg19: memref<162x64xf32, #tpu.memory_space<vmem>>, %arg20: memref<162x128xf32, #tpu.memory_space<vmem>>) attributes {dimension_semantics = [#tpu.dimension_semantics<parallel>], iteration_bounds = array<i64: 2>, scalar_prefetch = 0 : i64, scratch_operands = 2 : i64, tpu.core_type = #tpu.core_type<tc>, window_params = [{transform_indices = @transform_0, window_bounds = array<i64: 1, 32, 64>}, {pipeline_mode = #tpu.pipeline_mode<synchronous>, transform_indices = @transform_1, window_bounds = array<i64: 16, 32>}, {pipeline_mode = #tpu.pipeline_mode<synchronous>, transform_indices = @transform_2, window_bounds = array<i64: 16, 1>}, {pipeline_mode = #tpu.pipeline_mode<synchronous>, transform_indices = @transform_3, window_bounds = array<i64: 128, 16>}, {pipeline_mode = #tpu.pipeline_mode<synchronous>, transform_indices = @transform_4, window_bounds = array<i64: 128, 64>}, {pipeline_mode = #tpu.pipeline_mode<synchronous>, transform_indices = @transform_5, window_bounds = array<i64: 128, 1>}, {pipeline_mode = #tpu.pipeline_mode<synchronous>, transform_indices = @transform_6, window_bounds = array<i64: 128, 1>}, {pipeline_mode = #tpu.pipeline_mode<synchronous>, transform_indices = @transform_7, window_bounds = array<i64: 9, 64, 128>}, {pipeline_mode = #tpu.pipeline_mode<synchronous>, transform_indices = @transform_8, window_bounds = array<i64: 1, 128>}, {pipeline_mode = #tpu.pipeline_mode<synchronous>, transform_indices = @transform_9, window_bounds = array<i64: 9, 128, 128>}, {pipeline_mode = #tpu.pipeline_mode<synchronous>, transform_indices = @transform_10, window_bounds = array<i64: 1, 128>}, {pipeline_mode = #tpu.pipeline_mode<synchronous>, transform_indices = @transform_11, window_bounds = array<i64: 9, 128, 128>}, {pipeline_mode = #tpu.pipeline_mode<synchronous>, transform_indices = @transform_12, window_bounds = array<i64: 1, 128>}, {pipeline_mode = #tpu.pipeline_mode<synchronous>, transform_indices = @transform_13, window_bounds = array<i64: 128, 128>}, {pipeline_mode = #tpu.pipeline_mode<synchronous>, transform_indices = @transform_14, window_bounds = array<i64: 128, 128>}, {pipeline_mode = #tpu.pipeline_mode<synchronous>, transform_indices = @transform_15, window_bounds = array<i64: 8, 128>}, {pipeline_mode = #tpu.pipeline_mode<synchronous>, transform_indices = @transform_16, window_bounds = array<i64: 1, 2>}, {transform_indices = @transform_17, window_bounds = array<i64: 8, 2>}]} {
    %cst = arith.constant 0.000000e+00 : f32
    %0 = vector.broadcast %cst : f32 to vector<17x64xf32>
    %c0 = arith.constant 0 : index
    %c0_0 = arith.constant 0 : index
    %1 = vector.load %arg19[%c0, %c0_0] : memref<162x64xf32, #tpu.memory_space<vmem>>, vector<17x64xf32>
    tpu.vector_store %arg19[%c0, %c0_0], %0 {strides = array<i32>} : memref<162x64xf32, #tpu.memory_space<vmem>>, vector<17x64xf32>,
    %cst_1 = arith.constant 0.000000e+00 : f32
    %2 = vector.broadcast %cst_1 : f32 to vector<17x64xf32>
    %c145 = arith.constant 145 : index
    %c0_2 = arith.constant 0 : index
    %3 = vector.load %arg19[%c145, %c0_2] : memref<162x64xf32, #tpu.memory_space<vmem>>, vector<17x64xf32>
    tpu.vector_store %arg19[%c145, %c0_2], %2 {strides = array<i32>} : memref<162x64xf32, #tpu.memory_space<vmem>>, vector<17x64xf32>,
    %cst_3 = arith.constant 0.000000e+00 : f32
    %4 = vector.broadcast %cst_3 : f32 to vector<17x128xf32>
    %c0_4 = arith.constant 0 : index
    %c0_5 = arith.constant 0 : index
    %5 = vector.load %arg20[%c0_4, %c0_5] : memref<162x128xf32, #tpu.memory_space<vmem>>, vector<17x128xf32>
    tpu.vector_store %arg20[%c0_4, %c0_5], %4 {strides = array<i32>} : memref<162x128xf32, #tpu.memory_space<vmem>>, vector<17x128xf32>,
    %cst_6 = arith.constant 0.000000e+00 : f32
    %6 = vector.broadcast %cst_6 : f32 to vector<17x128xf32>
    %c145_7 = arith.constant 145 : index
    %c0_8 = arith.constant 0 : index
    %7 = vector.load %arg20[%c145_7, %c0_8] : memref<162x128xf32, #tpu.memory_space<vmem>>, vector<17x128xf32>
    tpu.vector_store %arg20[%c145_7, %c0_8], %6 {strides = array<i32>} : memref<162x128xf32, #tpu.memory_space<vmem>>, vector<17x128xf32>,
    %c0_9 = arith.constant 0 : index
    %c0_10 = arith.constant 0 : index
    %8 = vector.load %arg2[%c0_9, %c0_10] : memref<16x32xf32, #tpu.memory_space<vmem>>, vector<16x32xf32>
    %c0_11 = arith.constant 0 : index
    %c0_12 = arith.constant 0 : index
    %c0_13 = arith.constant 0 : index
    %9 = vector.load %arg1[%c0_11, %c0_12, %c0_13] : memref<1x32x64xf32, #tpu.memory_space<vmem>>, vector<1x32x64xf32>
    %10 = vector.shape_cast %9 : vector<1x32x64xf32> to vector<32x64xf32>
    %cst_14 = arith.constant dense<0.000000e+00> : vector<16x64xf32>
    %11 = tpu.matmul %8, %10, %cst_14 {dimension_numbers = #tpu.dot_dimension_numbers<[1], [0], [0], [1], [0, 0, 1, 1], [], []>} : vector<16x32xf32>, vector<32x64xf32>, vector<16x64xf32> -> vector<16x64xf32>
    %c0_15 = arith.constant 0 : index
    %c0_16 = arith.constant 0 : index
    %12 = vector.load %arg3[%c0_15, %c0_16] : memref<16x1xf32, #tpu.memory_space<vmem>>, vector<16x1xf32>
    %13 = vector.broadcast %12 : vector<16x1xf32> to vector<16x64xf32>
    %14 = arith.addf %11, %13 : vector<16x64xf32>
    %cst_17 = arith.constant 0.000000e+00 : f32
    %15 = vector.broadcast %cst_17 : f32 to vector<16x64xf32>
    %16 = arith.maximumf %14, %15 : vector<16x64xf32>
    %c0_18 = arith.constant 0 : index
    %c0_19 = arith.constant 0 : index
    %17 = vector.load %arg4[%c0_18, %c0_19] : memref<128x16xf32, #tpu.memory_space<vmem>>, vector<128x16xf32>
    %cst_20 = arith.constant dense<0.000000e+00> : vector<128x64xf32>
    %18 = tpu.matmul %17, %16, %cst_20 {dimension_numbers = #tpu.dot_dimension_numbers<[1], [0], [0], [1], [0, 0, 1, 1], [], []>} : vector<128x16xf32>, vector<16x64xf32>, vector<128x64xf32> -> vector<128x64xf32>
    %c0_21 = arith.constant 0 : index
    %c0_22 = arith.constant 0 : index
    %19 = vector.load %arg5[%c0_21, %c0_22] : memref<128x64xf32, #tpu.memory_space<vmem>>, vector<128x64xf32>
    %20 = arith.mulf %18, %19 : vector<128x64xf32>
    %c17 = arith.constant 17 : index
    %c0_23 = arith.constant 0 : index
    %21 = vector.load %arg19[%c17, %c0_23] : memref<162x64xf32, #tpu.memory_space<vmem>>, vector<128x64xf32>
    tpu.vector_store %arg19[%c17, %c0_23], %20 {strides = array<i32>} : memref<162x64xf32, #tpu.memory_space<vmem>>, vector<128x64xf32>,
    %c0_24 = arith.constant 0 : index
    %c0_25 = arith.constant 0 : index
    %22 = vector.load %arg6[%c0_24, %c0_25] : memref<128x1xf32, #tpu.memory_space<vmem>>, vector<128x1xf32>
    %c0_26 = arith.constant 0 : index
    %c0_27 = arith.constant 0 : index
    %23 = vector.load %arg7[%c0_26, %c0_27] : memref<128x1xf32, #tpu.memory_space<vmem>>, vector<128x1xf32>
    %cst_28 = arith.constant 0.000000e+00 : f32
    %24 = vector.broadcast %cst_28 : f32 to vector<128x128xf32>
    %c0_29 = arith.constant 0 : index
    %c0_30 = arith.constant 0 : index
    %25 = vector.load %arg19[%c0_29, %c0_30] : memref<162x64xf32, #tpu.memory_space<vmem>>, vector<128x64xf32>
    %26 = vector.broadcast %22 : vector<128x1xf32> to vector<128x64xf32>
    %27 = arith.mulf %25, %26 : vector<128x64xf32>
    %c0_31 = arith.constant 0 : index
    %c0_32 = arith.constant 0 : index
    %c0_33 = arith.constant 0 : index
    %28 = vector.load %arg8[%c0_31, %c0_32, %c0_33] : memref<9x64x128xf32, #tpu.memory_space<vmem>>, vector<1x64x128xf32>
    %29 = vector.shape_cast %28 : vector<1x64x128xf32> to vector<64x128xf32>
    %cst_34 = arith.constant dense<0.000000e+00> : vector<128x128xf32>
    %30 = tpu.matmul %27, %29, %cst_34 {dimension_numbers = #tpu.dot_dimension_numbers<[1], [0], [0], [1], [0, 0, 1, 1], [], []>} : vector<128x64xf32>, vector<64x128xf32>, vector<128x128xf32> -> vector<128x128xf32>
    %31 = arith.addf %24, %30 : vector<128x128xf32>
    %c1 = arith.constant 1 : index
    %c0_35 = arith.constant 0 : index
    %32 = vector.load %arg19[%c1, %c0_35] : memref<162x64xf32, #tpu.memory_space<vmem>>, vector<128x64xf32>
    %c1_36 = arith.constant 1 : index
    %c0_37 = arith.constant 0 : index
    %c0_38 = arith.constant 0 : index
    %33 = vector.load %arg8[%c1_36, %c0_37, %c0_38] : memref<9x64x128xf32, #tpu.memory_space<vmem>>, vector<1x64x128xf32>
    %34 = vector.shape_cast %33 : vector<1x64x128xf32> to vector<64x128xf32>
    %cst_39 = arith.constant dense<0.000000e+00> : vector<128x128xf32>
    %35 = tpu.matmul %32, %34, %cst_39 {dimension_numbers = #tpu.dot_dimension_numbers<[1], [0], [0], [1], [0, 0, 1, 1], [], []>} : vector<128x64xf32>, vector<64x128xf32>, vector<128x128xf32> -> vector<128x128xf32>
    %36 = arith.addf %31, %35 : vector<128x128xf32>
    %c2 = arith.constant 2 : index
    %c0_40 = arith.constant 0 : index
    %37 = vector.load %arg19[%c2, %c0_40] : memref<162x64xf32, #tpu.memory_space<vmem>>, vector<128x64xf32>
    %38 = vector.broadcast %23 : vector<128x1xf32> to vector<128x64xf32>
    %39 = arith.mulf %37, %38 : vector<128x64xf32>
    %c2_41 = arith.constant 2 : index
    %c0_42 = arith.constant 0 : index
    %c0_43 = arith.constant 0 : index
    %40 = vector.load %arg8[%c2_41, %c0_42, %c0_43] : memref<9x64x128xf32, #tpu.memory_space<vmem>>, vector<1x64x128xf32>
    %41 = vector.shape_cast %40 : vector<1x64x128xf32> to vector<64x128xf32>
    %cst_44 = arith.constant dense<0.000000e+00> : vector<128x128xf32>
    %42 = tpu.matmul %39, %41, %cst_44 {dimension_numbers = #tpu.dot_dimension_numbers<[1], [0], [0], [1], [0, 0, 1, 1], [], []>} : vector<128x64xf32>, vector<64x128xf32>, vector<128x128xf32> -> vector<128x128xf32>
    %43 = arith.addf %36, %42 : vector<128x128xf32>
    %c16 = arith.constant 16 : index
    %c0_45 = arith.constant 0 : index
    %44 = vector.load %arg19[%c16, %c0_45] : memref<162x64xf32, #tpu.memory_space<vmem>>, vector<128x64xf32>
    %45 = vector.broadcast %22 : vector<128x1xf32> to vector<128x64xf32>
    %46 = arith.mulf %44, %45 : vector<128x64xf32>
    %c3 = arith.constant 3 : index
    %c0_46 = arith.constant 0 : index
    %c0_47 = arith.constant 0 : index
    %47 = vector.load %arg8[%c3, %c0_46, %c0_47] : memref<9x64x128xf32, #tpu.memory_space<vmem>>, vector<1x64x128xf32>
    %48 = vector.shape_cast %47 : vector<1x64x128xf32> to vector<64x128xf32>
    %cst_48 = arith.constant dense<0.000000e+00> : vector<128x128xf32>
    %49 = tpu.matmul %46, %48, %cst_48 {dimension_numbers = #tpu.dot_dimension_numbers<[1], [0], [0], [1], [0, 0, 1, 1], [], []>} : vector<128x64xf32>, vector<64x128xf32>, vector<128x128xf32> -> vector<128x128xf32>
    %50 = arith.addf %43, %49 : vector<128x128xf32>
    %c17_49 = arith.constant 17 : index
    %c0_50 = arith.constant 0 : index
    %51 = vector.load %arg19[%c17_49, %c0_50] : memref<162x64xf32, #tpu.memory_space<vmem>>, vector<128x64xf32>
    %c4 = arith.constant 4 : index
    %c0_51 = arith.constant 0 : index
    %c0_52 = arith.constant 0 : index
    %52 = vector.load %arg8[%c4, %c0_51, %c0_52] : memref<9x64x128xf32, #tpu.memory_space<vmem>>, vector<1x64x128xf32>
    %53 = vector.shape_cast %52 : vector<1x64x128xf32> to vector<64x128xf32>
    %cst_53 = arith.constant dense<0.000000e+00> : vector<128x128xf32>
    %54 = tpu.matmul %51, %53, %cst_53 {dimension_numbers = #tpu.dot_dimension_numbers<[1], [0], [0], [1], [0, 0, 1, 1], [], []>} : vector<128x64xf32>, vector<64x128xf32>, vector<128x128xf32> -> vector<128x128xf32>
    %55 = arith.addf %50, %54 : vector<128x128xf32>
    %c18 = arith.constant 18 : index
    %c0_54 = arith.constant 0 : index
    %56 = vector.load %arg19[%c18, %c0_54] : memref<162x64xf32, #tpu.memory_space<vmem>>, vector<128x64xf32>
    %57 = vector.broadcast %23 : vector<128x1xf32> to vector<128x64xf32>
    %58 = arith.mulf %56, %57 : vector<128x64xf32>
    %c5 = arith.constant 5 : index
    %c0_55 = arith.constant 0 : index
    %c0_56 = arith.constant 0 : index
    %59 = vector.load %arg8[%c5, %c0_55, %c0_56] : memref<9x64x128xf32, #tpu.memory_space<vmem>>, vector<1x64x128xf32>
    %60 = vector.shape_cast %59 : vector<1x64x128xf32> to vector<64x128xf32>
    %cst_57 = arith.constant dense<0.000000e+00> : vector<128x128xf32>
    %61 = tpu.matmul %58, %60, %cst_57 {dimension_numbers = #tpu.dot_dimension_numbers<[1], [0], [0], [1], [0, 0, 1, 1], [], []>} : vector<128x64xf32>, vector<64x128xf32>, vector<128x128xf32> -> vector<128x128xf32>
    %62 = arith.addf %55, %61 : vector<128x128xf32>
    %c32 = arith.constant 32 : index
    %c0_58 = arith.constant 0 : index
    %63 = vector.load %arg19[%c32, %c0_58] : memref<162x64xf32, #tpu.memory_space<vmem>>, vector<128x64xf32>
    %64 = vector.broadcast %22 : vector<128x1xf32> to vector<128x64xf32>
    %65 = arith.mulf %63, %64 : vector<128x64xf32>
    %c6 = arith.constant 6 : index
    %c0_59 = arith.constant 0 : index
    %c0_60 = arith.constant 0 : index
    %66 = vector.load %arg8[%c6, %c0_59, %c0_60] : memref<9x64x128xf32, #tpu.memory_space<vmem>>, vector<1x64x128xf32>
    %67 = vector.shape_cast %66 : vector<1x64x128xf32> to vector<64x128xf32>
    %cst_61 = arith.constant dense<0.000000e+00> : vector<128x128xf32>
    %68 = tpu.matmul %65, %67, %cst_61 {dimension_numbers = #tpu.dot_dimension_numbers<[1], [0], [0], [1], [0, 0, 1, 1], [], []>} : vector<128x64xf32>, vector<64x128xf32>, vector<128x128xf32> -> vector<128x128xf32>
    %69 = arith.addf %62, %68 : vector<128x128xf32>
    %c33 = arith.constant 33 : index
    %c0_62 = arith.constant 0 : index
    %70 = vector.load %arg19[%c33, %c0_62] : memref<162x64xf32, #tpu.memory_space<vmem>>, vector<128x64xf32>
    %c7 = arith.constant 7 : index
    %c0_63 = arith.constant 0 : index
    %c0_64 = arith.constant 0 : index
    %71 = vector.load %arg8[%c7, %c0_63, %c0_64] : memref<9x64x128xf32, #tpu.memory_space<vmem>>, vector<1x64x128xf32>
    %72 = vector.shape_cast %71 : vector<1x64x128xf32> to vector<64x128xf32>
    %cst_65 = arith.constant dense<0.000000e+00> : vector<128x128xf32>
    %73 = tpu.matmul %70, %72, %cst_65 {dimension_numbers = #tpu.dot_dimension_numbers<[1], [0], [0], [1], [0, 0, 1, 1], [], []>} : vector<128x64xf32>, vector<64x128xf32>, vector<128x128xf32> -> vector<128x128xf32>
    %74 = arith.addf %69, %73 : vector<128x128xf32>
    %c34 = arith.constant 34 : index
    %c0_66 = arith.constant 0 : index
    %75 = vector.load %arg19[%c34, %c0_66] : memref<162x64xf32, #tpu.memory_space<vmem>>, vector<128x64xf32>
    %76 = vector.broadcast %23 : vector<128x1xf32> to vector<128x64xf32>
    %77 = arith.mulf %75, %76 : vector<128x64xf32>
    %c8 = arith.constant 8 : index
    %c0_67 = arith.constant 0 : index
    %c0_68 = arith.constant 0 : index
    %78 = vector.load %arg8[%c8, %c0_67, %c0_68] : memref<9x64x128xf32, #tpu.memory_space<vmem>>, vector<1x64x128xf32>
    %79 = vector.shape_cast %78 : vector<1x64x128xf32> to vector<64x128xf32>
    %cst_69 = arith.constant dense<0.000000e+00> : vector<128x128xf32>
    %80 = tpu.matmul %77, %79, %cst_69 {dimension_numbers = #tpu.dot_dimension_numbers<[1], [0], [0], [1], [0, 0, 1, 1], [], []>} : vector<128x64xf32>, vector<64x128xf32>, vector<128x128xf32> -> vector<128x128xf32>
    %81 = arith.addf %74, %80 : vector<128x128xf32>
    %c0_70 = arith.constant 0 : index
    %c0_71 = arith.constant 0 : index
    %82 = vector.load %arg9[%c0_70, %c0_71] : memref<1x128xf32, #tpu.memory_space<vmem>>, vector<1x128xf32>
    %83 = vector.broadcast %82 : vector<1x128xf32> to vector<128x128xf32>
    %84 = arith.addf %81, %83 : vector<128x128xf32>
    %cst_72 = arith.constant 0.000000e+00 : f32
    %85 = vector.broadcast %cst_72 : f32 to vector<128x128xf32>
    %86 = arith.maximumf %84, %85 : vector<128x128xf32>
    %c17_73 = arith.constant 17 : index
    %c0_74 = arith.constant 0 : index
    %87 = vector.load %arg20[%c17_73, %c0_74] : memref<162x128xf32, #tpu.memory_space<vmem>>, vector<128x128xf32>
    tpu.vector_store %arg20[%c17_73, %c0_74], %86 {strides = array<i32>} : memref<162x128xf32, #tpu.memory_space<vmem>>, vector<128x128xf32>,
    %cst_75 = arith.constant 0.000000e+00 : f32
    %88 = vector.broadcast %cst_75 : f32 to vector<128x128xf32>
    %c0_76 = arith.constant 0 : index
    %c0_77 = arith.constant 0 : index
    %89 = vector.load %arg20[%c0_76, %c0_77] : memref<162x128xf32, #tpu.memory_space<vmem>>, vector<128x128xf32>
    %90 = vector.broadcast %22 : vector<128x1xf32> to vector<128x128xf32>
    %91 = arith.mulf %89, %90 : vector<128x128xf32>
    %c0_78 = arith.constant 0 : index
    %c0_79 = arith.constant 0 : index
    %c0_80 = arith.constant 0 : index
    %92 = vector.load %arg10[%c0_78, %c0_79, %c0_80] : memref<9x128x128xf32, #tpu.memory_space<vmem>>, vector<1x128x128xf32>
    %93 = vector.shape_cast %92 : vector<1x128x128xf32> to vector<128x128xf32>
    %cst_81 = arith.constant dense<0.000000e+00> : vector<128x128xf32>
    %94 = tpu.matmul %91, %93, %cst_81 {dimension_numbers = #tpu.dot_dimension_numbers<[1], [0], [0], [1], [0, 0, 1, 1], [], []>} : vector<128x128xf32>, vector<128x128xf32>, vector<128x128xf32> -> vector<128x128xf32>
    %95 = arith.addf %88, %94 : vector<128x128xf32>
    %c1_82 = arith.constant 1 : index
    %c0_83 = arith.constant 0 : index
    %96 = vector.load %arg20[%c1_82, %c0_83] : memref<162x128xf32, #tpu.memory_space<vmem>>, vector<128x128xf32>
    %c1_84 = arith.constant 1 : index
    %c0_85 = arith.constant 0 : index
    %c0_86 = arith.constant 0 : index
    %97 = vector.load %arg10[%c1_84, %c0_85, %c0_86] : memref<9x128x128xf32, #tpu.memory_space<vmem>>, vector<1x128x128xf32>
    %98 = vector.shape_cast %97 : vector<1x128x128xf32> to vector<128x128xf32>
    %cst_87 = arith.constant dense<0.000000e+00> : vector<128x128xf32>
    %99 = tpu.matmul %96, %98, %cst_87 {dimension_numbers = #tpu.dot_dimension_numbers<[1], [0], [0], [1], [0, 0, 1, 1], [], []>} : vector<128x128xf32>, vector<128x128xf32>, vector<128x128xf32> -> vector<128x128xf32>
    %100 = arith.addf %95, %99 : vector<128x128xf32>
    %c2_88 = arith.constant 2 : index
    %c0_89 = arith.constant 0 : index
    %101 = vector.load %arg20[%c2_88, %c0_89] : memref<162x128xf32, #tpu.memory_space<vmem>>, vector<128x128xf32>
    %102 = vector.broadcast %23 : vector<128x1xf32> to vector<128x128xf32>
    %103 = arith.mulf %101, %102 : vector<128x128xf32>
    %c2_90 = arith.constant 2 : index
    %c0_91 = arith.constant 0 : index
    %c0_92 = arith.constant 0 : index
    %104 = vector.load %arg10[%c2_90, %c0_91, %c0_92] : memref<9x128x128xf32, #tpu.memory_space<vmem>>, vector<1x128x128xf32>
    %105 = vector.shape_cast %104 : vector<1x128x128xf32> to vector<128x128xf32>
    %cst_93 = arith.constant dense<0.000000e+00> : vector<128x128xf32>
    %106 = tpu.matmul %103, %105, %cst_93 {dimension_numbers = #tpu.dot_dimension_numbers<[1], [0], [0], [1], [0, 0, 1, 1], [], []>} : vector<128x128xf32>, vector<128x128xf32>, vector<128x128xf32> -> vector<128x128xf32>
    %107 = arith.addf %100, %106 : vector<128x128xf32>
    %c16_94 = arith.constant 16 : index
    %c0_95 = arith.constant 0 : index
    %108 = vector.load %arg20[%c16_94, %c0_95] : memref<162x128xf32, #tpu.memory_space<vmem>>, vector<128x128xf32>
    %109 = vector.broadcast %22 : vector<128x1xf32> to vector<128x128xf32>
    %110 = arith.mulf %108, %109 : vector<128x128xf32>
    %c3_96 = arith.constant 3 : index
    %c0_97 = arith.constant 0 : index
    %c0_98 = arith.constant 0 : index
    %111 = vector.load %arg10[%c3_96, %c0_97, %c0_98] : memref<9x128x128xf32, #tpu.memory_space<vmem>>, vector<1x128x128xf32>
    %112 = vector.shape_cast %111 : vector<1x128x128xf32> to vector<128x128xf32>
    %cst_99 = arith.constant dense<0.000000e+00> : vector<128x128xf32>
    %113 = tpu.matmul %110, %112, %cst_99 {dimension_numbers = #tpu.dot_dimension_numbers<[1], [0], [0], [1], [0, 0, 1, 1], [], []>} : vector<128x128xf32>, vector<128x128xf32>, vector<128x128xf32> -> vector<128x128xf32>
    %114 = arith.addf %107, %113 : vector<128x128xf32>
    %c17_100 = arith.constant 17 : index
    %c0_101 = arith.constant 0 : index
    %115 = vector.load %arg20[%c17_100, %c0_101] : memref<162x128xf32, #tpu.memory_space<vmem>>, vector<128x128xf32>
    %c4_102 = arith.constant 4 : index
    %c0_103 = arith.constant 0 : index
    %c0_104 = arith.constant 0 : index
    %116 = vector.load %arg10[%c4_102, %c0_103, %c0_104] : memref<9x128x128xf32, #tpu.memory_space<vmem>>, vector<1x128x128xf32>
    %117 = vector.shape_cast %116 : vector<1x128x128xf32> to vector<128x128xf32>
    %cst_105 = arith.constant dense<0.000000e+00> : vector<128x128xf32>
    %118 = tpu.matmul %115, %117, %cst_105 {dimension_numbers = #tpu.dot_dimension_numbers<[1], [0], [0], [1], [0, 0, 1, 1], [], []>} : vector<128x128xf32>, vector<128x128xf32>, vector<128x128xf32> -> vector<128x128xf32>
    %119 = arith.addf %114, %118 : vector<128x128xf32>
    %c18_106 = arith.constant 18 : index
    %c0_107 = arith.constant 0 : index
    %120 = vector.load %arg20[%c18_106, %c0_107] : memref<162x128xf32, #tpu.memory_space<vmem>>, vector<128x128xf32>
    %121 = vector.broadcast %23 : vector<128x1xf32> to vector<128x128xf32>
    %122 = arith.mulf %120, %121 : vector<128x128xf32>
    %c5_108 = arith.constant 5 : index
    %c0_109 = arith.constant 0 : index
    %c0_110 = arith.constant 0 : index
    %123 = vector.load %arg10[%c5_108, %c0_109, %c0_110] : memref<9x128x128xf32, #tpu.memory_space<vmem>>, vector<1x128x128xf32>
    %124 = vector.shape_cast %123 : vector<1x128x128xf32> to vector<128x128xf32>
    %cst_111 = arith.constant dense<0.000000e+00> : vector<128x128xf32>
    %125 = tpu.matmul %122, %124, %cst_111 {dimension_numbers = #tpu.dot_dimension_numbers<[1], [0], [0], [1], [0, 0, 1, 1], [], []>} : vector<128x128xf32>, vector<128x128xf32>, vector<128x128xf32> -> vector<128x128xf32>
    %126 = arith.addf %119, %125 : vector<128x128xf32>
    %c32_112 = arith.constant 32 : index
    %c0_113 = arith.constant 0 : index
    %127 = vector.load %arg20[%c32_112, %c0_113] : memref<162x128xf32, #tpu.memory_space<vmem>>, vector<128x128xf32>
    %128 = vector.broadcast %22 : vector<128x1xf32> to vector<128x128xf32>
    %129 = arith.mulf %127, %128 : vector<128x128xf32>
    %c6_114 = arith.constant 6 : index
    %c0_115 = arith.constant 0 : index
    %c0_116 = arith.constant 0 : index
    %130 = vector.load %arg10[%c6_114, %c0_115, %c0_116] : memref<9x128x128xf32, #tpu.memory_space<vmem>>, vector<1x128x128xf32>
    %131 = vector.shape_cast %130 : vector<1x128x128xf32> to vector<128x128xf32>
    %cst_117 = arith.constant dense<0.000000e+00> : vector<128x128xf32>
    %132 = tpu.matmul %129, %131, %cst_117 {dimension_numbers = #tpu.dot_dimension_numbers<[1], [0], [0], [1], [0, 0, 1, 1], [], []>} : vector<128x128xf32>, vector<128x128xf32>, vector<128x128xf32> -> vector<128x128xf32>
    %133 = arith.addf %126, %132 : vector<128x128xf32>
    %c33_118 = arith.constant 33 : index
    %c0_119 = arith.constant 0 : index
    %134 = vector.load %arg20[%c33_118, %c0_119] : memref<162x128xf32, #tpu.memory_space<vmem>>, vector<128x128xf32>
    %c7_120 = arith.constant 7 : index
    %c0_121 = arith.constant 0 : index
    %c0_122 = arith.constant 0 : index
    %135 = vector.load %arg10[%c7_120, %c0_121, %c0_122] : memref<9x128x128xf32, #tpu.memory_space<vmem>>, vector<1x128x128xf32>
    %136 = vector.shape_cast %135 : vector<1x128x128xf32> to vector<128x128xf32>
    %cst_123 = arith.constant dense<0.000000e+00> : vector<128x128xf32>
    %137 = tpu.matmul %134, %136, %cst_123 {dimension_numbers = #tpu.dot_dimension_numbers<[1], [0], [0], [1], [0, 0, 1, 1], [], []>} : vector<128x128xf32>, vector<128x128xf32>, vector<128x128xf32> -> vector<128x128xf32>
    %138 = arith.addf %133, %137 : vector<128x128xf32>
    %c34_124 = arith.constant 34 : index
    %c0_125 = arith.constant 0 : index
    %139 = vector.load %arg20[%c34_124, %c0_125] : memref<162x128xf32, #tpu.memory_space<vmem>>, vector<128x128xf32>
    %140 = vector.broadcast %23 : vector<128x1xf32> to vector<128x128xf32>
    %141 = arith.mulf %139, %140 : vector<128x128xf32>
    %c8_126 = arith.constant 8 : index
    %c0_127 = arith.constant 0 : index
    %c0_128 = arith.constant 0 : index
    %142 = vector.load %arg10[%c8_126, %c0_127, %c0_128] : memref<9x128x128xf32, #tpu.memory_space<vmem>>, vector<1x128x128xf32>
    %143 = vector.shape_cast %142 : vector<1x128x128xf32> to vector<128x128xf32>
    %cst_129 = arith.constant dense<0.000000e+00> : vector<128x128xf32>
    %144 = tpu.matmul %141, %143, %cst_129 {dimension_numbers = #tpu.dot_dimension_numbers<[1], [0], [0], [1], [0, 0, 1, 1], [], []>} : vector<128x128xf32>, vector<128x128xf32>, vector<128x128xf32> -> vector<128x128xf32>
    %145 = arith.addf %138, %144 : vector<128x128xf32>
    %c0_130 = arith.constant 0 : index
    %c0_131 = arith.constant 0 : index
    %146 = vector.load %arg11[%c0_130, %c0_131] : memref<1x128xf32, #tpu.memory_space<vmem>>, vector<1x128xf32>
    %147 = vector.broadcast %146 : vector<1x128xf32> to vector<128x128xf32>
    %148 = arith.addf %145, %147 : vector<128x128xf32>
    %cst_132 = arith.constant 0.000000e+00 : f32
    %149 = vector.broadcast %cst_132 : f32 to vector<128x128xf32>
    %150 = arith.maximumf %148, %149 : vector<128x128xf32>
    %c17_133 = arith.constant 17 : index
    %c0_134 = arith.constant 0 : index
    %151 = vector.load %arg20[%c17_133, %c0_134] : memref<162x128xf32, #tpu.memory_space<vmem>>, vector<128x128xf32>
    tpu.vector_store %arg20[%c17_133, %c0_134], %150 {strides = array<i32>} : memref<162x128xf32, #tpu.memory_space<vmem>>, vector<128x128xf32>,
    %cst_135 = arith.constant 0.000000e+00 : f32
    %152 = vector.broadcast %cst_135 : f32 to vector<128x128xf32>
    %c0_136 = arith.constant 0 : index
    %c0_137 = arith.constant 0 : index
    %153 = vector.load %arg20[%c0_136, %c0_137] : memref<162x128xf32, #tpu.memory_space<vmem>>, vector<128x128xf32>
    %154 = vector.broadcast %22 : vector<128x1xf32> to vector<128x128xf32>
    %155 = arith.mulf %153, %154 : vector<128x128xf32>
    %c0_138 = arith.constant 0 : index
    %c0_139 = arith.constant 0 : index
    %c0_140 = arith.constant 0 : index
    %156 = vector.load %arg12[%c0_138, %c0_139, %c0_140] : memref<9x128x128xf32, #tpu.memory_space<vmem>>, vector<1x128x128xf32>
    %157 = vector.shape_cast %156 : vector<1x128x128xf32> to vector<128x128xf32>
    %cst_141 = arith.constant dense<0.000000e+00> : vector<128x128xf32>
    %158 = tpu.matmul %155, %157, %cst_141 {dimension_numbers = #tpu.dot_dimension_numbers<[1], [0], [0], [1], [0, 0, 1, 1], [], []>} : vector<128x128xf32>, vector<128x128xf32>, vector<128x128xf32> -> vector<128x128xf32>
    %159 = arith.addf %152, %158 : vector<128x128xf32>
    %c1_142 = arith.constant 1 : index
    %c0_143 = arith.constant 0 : index
    %160 = vector.load %arg20[%c1_142, %c0_143] : memref<162x128xf32, #tpu.memory_space<vmem>>, vector<128x128xf32>
    %c1_144 = arith.constant 1 : index
    %c0_145 = arith.constant 0 : index
    %c0_146 = arith.constant 0 : index
    %161 = vector.load %arg12[%c1_144, %c0_145, %c0_146] : memref<9x128x128xf32, #tpu.memory_space<vmem>>, vector<1x128x128xf32>
    %162 = vector.shape_cast %161 : vector<1x128x128xf32> to vector<128x128xf32>
    %cst_147 = arith.constant dense<0.000000e+00> : vector<128x128xf32>
    %163 = tpu.matmul %160, %162, %cst_147 {dimension_numbers = #tpu.dot_dimension_numbers<[1], [0], [0], [1], [0, 0, 1, 1], [], []>} : vector<128x128xf32>, vector<128x128xf32>, vector<128x128xf32> -> vector<128x128xf32>
    %164 = arith.addf %159, %163 : vector<128x128xf32>
    %c2_148 = arith.constant 2 : index
    %c0_149 = arith.constant 0 : index
    %165 = vector.load %arg20[%c2_148, %c0_149] : memref<162x128xf32, #tpu.memory_space<vmem>>, vector<128x128xf32>
    %166 = vector.broadcast %23 : vector<128x1xf32> to vector<128x128xf32>
    %167 = arith.mulf %165, %166 : vector<128x128xf32>
    %c2_150 = arith.constant 2 : index
    %c0_151 = arith.constant 0 : index
    %c0_152 = arith.constant 0 : index
    %168 = vector.load %arg12[%c2_150, %c0_151, %c0_152] : memref<9x128x128xf32, #tpu.memory_space<vmem>>, vector<1x128x128xf32>
    %169 = vector.shape_cast %168 : vector<1x128x128xf32> to vector<128x128xf32>
    %cst_153 = arith.constant dense<0.000000e+00> : vector<128x128xf32>
    %170 = tpu.matmul %167, %169, %cst_153 {dimension_numbers = #tpu.dot_dimension_numbers<[1], [0], [0], [1], [0, 0, 1, 1], [], []>} : vector<128x128xf32>, vector<128x128xf32>, vector<128x128xf32> -> vector<128x128xf32>
    %171 = arith.addf %164, %170 : vector<128x128xf32>
    %c16_154 = arith.constant 16 : index
    %c0_155 = arith.constant 0 : index
    %172 = vector.load %arg20[%c16_154, %c0_155] : memref<162x128xf32, #tpu.memory_space<vmem>>, vector<128x128xf32>
    %173 = vector.broadcast %22 : vector<128x1xf32> to vector<128x128xf32>
    %174 = arith.mulf %172, %173 : vector<128x128xf32>
    %c3_156 = arith.constant 3 : index
    %c0_157 = arith.constant 0 : index
    %c0_158 = arith.constant 0 : index
    %175 = vector.load %arg12[%c3_156, %c0_157, %c0_158] : memref<9x128x128xf32, #tpu.memory_space<vmem>>, vector<1x128x128xf32>
    %176 = vector.shape_cast %175 : vector<1x128x128xf32> to vector<128x128xf32>
    %cst_159 = arith.constant dense<0.000000e+00> : vector<128x128xf32>
    %177 = tpu.matmul %174, %176, %cst_159 {dimension_numbers = #tpu.dot_dimension_numbers<[1], [0], [0], [1], [0, 0, 1, 1], [], []>} : vector<128x128xf32>, vector<128x128xf32>, vector<128x128xf32> -> vector<128x128xf32>
    %178 = arith.addf %171, %177 : vector<128x128xf32>
    %c17_160 = arith.constant 17 : index
    %c0_161 = arith.constant 0 : index
    %179 = vector.load %arg20[%c17_160, %c0_161] : memref<162x128xf32, #tpu.memory_space<vmem>>, vector<128x128xf32>
    %c4_162 = arith.constant 4 : index
    %c0_163 = arith.constant 0 : index
    %c0_164 = arith.constant 0 : index
    %180 = vector.load %arg12[%c4_162, %c0_163, %c0_164] : memref<9x128x128xf32, #tpu.memory_space<vmem>>, vector<1x128x128xf32>
    %181 = vector.shape_cast %180 : vector<1x128x128xf32> to vector<128x128xf32>
    %cst_165 = arith.constant dense<0.000000e+00> : vector<128x128xf32>
    %182 = tpu.matmul %179, %181, %cst_165 {dimension_numbers = #tpu.dot_dimension_numbers<[1], [0], [0], [1], [0, 0, 1, 1], [], []>} : vector<128x128xf32>, vector<128x128xf32>, vector<128x128xf32> -> vector<128x128xf32>
    %183 = arith.addf %178, %182 : vector<128x128xf32>
    %c18_166 = arith.constant 18 : index
    %c0_167 = arith.constant 0 : index
    %184 = vector.load %arg20[%c18_166, %c0_167] : memref<162x128xf32, #tpu.memory_space<vmem>>, vector<128x128xf32>
    %185 = vector.broadcast %23 : vector<128x1xf32> to vector<128x128xf32>
    %186 = arith.mulf %184, %185 : vector<128x128xf32>
    %c5_168 = arith.constant 5 : index
    %c0_169 = arith.constant 0 : index
    %c0_170 = arith.constant 0 : index
    %187 = vector.load %arg12[%c5_168, %c0_169, %c0_170] : memref<9x128x128xf32, #tpu.memory_space<vmem>>, vector<1x128x128xf32>
    %188 = vector.shape_cast %187 : vector<1x128x128xf32> to vector<128x128xf32>
    %cst_171 = arith.constant dense<0.000000e+00> : vector<128x128xf32>
    %189 = tpu.matmul %186, %188, %cst_171 {dimension_numbers = #tpu.dot_dimension_numbers<[1], [0], [0], [1], [0, 0, 1, 1], [], []>} : vector<128x128xf32>, vector<128x128xf32>, vector<128x128xf32> -> vector<128x128xf32>
    %190 = arith.addf %183, %189 : vector<128x128xf32>
    %c32_172 = arith.constant 32 : index
    %c0_173 = arith.constant 0 : index
    %191 = vector.load %arg20[%c32_172, %c0_173] : memref<162x128xf32, #tpu.memory_space<vmem>>, vector<128x128xf32>
    %192 = vector.broadcast %22 : vector<128x1xf32> to vector<128x128xf32>
    %193 = arith.mulf %191, %192 : vector<128x128xf32>
    %c6_174 = arith.constant 6 : index
    %c0_175 = arith.constant 0 : index
    %c0_176 = arith.constant 0 : index
    %194 = vector.load %arg12[%c6_174, %c0_175, %c0_176] : memref<9x128x128xf32, #tpu.memory_space<vmem>>, vector<1x128x128xf32>
    %195 = vector.shape_cast %194 : vector<1x128x128xf32> to vector<128x128xf32>
    %cst_177 = arith.constant dense<0.000000e+00> : vector<128x128xf32>
    %196 = tpu.matmul %193, %195, %cst_177 {dimension_numbers = #tpu.dot_dimension_numbers<[1], [0], [0], [1], [0, 0, 1, 1], [], []>} : vector<128x128xf32>, vector<128x128xf32>, vector<128x128xf32> -> vector<128x128xf32>
    %197 = arith.addf %190, %196 : vector<128x128xf32>
    %c33_178 = arith.constant 33 : index
    %c0_179 = arith.constant 0 : index
    %198 = vector.load %arg20[%c33_178, %c0_179] : memref<162x128xf32, #tpu.memory_space<vmem>>, vector<128x128xf32>
    %c7_180 = arith.constant 7 : index
    %c0_181 = arith.constant 0 : index
    %c0_182 = arith.constant 0 : index
    %199 = vector.load %arg12[%c7_180, %c0_181, %c0_182] : memref<9x128x128xf32, #tpu.memory_space<vmem>>, vector<1x128x128xf32>
    %200 = vector.shape_cast %199 : vector<1x128x128xf32> to vector<128x128xf32>
    %cst_183 = arith.constant dense<0.000000e+00> : vector<128x128xf32>
    %201 = tpu.matmul %198, %200, %cst_183 {dimension_numbers = #tpu.dot_dimension_numbers<[1], [0], [0], [1], [0, 0, 1, 1], [], []>} : vector<128x128xf32>, vector<128x128xf32>, vector<128x128xf32> -> vector<128x128xf32>
    %202 = arith.addf %197, %201 : vector<128x128xf32>
    %c34_184 = arith.constant 34 : index
    %c0_185 = arith.constant 0 : index
    %203 = vector.load %arg20[%c34_184, %c0_185] : memref<162x128xf32, #tpu.memory_space<vmem>>, vector<128x128xf32>
    %204 = vector.broadcast %23 : vector<128x1xf32> to vector<128x128xf32>
    %205 = arith.mulf %203, %204 : vector<128x128xf32>
    %c8_186 = arith.constant 8 : index
    %c0_187 = arith.constant 0 : index
    %c0_188 = arith.constant 0 : index
    %206 = vector.load %arg12[%c8_186, %c0_187, %c0_188] : memref<9x128x128xf32, #tpu.memory_space<vmem>>, vector<1x128x128xf32>
    %207 = vector.shape_cast %206 : vector<1x128x128xf32> to vector<128x128xf32>
    %cst_189 = arith.constant dense<0.000000e+00> : vector<128x128xf32>
    %208 = tpu.matmul %205, %207, %cst_189 {dimension_numbers = #tpu.dot_dimension_numbers<[1], [0], [0], [1], [0, 0, 1, 1], [], []>} : vector<128x128xf32>, vector<128x128xf32>, vector<128x128xf32> -> vector<128x128xf32>
    %209 = arith.addf %202, %208 : vector<128x128xf32>
    %c0_190 = arith.constant 0 : index
    %c0_191 = arith.constant 0 : index
    %210 = vector.load %arg13[%c0_190, %c0_191] : memref<1x128xf32, #tpu.memory_space<vmem>>, vector<1x128xf32>
    %211 = vector.broadcast %210 : vector<1x128xf32> to vector<128x128xf32>
    %212 = arith.addf %209, %211 : vector<128x128xf32>
    %cst_192 = arith.constant 0.000000e+00 : f32
    %213 = vector.broadcast %cst_192 : f32 to vector<128x128xf32>
    %214 = arith.maximumf %212, %213 : vector<128x128xf32>
    %c0_193 = arith.constant 0 : index
    %c0_194 = arith.constant 0 : index
    %215 = vector.load %arg14[%c0_193, %c0_194] : memref<128x128xf32, #tpu.memory_space<vmem>>, vector<128x128xf32>
    %216 = arith.mulf %214, %215 : vector<128x128xf32>
    %cst_195 = arith.constant dense<0.000000e+00> : vector<128xf32>
    %217 = vector.multi_reduction <add>, %216, %cst_195 [0] : vector<128x128xf32> to vector<128xf32>
    %218 = vector.shape_cast %217 : vector<128xf32> to vector<1x128xf32>
    %c0_196 = arith.constant 0 : index
    %c0_197 = arith.constant 0 : index
    %219 = vector.load %arg15[%c0_196, %c0_197] : memref<128x128xf32, #tpu.memory_space<vmem>>, vector<128x128xf32>
    %220 = arith.mulf %214, %219 : vector<128x128xf32>
    %cst_198 = arith.constant dense<0.000000e+00> : vector<128xf32>
    %221 = vector.multi_reduction <add>, %220, %cst_198 [0] : vector<128x128xf32> to vector<128xf32>
    %222 = vector.shape_cast %221 : vector<128xf32> to vector<1x128xf32>
    %c0_199 = arith.constant 0 : index
    %c0_200 = arith.constant 0 : index
    %223 = vector.load %arg16[%c0_199, %c0_200] : memref<8x128xf32, #tpu.memory_space<vmem>>, vector<8x128xf32>
    %224 = vector.broadcast %218 : vector<1x128xf32> to vector<8x128xf32>
    %225 = arith.mulf %223, %224 : vector<8x128xf32>
    %cst_201 = arith.constant dense<0.000000e+00> : vector<8xf32>
    %226 = vector.multi_reduction <add>, %225, %cst_201 [1] : vector<8x128xf32> to vector<8xf32>
    %227 = vector.shape_cast %226 : vector<8xf32> to vector<8x1xf32>
    %c0_202 = arith.constant 0 : index
    %c0_203 = arith.constant 0 : index
    %228 = vector.load %arg16[%c0_202, %c0_203] : memref<8x128xf32, #tpu.memory_space<vmem>>, vector<8x128xf32>
    %229 = vector.broadcast %222 : vector<1x128xf32> to vector<8x128xf32>
    %230 = arith.mulf %228, %229 : vector<8x128xf32>
    %cst_204 = arith.constant dense<0.000000e+00> : vector<8xf32>
    %231 = vector.multi_reduction <add>, %230, %cst_204 [1] : vector<8x128xf32> to vector<8xf32>
    %232 = vector.shape_cast %231 : vector<8xf32> to vector<8x1xf32>
    %233 = tpu.iota {dimensions = array<i32: 1>} : vector<8x2xi32>
    %c0_i32 = arith.constant 0 : i32
    %234 = vector.broadcast %c0_i32 : i32 to vector<8x2xi32>
    %235 = arith.cmpi eq, %233, %234 : vector<8x2xi32>
    %236 = vector.shape_cast %227 : vector<8x1xf32> to vector<8x1xf32>
    %237 = vector.broadcast %236 : vector<8x1xf32> to vector<8x2xf32>
    %238 = vector.shape_cast %232 : vector<8x1xf32> to vector<8x1xf32>
    %239 = vector.broadcast %238 : vector<8x1xf32> to vector<8x2xf32>
    %240 = arith.select %235, %237, %239 : vector<8x2xi1>, vector<8x2xf32>
    %c0_205 = arith.constant 0 : index
    %c0_206 = arith.constant 0 : index
    %241 = vector.load %arg17[%c0_205, %c0_206] : memref<1x2xf32, #tpu.memory_space<vmem>>, vector<1x2xf32>
    %242 = vector.broadcast %241 : vector<1x2xf32> to vector<8x2xf32>
    %243 = arith.addf %240, %242 : vector<8x2xf32>
    %c0_207 = arith.constant 0 : index
    %c0_208 = arith.constant 0 : index
    %244 = vector.load %arg18[%c0_207, %c0_208] : memref<8x2xf32, #tpu.memory_space<vmem>>, vector<8x2xf32>
    tpu.vector_store %arg18[%c0_207, %c0_208], %243 {strides = array<i32>} : memref<8x2xf32, #tpu.memory_space<vmem>>, vector<8x2xf32>,
    return
  }
  func.func @transform_0(%arg0: i32) -> (i32, i32, i32) {
    %c0_i32 = arith.constant 0 : i32
    %c0_i32_0 = arith.constant 0 : i32
    %c0_i32_1 = arith.constant 0 : i32
    return %arg0, %c0_i32, %c0_i32_0 : i32, i32, i32
  }
  func.func @transform_1(%arg0: i32) -> (i32, i32) {
    %c0_i32 = arith.constant 0 : i32
    %c0_i32_0 = arith.constant 0 : i32
    %c0_i32_1 = arith.constant 0 : i32
    return %c0_i32, %c0_i32_0 : i32, i32
  }
  func.func @transform_2(%arg0: i32) -> (i32, i32) {
    %c0_i32 = arith.constant 0 : i32
    %c0_i32_0 = arith.constant 0 : i32
    %c0_i32_1 = arith.constant 0 : i32
    return %c0_i32, %c0_i32_0 : i32, i32
  }
  func.func @transform_3(%arg0: i32) -> (i32, i32) {
    %c0_i32 = arith.constant 0 : i32
    %c0_i32_0 = arith.constant 0 : i32
    %c0_i32_1 = arith.constant 0 : i32
    return %c0_i32, %c0_i32_0 : i32, i32
  }
  func.func @transform_4(%arg0: i32) -> (i32, i32) {
    %c0_i32 = arith.constant 0 : i32
    %c0_i32_0 = arith.constant 0 : i32
    %c0_i32_1 = arith.constant 0 : i32
    return %c0_i32, %c0_i32_0 : i32, i32
  }
  func.func @transform_5(%arg0: i32) -> (i32, i32) {
    %c0_i32 = arith.constant 0 : i32
    %c0_i32_0 = arith.constant 0 : i32
    %c0_i32_1 = arith.constant 0 : i32
    return %c0_i32, %c0_i32_0 : i32, i32
  }
  func.func @transform_6(%arg0: i32) -> (i32, i32) {
    %c0_i32 = arith.constant 0 : i32
    %c0_i32_0 = arith.constant 0 : i32
    %c0_i32_1 = arith.constant 0 : i32
    return %c0_i32, %c0_i32_0 : i32, i32
  }
  func.func @transform_7(%arg0: i32) -> (i32, i32, i32) {
    %c0_i32 = arith.constant 0 : i32
    %c0_i32_0 = arith.constant 0 : i32
    %c0_i32_1 = arith.constant 0 : i32
    %c0_i32_2 = arith.constant 0 : i32
    return %c0_i32, %c0_i32_0, %c0_i32_1 : i32, i32, i32
  }
  func.func @transform_8(%arg0: i32) -> (i32, i32) {
    %c0_i32 = arith.constant 0 : i32
    %c0_i32_0 = arith.constant 0 : i32
    %c0_i32_1 = arith.constant 0 : i32
    return %c0_i32, %c0_i32_0 : i32, i32
  }
  func.func @transform_9(%arg0: i32) -> (i32, i32, i32) {
    %c0_i32 = arith.constant 0 : i32
    %c0_i32_0 = arith.constant 0 : i32
    %c0_i32_1 = arith.constant 0 : i32
    %c0_i32_2 = arith.constant 0 : i32
    return %c0_i32, %c0_i32_0, %c0_i32_1 : i32, i32, i32
  }
  func.func @transform_10(%arg0: i32) -> (i32, i32) {
    %c0_i32 = arith.constant 0 : i32
    %c0_i32_0 = arith.constant 0 : i32
    %c0_i32_1 = arith.constant 0 : i32
    return %c0_i32, %c0_i32_0 : i32, i32
  }
  func.func @transform_11(%arg0: i32) -> (i32, i32, i32) {
    %c0_i32 = arith.constant 0 : i32
    %c0_i32_0 = arith.constant 0 : i32
    %c0_i32_1 = arith.constant 0 : i32
    %c0_i32_2 = arith.constant 0 : i32
    return %c0_i32, %c0_i32_0, %c0_i32_1 : i32, i32, i32
  }
  func.func @transform_12(%arg0: i32) -> (i32, i32) {
    %c0_i32 = arith.constant 0 : i32
    %c0_i32_0 = arith.constant 0 : i32
    %c0_i32_1 = arith.constant 0 : i32
    return %c0_i32, %c0_i32_0 : i32, i32
  }
  func.func @transform_13(%arg0: i32) -> (i32, i32) {
    %c0_i32 = arith.constant 0 : i32
    %c0_i32_0 = arith.constant 0 : i32
    %c0_i32_1 = arith.constant 0 : i32
    return %c0_i32, %c0_i32_0 : i32, i32
  }
  func.func @transform_14(%arg0: i32) -> (i32, i32) {
    %c0_i32 = arith.constant 0 : i32
    %c0_i32_0 = arith.constant 0 : i32
    %c0_i32_1 = arith.constant 0 : i32
    return %c0_i32, %c0_i32_0 : i32, i32
  }
  func.func @transform_15(%arg0: i32) -> (i32, i32) {
    %c0_i32 = arith.constant 0 : i32
    %c0_i32_0 = arith.constant 0 : i32
    %c0_i32_1 = arith.constant 0 : i32
    return %c0_i32, %c0_i32_0 : i32, i32
  }
  func.func @transform_16(%arg0: i32) -> (i32, i32) {
    %c0_i32 = arith.constant 0 : i32
    %c0_i32_0 = arith.constant 0 : i32
    %c0_i32_1 = arith.constant 0 : i32
    return %c0_i32, %c0_i32_0 : i32, i32
  }
  func.func @transform_17(%arg0: i32) -> (i32, i32) {
    %c0_i32 = arith.constant 0 : i32
    %c0_i32_0 = arith.constant 0 : i32
    return %arg0, %c0_i32 : i32, i32
  }
}

</mosaic_0001>

<bundles_post_ra>
// kernel: tpu_custom_call.1
= control target key start
LH: loop header
LB: loop body
LE: loop exit
PB: predicated region body
PF: predicated region fallthrough
CT: control target
= control target key end

     0   :  { %s7613_s0 = inlined_call_operand.vmem [shape: f32[2,32,64], index: 0, kind: input, shape index: {}]   ;;  %s7614_s1 = inlined_call_operand.vmem [shape: f32[16,32], index: 1, kind: input, shape index: {}]   ;;  %s7615_s2 = inlined_call_operand.vmem [shape: f32[16,1], index: 2, kind: input, shape index: {}]   ;;  %s7616_s3 = inlined_call_operand.vmem [shape: f32[128,16], index: 3, kind: input, shape index: {}]   ;;  %s7617_s4 = inlined_call_operand.vmem [shape: f32[128,64], index: 4, kind: input, shape index: {}]   ;;  %s7618_s5 = inlined_call_operand.vmem [shape: f32[128,1], index: 5, kind: input, shape index: {}]   ;;  %s7619_s6 = inlined_call_operand.vmem [shape: f32[128,1], index: 6, kind: input, shape index: {}]   ;;  %s7620_s7 = inlined_call_operand.hbm [shape: f32[9,64,128], index: 7, kind: input, shape index: {}]   ;;  %s7621_s8 = inlined_call_operand.vmem [shape: f32[1,128], index: 8, kind: input, shape index: {}]   ;;  %s7622_s9 = inlined_call_operand.hbm [shape: f32[9,128,128], index: 9, kind: input, shape index: {}]   ;;  %s7623_s10 = inlined_call_operand.vmem [shape: f32[1,128], index: 10, kind: input, shape index: {}]   ;;  %s7624_s11 = inlined_call_operand.hbm [shape: f32[9,128,128], index: 11, kind: input, shape index: {}]   ;;  %s7625_s12 = inlined_call_operand.vmem [shape: f32[1,128], index: 12, kind: input, shape index: {}]   ;;  %s7626_s13 = inlined_call_operand.vmem [shape: f32[128,128], index: 13, kind: input, shape index: {}]   ;;  %s7627_s14 = inlined_call_operand.vmem [shape: f32[128,128], index: 14, kind: input, shape index: {}]   ;;  %s7628_s15 = inlined_call_operand.vmem [shape: f32[8,128], index: 15, kind: input, shape index: {}]   ;;  %s7629_s16 = inlined_call_operand.vmem [shape: f32[1,2], index: 16, kind: input, shape index: {}]   ;;  %s7630_s17 = inlined_call_operand.vmem [shape: f32[16,2], index: 17, kind: output, shape index: {}]  }
   0x1   :  { %7761 = sst [smem:[#allocation68_spill]] %s7613_s0 }
   0x2   :  { %7762 = sst [smem:[#allocation69_spill]] %s7614_s1 }
   0x3   :  { %7763 = sst [smem:[#allocation70_spill]] %s7622_s9 }
   0x4   :  { %22 = vsyncpa [#allocation5], 0 }
   0x5   :  { %23 = vsyncpa [#allocation7], 0  ;;  %s5457_s24 = smov 0  }
   0x6 LB: > { %s5463_s25 = sadd.s32 4294967295, %s5358_s24   ;;  %p5008_p0 = scmp.ge.s32.totalorder %s5358_s24, 1  ;;  %s5358_s24 = sphi %s5457_s24, %s29_s24  }
   0x7   : > { %p422_p1 = scmp.lt.s32.totalorder %s5358_s24, 3  ;;  %p5223_p2 = scmp.eq.s32.totalorder %s5463_s25, 0 }
   0x8   : > { %s7764_s9 = sld [smem:[#allocation70_spill]]  ;;  %s451_s18 = sshll.u32 %s7620_s7, 4  ;;  %s452_s18 = int_to_ptr.hbm [resolvable:$true] %s451_s18 }
   0x9   : > { %p5471_p3 = pnand %p5008_p0, %p422_p1  ;;  %s5360_s19 = smov [#allocation6]  }
   0xa   : > { %s470_s1 = sshll.u32 %s5360_s19, 4  ;;  %s5361_s20 = smov [#allocation4]   ;;  %s471_s1 = int_to_ptr.vmem [resolvable:$true] %s470_s1 }
   0xb   : > { %p5213_p4 = pneg %p5471_p3  ;;  %s453_s21 = sshll.u32 %s5361_s20, 4  ;;  %s454_s21 = int_to_ptr.vmem [resolvable:$true] %s453_s21 }
   0xc   : > { %s485_s26 = sshll.u32 %s7624_s11, 4  ;;  %s5362_s27 = smov 128   ;;  %s486_s26 = int_to_ptr.hbm [resolvable:$true] %s485_s26 }
   0xd   : > { %p5214_p5 = pnand %p5223_p2, %p5213_p4  ;;  %s5364_s0 = smov [#allocation8]  }
   0xe   : > { %s468_s28 = sshll.u32 %s7764_s9, 4  ;;  %s5363_s9 = smov 8   ;;  %s469_s28 = int_to_ptr.hbm [resolvable:$true] %s468_s28 }
   0xf   : > { %5219 = dma.hbm_to_vmem [thread:$0]  (!%p5214_p5), %s469_s28, 18432, %s471_s1, [#allocation7], %s5362_s27, %s5362_s27, %s5363_s9  }
  0x10   : > { %5216 = dma.hbm_to_vmem [thread:$0]  (!%p5214_p5), %s452_s18, 9216, %s454_s21, [#allocation5], %s5362_s27, %s5362_s27, %s5363_s9  }
  0x11   : > { %s487_s30 = sshll.u32 %s5364_s0, 4  ;;  %526 = sbr.rel (%p5471_p3) target bundleno = 1699 (0x6a3), region = 88  ;;  %s488_s30 = int_to_ptr.vmem [resolvable:$true] %s487_s30 }
  0x12   : > { %5222 = dma.hbm_to_vmem [thread:$0]  (!%p5214_p5), %s486_s26, 18432, %s488_s30, [#allocation7], %s5362_s27, %s5362_s27, %s5363_s9  }
  0x16   : > { %5349 = dma.done.wait (%p5223_p2), [#allocation5], 9216  }
  0x17   : > { %5351 = vsyncadd (%p5223_p2), [#allocation5], 4294958080 }
  0x18   : > { %5353 = dma.done.wait (%p5223_p2), [#allocation7], 36864  }
  0x19   : > { %5355 = vsyncadd (%p5223_p2), [#allocation7], 4294930432  ;;  %p588_p6 = scmp.lt.s32.totalorder %s5463_s25, 1  ;;  %v5365_v0 = vmov 0   ;;  %s7766_s18 = sld [smem:[#allocation68_spill]]  ;;  %v618_v1 = vld [vmem:[%s7615_s2 + $0x8] sm:$0xff] }
  0x1a   : > { %5244 = vset.pattern.permute.xlu0 %v5365_v0  ;;  %5245 = vset.pattern.permute.xlu1 %v5365_v0  ;;  %s7767_s23 = sld [smem:[#allocation69_spill]]  ;;  %vm629_vm0 = vcmask 261120   ;;  %v617_v7 = vld [vmem:[%s7615_s2] sm:$0xff]  ;;  %v856_v9 = vld [vmem:[%s7619_s6 + $0x8] sm:$0xff]  ;;  %v846_v12 = vld [vmem:[%s7618_s5 + $0x38] sm:$0xff]  ;;  %vm677_vm1 = vcmask 130048  }
  0x1b   : > { %s8022_s25 = smov (!%p588_p6, %s5463_s25), 1  ;;  %5246 = vset.pattern.permute.xlu2 %v5365_v0  ;;  %626 = vperm.xlu0 %5244, %v618_v1   ;;  %v843_v10 = vld [vmem:[%s7618_s5 + $0x20] sm:$0xff]  ;;  %v862_v13 = vld [vmem:[%s7619_s6 + $0x38] sm:$0xff]  ;;  %v849_v14 = vld [vmem:[%s7618_s5 + $0x50] sm:$0xff]  ;;  %vm597_vm2 = vcmask 523264   ;;  %v5366_v36 = vmov 0.0  }
  0x1c   : > { %s5184_s9 = sshll.u32 %s8022_s25, 5  ;;  %v859_v11 = vld [vmem:[%s7619_s6 + $0x20] sm:$0xff]  ;;  %v865_v15 = vld [vmem:[%s7619_s6 + $0x50] sm:$0xff]  ;;  %v852_v16 = vld [vmem:[%s7618_s5 + $0x68] sm:$0xff]  ;;  %598 = vst.msk [vmem:[#allocation2] sm:$0xff] %vm597_vm2, %v5366_v36  ;;  %vm600_vm3 = vcmask 516096  }
  0x1d   : > { %v868_v17 = vld [vmem:[%s7619_s6 + $0x68] sm:$0xff]  ;;  %v870_v18 = vld [vmem:[%s7619_s6 + $0x78] sm:$0xff]  ;;  %v839_v19 = vld [vmem:[%s7618_s5] sm:$0xff]  ;;  %599 = vst.msk [vmem:[#allocation2 + $0x8] sm:$0xff] %vm597_vm2, %v5366_v36  ;;  %s5019_s1 = sshll.u32 %s8022_s25, 3  ;;  %vm4920_vm5 = vcmask 15360  }
  0x1e   : > { %889 = vperm.xlu1 %5245, %v839_v19   ;;  %v840_v20 = vld [vmem:[%s7618_s5 + $0x8] sm:$0xff]  ;;  %v842_v25 = vld [vmem:[%s7618_s5 + $0x18] sm:$0xff]  ;;  %v661_v30 = vld [vmem:[%s7616_s3] sm:$0xff]  ;;  %602 = vst.msk [vmem:[#allocation2 + $0x91] sm:$0xff] %vm597_vm2, %v5366_v36  ;;  %s596_s27 = scalar_lea.vmem %s7630_s17, %s5019_s1 }
  0x1f   : > { %s592_s19 = scalar_lea.vmem %s7766_s18, %s5184_s9  ;;  %v855_v31 = vld [vmem:[%s7619_s6] sm:$0xff]  ;;  %v858_v32 = vld [vmem:[%s7619_s6 + $0x18] sm:$0xff]  ;;  %v662_v33 = vld [vmem:[%s7616_s3 + $0x8] sm:$0xff]  ;;  %603 = vst.msk [vmem:[#allocation2 + $0x99] sm:$0xff] %vm597_vm2, %v5366_v36 }
  0x20   : > { %v616_v2 = vld [vmem:[%s592_s19 + $0x18] sm:$0xff]  ;;  %v615_v3 = vld [vmem:[%s592_s19 + $0x10] sm:$0xff]  ;;  %v614_v4 = vld [vmem:[%s592_s19 + $0x8] sm:$0xff]  ;;  %1260 = vperm.xlu2 %5246, %v855_v31   ;;  %605 = vst [vmem:[#allocation3] sm:$0xff] %v5366_v36 }
  0x21   : > { %648 = vmatpush.msra.mxu0 %v616_v2  ;;  %v613_v5 = vld [vmem:[%s592_s19] sm:$0xff]  ;;  %v612_v8 = vld [vmem:[%s7767_s23 + $0x8] sm:$0xff]  ;;  %v841_v34 = vld [vmem:[%s7618_s5 + $0x10] sm:$0xff]  ;;  %606 = vst [vmem:[#allocation3 + $0x8] sm:$0xff] %v5366_v36 }
  0x22   : > { %v611_v6 = vld [vmem:[%s7767_s23] sm:$0xff]  ;;  %v663_v35 = vld [vmem:[%s7616_s3 + $0x10] sm:$0xff]  ;;  %v664_v39 = vld [vmem:[%s7616_s3 + $0x18] sm:$0xff]  ;;  %607 = vst [vmem:[#allocation3 + $0x10] sm:$0x1] %v5366_v36 }
  0x23   : > { %649 = vmatpush.msra.mxu0 %v615_v3  ;;  %621 = vperm.xlu0 %5244, %v617_v7   ;;  %v857_v37 = vld [vmem:[%s7619_s6 + $0x10] sm:$0xff]  ;;  %608 = vst [vmem:[#allocation3 + $0x91] sm:$0xff] %v5366_v36  ;;  %v665_v41 = vld [vmem:[%s7616_s3 + $0x20] sm:$0xff]  ;;  %v844_v42 = vld [vmem:[%s7618_s5 + $0x28] sm:$0xff] }
  0x24   : > { %v845_v38 = vld [vmem:[%s7618_s5 + $0x30] sm:$0xff]  ;;  %609 = vst [vmem:[#allocation3 + $0x99] sm:$0xff] %v5366_v36  ;;  %v666_v43 = vld [vmem:[%s7616_s3 + $0x28] sm:$0xff]  ;;  %v668_v48 = vld [vmem:[%s7616_s3 + $0x38] sm:$0xff] }
  0x25   : > { %650 = vmatpush.msra.mxu0 %v614_v4  ;;  %v861_v40 = vld [vmem:[%s7619_s6 + $0x30] sm:$0xff]  ;;  %610 = vst [vmem:[#allocation3 + $0xa1] sm:$0x1] %v5366_v36  ;;  %v860_v44 = vld [vmem:[%s7619_s6 + $0x28] sm:$0xff]  ;;  %v847_v49 = vld [vmem:[%s7618_s5 + $0x40] sm:$0xff] }
  0x26   : > { %894 = vperm.xlu1 %5245, %v840_v20   ;;  %601 = vst.msk [vmem:[#allocation2 + $0x10] sm:$0x1] %vm600_vm3, %v5366_v36  ;;  %v848_v45 = vld [vmem:[%s7618_s5 + $0x48] sm:$0xff]  ;;  %v667_v46 = vld [vmem:[%s7616_s3 + $0x30] sm:$0xff]  ;;  %v669_v50 = vld [vmem:[%s7616_s3 + $0x40] sm:$0xff] }
  0x27   : > { %651 = vmatpush.msra.mxu0 %v613_v5  ;;  %604 = vst.msk [vmem:[#allocation2 + $0xa1] sm:$0x1] %vm600_vm3, %v5366_v36  ;;  %v864_v47 = vld [vmem:[%s7619_s6 + $0x48] sm:$0xff]  ;;  %v863_v51 = vld [vmem:[%s7619_s6 + $0x40] sm:$0xff]  ;;  %v1013_v58 = vld [vmem:[#allocation4 + $0x68] sm:$0xff] }
  0x28   : > { %5020 = vmatmul.msk.f32.vlgmr.msra.gmra.mxu0 %vm629_vm0, %v611_v6  ;;  %899 = vperm.xlu2 %5246, %v841_v34   ;;  %v851_v52 = vld [vmem:[%s7618_s5 + $0x60] sm:$0xff]  ;;  %v670_v53 = vld [vmem:[%s7616_s3 + $0x48] sm:$0xff]  ;;  %v988_v59 = vld [vmem:[#allocation4 + $0x28] sm:$0xff] }
  0x29   : > { %v1015_v54 = vld [vmem:[#allocation4 + $0x78] sm:$0xff]  ;;  %v1014_v56 = vld [vmem:[#allocation4 + $0x70] sm:$0xff]  ;;  %v1012_v61 = vld [vmem:[#allocation4 + $0x60] sm:$0xff] }
  0x2a   : > { %v990_v55 = vld [vmem:[#allocation4 + $0x38] sm:$0xff]  ;;  %1072 = vmatpush.msra.mxu2 %v1015_v54  ;;  %v989_v57 = vld [vmem:[#allocation4 + $0x30] sm:$0xff]  ;;  %v987_v62 = vld [vmem:[#allocation4 + $0x20] sm:$0xff] }
  0x2b   : > { %1265 = vperm.xlu0 %5244, %v856_v9   ;;  %1185 = vmatpush.msra.mxu3 %v990_v55  ;;  %v867_v60 = vld [vmem:[%s7619_s6 + $0x60] sm:$0xff]  ;;  %v671_v63 = vld [vmem:[%s7616_s3 + $0x50] sm:$0xff]  ;;  %v1011_v0 = vld [vmem:[#allocation4 + $0x58] sm:$0xff] }
  0x2c   : > { %1073 = vmatpush.msra.mxu2 %v1014_v56  ;;  %v986_v1 = vld [vmem:[#allocation4 + $0x18] sm:$0xff]  ;;  %v1010_v3 = vld [vmem:[#allocation4 + $0x50] sm:$0xff]  ;;  %v1009_v6 = vld [vmem:[#allocation4 + $0x48] sm:$0xff] }
  0x2d   : > { %1186 = vmatpush.msra.mxu3 %v989_v57  ;;  %v1362_v2 = vld [vmem:[#allocation4 + $0xb8] sm:$0xff]  ;;  %v985_v4 = vld [vmem:[#allocation4 + $0x10] sm:$0xff]  ;;  %v984_v7 = vld [vmem:[#allocation4 + $0x8] sm:$0xff] }
  0x2e   : > { %904 = vperm.xlu1 %5245, %v842_v25   ;;  %1074 = vmatpush.msra.mxu2 %v1013_v58  ;;  %v1361_v5 = vld [vmem:[#allocation4 + $0xb0] sm:$0xff]  ;;  %v1358_v19 = vld [vmem:[#allocation4 + $0x98] sm:$0xff]  ;;  %v1355_v31 = vld [vmem:[#allocation4 + $0x80] sm:$0xff] }
  0x2f   : > { %1187 = vmatpush.msra.mxu3 %v988_v59  ;;  %1419 = vmatpush.msrb.mxu0 %v1362_v2  ;;  %v1357_v20 = vld [vmem:[#allocation4 + $0x90] sm:$0xff]  ;;  %v1529_v36 = vld [vmem:[#allocation4 + $0xe0] sm:$0xff] }
  0x30   : > { %5021 = vmatmul.msk.f32.gmra.mxu0 %vm629_vm0, %v612_v8  ;;  %1270 = vperm.xlu2 %5246, %v857_v37   ;;  %v850_v8 = vld [vmem:[%s7618_s5 + $0x58] sm:$0xff]  ;;  %v1528_v37 = vld [vmem:[#allocation4 + $0xd8] sm:$0xff] }
  0x31   : > { %1075 = vmatpush.msra.mxu2 %v1012_v61  ;;  %1188 = vmatpush.msra.mxu3 %v987_v62  ;;  %v1683_v62 = vld [vmem:[#allocation4 + $0x120] sm:$0xff] }
  0x32   : > { %1420 = vmatpush.msrb.mxu0 %v1361_v5 }
  0x33   : > { %909 = vperm.xlu0 %5244, %v843_v10   ;;  %1076 = vmatpush.msra.mxu2 %v1011_v0  ;;  %v1360_v10 = vld [vmem:[#allocation4 + $0xa8] sm:$0xff] }
  0x34   : > { %1189 = vmatpush.msra.mxu3 %v986_v1  ;;  %1421 = vmatpush.msrb.mxu0 %v1360_v10 }
  0x35   : > { %1077 = vmatpush.msra.mxu2 %v1010_v3 }
  0x36   : > { %1275 = vperm.xlu1 %5245, %v858_v32   ;;  %1190 = vmatpush.msra.mxu3 %v985_v4  ;;  %v1530_v32 = vld [vmem:[#allocation4 + $0xe8] sm:$0xff] }
  0x37   : > { %1078 = vmatpush.msra.mxu2 %v1009_v6 }
  0x38   : > { %914 = vperm.xlu2 %5246, %v844_v42   ;;  %1191 = vmatpush.msra.mxu3 %v984_v7  ;;  %v1525_v42 = vld [vmem:[#allocation4 + $0xc0] sm:$0xff] }
  0x3b   : > { %1280 = vperm.xlu0 %5244, %v859_v11   ;;  %v1008_v11 = vld [vmem:[#allocation4 + $0x40] sm:$0xff] }
  0x3c   : > { %1079 = vmatpush.msra.mxu2 %v1008_v11  ;;  %v794_v11 = vld [vmem:[%s7617_s4 + $0x18] sm:$0xff] }
  0x3e   : > { %919 = vperm.xlu1 %5245, %v845_v38   ;;  %v1527_v38 = vld [vmem:[#allocation4 + $0xd0] sm:$0xff] }
  0x40   : > { %1285 = vperm.xlu2 %5246, %v860_v44   ;;  %v675_v44 = vld [vmem:[%s7616_s3 + $0x70] sm:$0xff] }
  0x43   : > { %924 = vperm.xlu0 %5244, %v846_v12   ;;  %v983_v12 = vld [vmem:[#allocation4] sm:$0xff] }
  0x44   : > { %1192 = vmatpush.msra.mxu3 %v983_v12 }
  0x46   : > { %1290 = vperm.xlu1 %5245, %v861_v40   ;;  %v1526_v40 = vld [vmem:[#allocation4 + $0xc8] sm:$0xff] }
  0x48   : > { %929 = vperm.xlu2 %5246, %v847_v49  }
  0x4b   : > { %1295 = vperm.xlu0 %5244, %v862_v13   ;;  %v672_v13 = vld [vmem:[%s7616_s3 + $0x58] sm:$0xff] }
  0x4e   : > { %934 = vperm.xlu1 %5245, %v848_v45   ;;  %v869_v45 = vld [vmem:[%s7619_s6 + $0x70] sm:$0xff] }
  0x50   : > { %1300 = vperm.xlu2 %5246, %v863_v51   ;;  %v792_v51 = vld [vmem:[%s7617_s4 + $0x8] sm:$0xff] }
  0x53   : > { %939 = vperm.xlu0 %5244, %v849_v14   ;;  %v1359_v14 = vld [vmem:[#allocation4 + $0xa0] sm:$0xff] }
  0x54   : > { %1422 = vmatpush.msrb.mxu0 %v1359_v14 }
  0x56   : > { %1305 = vperm.xlu1 %5245, %v864_v47   ;;  %1423 = vmatpush.msrb.mxu0 %v1358_v19  ;;  %v1684_v47 = vld [vmem:[#allocation4 + $0x128] sm:$0xff] }
  0x58   : > { %944 = vperm.xlu2 %5246, %v850_v8   ;;  %1424 = vmatpush.msrb.mxu0 %v1357_v20 }
  0x5b   : > { %1310 = vperm.xlu0 %5244, %v865_v15   ;;  %v871_v15 = vld [vmem:[#allocation2] sm:$0xff] }
  0x5e   : > { %949 = vperm.xlu1 %5245, %v851_v52  }
  0x63   : > { %954 = vperm.xlu0 %5244, %v852_v16  }
  0x66   : > { %1320 = vperm.xlu1 %5245, %v867_v60  }
  0x6b   : > { %1325 = vperm.xlu0 %5244, %v868_v17   ;;  %v991_v17 = vld [vmem:[#allocation2 + $0x1] sm:$0xff] }
  0x6c   : > { %5038 = vmatmul.msk.f32.vlgmr.msra.gmra.mxu2 %vm597_vm2, %v991_v17 }
  0x73   : > { %1335 = vperm.xlu0 %5244, %v870_v18   ;;  %v1686_v18 = vld [vmem:[#allocation4 + $0x138] sm:$0xff] }
  0x74   : > { %1743 = vmatpush.msrb.mxu2 %v1686_v18 }
  0x8d   : > { %v627_v21 = vpop.permute.xlu0 %626 }
  0x90   : > { %v5647_v9 = vpop.permute.xlu1 %889 }
  0x91   : > { %7768 = vst [vmem:[#allocation11_spill] sm:$0xff] %v5647_v9  ;;  %v967_v16 = vmul.f32 %v5647_v9, %v871_v15 }
  0x93   : > { %5054 = vmatmul.msk.f32.vlgmr.msra.gmra.mxu3 %vm597_vm2, %v967_v16 }
  0x95   : > { %v622_v23 = vpop.permute.xlu0 %621 }
  0x98   : > { %v5664_v25 = vpop.permute.xlu1 %894 }
  0x99   : > { %7770 = vst [vmem:[#allocation13_spill] sm:$0xff] %v5664_v25 }
  0x9d   : > { %v5702_v55 = vpop.permute.xlu0 %1265 }
  0x9e   : > { %7772 = vst [vmem:[#allocation15_spill] sm:$0xff] %v5702_v55 }
  0xa0   : > { %v5718_v0 = vpop.permute.xlu1 %904 }
  0xa1   : > { %7773 = vst [vmem:[#allocation16_spill] sm:$0xff] %v5718_v0 }
  0xa5   : > { %v653_v22 = vpop.f32.mrf.mxu0  ;;  %v5739_v12 = vpop.permute.xlu0 %909 }
  0xa6   : > { %v654_v26 = vadd.f32 %v653_v22, %v622_v23  ;;  %v866_v22 = vld [vmem:[%s7619_s6 + $0x58] sm:$0xff]  ;;  %7775 = vst [vmem:[#allocation18_spill] sm:$0xff] %v5739_v12 }
  0xa7   : > { %v854_v23 = vld [vmem:[%s7618_s5 + $0x78] sm:$0xff]  ;;  %1315 = vperm.xlu2 %5246, %v866_v22   ;;  %v1682_v22 = vld [vmem:[#allocation4 + $0x118] sm:$0xff] }
  0xa8   : > { %v659_v29 = vmax.f32 %v654_v26, 0.0  ;;  %964 = vperm.xlu1 %5245, %v854_v23   ;;  %v1356_v26 = vld [vmem:[#allocation4 + $0x88] sm:$0xff]  ;;  %v5741_v14 = vpop.permute.xlu1 %1275  ;;  %v795_v23 = vld [vmem:[%s7617_s4 + $0x20] sm:$0xff] }
  0xa9   : > { %1425 = vmatpush.msrb.mxu0 %v1356_v26  ;;  %7776 = vst [vmem:[#allocation19_spill] sm:$0xff] %v5741_v14 }
  0xab   : > { %1426 = vmatpush.msrb.mxu0 %v1355_v31 }
  0xad   : > { %v656_v24 = vpop.f32.mrf.mxu0 }
  0xae   : > { %v657_v27 = vadd.f32 %v656_v24, %v627_v21  ;;  %v1532_v21 = vld [vmem:[#allocation4 + $0xf8] sm:$0xff]  ;;  %v5662_v24 = vpop.permute.xlu2 %1260 }
  0xaf   : > { %7769 = vst [vmem:[#allocation12_spill] sm:$0xff] %v5662_v24 }
  0xb0   : > { %v660_v28 = vmax.f32 %v657_v27, 0.0  ;;  %v1531_v27 = vld [vmem:[#allocation4 + $0xf0] sm:$0xff] }
  0xb2   : > { %740 = vmatpush.msra.mxu1 %v660_v28  ;;  %v673_v28 = vld [vmem:[%s7616_s3 + $0x60] sm:$0xff] }
  0xb4   : > { %741 = vmatpush.msra.mxu1 %v659_v29  ;;  %v872_v29 = vld [vmem:[#allocation2 + $0x8] sm:$0xff] }
  0xb5   : > { %5022 = vmatmul.msk.f32.vlgmr.msra.gmra.mxu1 %vm677_vm1, %v661_v30  ;;  %v1242_v30 = vld [vmem:[#allocation2 + $0x2] sm:$0xff] }
  0xb6   : > { %1589 = vmatpush.msrb.mxu1 %v1532_v21  ;;  %v1338_v34 = vmul.f32 %v5662_v24, %v1242_v30  ;;  %v5700_v52 = vpop.permute.xlu2 %899 }
  0xb7   : > { %7771 = vst [vmem:[#allocation14_spill] sm:$0xff] %v5700_v52 }
  0xb8   : > { %1590 = vmatpush.msrb.mxu1 %v1531_v27  ;;  %5070 = vmatmul.msk.f32.vlgmr.msrb.gmra.mxu0 %vm597_vm2, %v1338_v34 }
  0xba   : > { %1591 = vmatpush.msrb.mxu1 %v1530_v32 }
  0xbc   : > { %1592 = vmatpush.msrb.mxu1 %v1529_v36  ;;  %v796_v36 = vld [vmem:[%s7617_s4 + $0x28] sm:$0xff] }
  0xbd   : > { %5023 = vmatmul.msk.f32.gmra.mxu1 %vm677_vm1, %v662_v33  ;;  %v968_v33 = vmul.f32 %v5664_v25, %v872_v29  ;;  %v5766_v29 = vpop.permute.xlu0 %1280 }
  0xbe   : > { %1593 = vmatpush.msrb.mxu1 %v1528_v37  ;;  %v5720_v2 = vpop.permute.xlu2 %1270  ;;  %7778 = vst [vmem:[#allocation21_spill] sm:$0xff] %v5766_v29  ;;  %v5789_v37 = vpop.permute.xlu1 %919 }
  0xbf   : > { %5055 = vmatmul.msk.f32.gmra.mxu3 %vm597_vm2, %v968_v33  ;;  %7774 = vst [vmem:[#allocation17_spill] sm:$0xff] %v5720_v2 }
  0xc0   : > { %1594 = vmatpush.msrb.mxu1 %v1527_v38  ;;  %7779 = vst [vmem:[#allocation22_spill] sm:$0xff] %v5789_v37 }
  0xc2   : > { %1595 = vmatpush.msrb.mxu1 %v1526_v40 }
  0xc4   : > { %1596 = vmatpush.msrb.mxu1 %v1525_v42 }
  0xc5   : > { %5024 = vmatmul.msk.f32.gmra.mxu1 %vm677_vm1, %v663_v35  ;;  %v992_v35 = vld [vmem:[#allocation2 + $0x9] sm:$0xff] }
  0xc6   : > { %5039 = vmatmul.msk.f32.gmra.mxu2 %vm597_vm2, %v992_v35  ;;  %v5764_v26 = vpop.permute.xlu2 %914 }
  0xc7   : > { %7777 = vst [vmem:[#allocation20_spill] sm:$0xff] %v5764_v26 }
  0xcd   : > { %5025 = vmatmul.msk.f32.gmra.mxu1 %vm677_vm1, %v664_v39  ;;  %v674_v39 = vld [vmem:[%s7616_s3 + $0x68] sm:$0xff] }
  0xd5   : > { %5026 = vmatmul.msk.f32.gmra.mxu1 %vm677_vm1, %v665_v41  ;;  %v1685_v41 = vld [vmem:[#allocation4 + $0x130] sm:$0xff] }
  0xd6   : > { %1744 = vmatpush.msrb.mxu2 %v1685_v41 }
  0xd8   : > { %1745 = vmatpush.msrb.mxu2 %v1684_v47  ;;  %v1681_v47 = vld [vmem:[#allocation4 + $0x110] sm:$0xff] }
  0xda   : > { %1746 = vmatpush.msrb.mxu2 %v1683_v62  ;;  %v798_v62 = vld [vmem:[%s7617_s4 + $0x38] sm:$0xff] }
  0xdc   : > { %1747 = vmatpush.msrb.mxu2 %v1682_v22 }
  0xdd   : > { %5027 = vmatmul.msk.f32.gmra.mxu1 %vm677_vm1, %v666_v43  ;;  %v853_v43 = vld [vmem:[%s7618_s5 + $0x70] sm:$0xff] }
  0xde   : > { %959 = vperm.xlu2 %5246, %v853_v43   ;;  %1748 = vmatpush.msrb.mxu2 %v1681_v47 }
  0xe5   : > { %5028 = vmatmul.msk.f32.gmra.mxu1 %vm677_vm1, %v667_v46  ;;  %v676_v46 = vld [vmem:[%s7616_s3 + $0x78] sm:$0xff] }
  0xe6   : > { %1330 = vperm.xlu2 %5246, %v869_v45  }
  0xed   : > { %5029 = vmatmul.msk.f32.gmra.mxu1 %vm677_vm1, %v668_v48  ;;  %v791_v48 = vld [vmem:[%s7617_s4] sm:$0xff] }
  0xf5   : > { %5030 = vmatmul.msk.f32.gmra.mxu1 %vm677_vm1, %v669_v50 }
  0xfd   : > { %5031 = vmatmul.msk.f32.gmra.mxu1 %vm677_vm1, %v670_v53 }
 0x105   : > { %5032 = vmatmul.msk.f32.gmra.mxu1 %vm677_vm1, %v671_v63  ;;  %v793_v63 = vld [vmem:[%s7617_s4 + $0x10] sm:$0xff] }
 0x10d   : > { %5033 = vmatmul.msk.f32.gmra.mxu1 %vm677_vm1, %v672_v13 }
 0x115   : > { %5034 = vmatmul.msk.f32.gmra.mxu1 %vm677_vm1, %v673_v28 }
 0x11d   : > { %5035 = vmatmul.msk.f32.gmra.mxu1 %vm677_vm1, %v674_v39  ;;  %v5791_v39 = vpop.permute.xlu2 %1285 }
 0x11e   : > { %7780 = vst [vmem:[#allocation23_spill] sm:$0xff] %v5791_v39 }
 0x125   : > { %5036 = vmatmul.msk.f32.gmra.mxu1 %vm677_vm1, %v675_v44 }
 0x12d   : > { %5037 = vmatmul.msk.f32.gmra.mxu1 %vm677_vm1, %v676_v46 }
 0x132   : > { %v743_v49 = vpop.f32.mrf.mxu1 }
 0x133   : > { %v807_v50 = vmul.f32 %v791_v48, %v743_v49  ;;  %v797_v48 = vld [vmem:[%s7617_s4 + $0x30] sm:$0xff]  ;;  %v5814_v49 = vpop.permute.xlu0 %924 }
 0x134   : > { %7781 = vst [vmem:[#allocation24_spill] sm:$0xff] %v5814_v49 }
 0x135   : > { %823 = vst.msk [vmem:[#allocation2 + $0x11] sm:$0xff] %vm597_vm2, %v807_v50 }
 0x13a   : > { %v746_v53 = vpop.f32.mrf.mxu1 }
 0x13b   : > { %v808_v54 = vmul.f32 %v792_v51, %v746_v53  ;;  %v5816_v51 = vpop.permute.xlu1 %1290 }
 0x13c   : > { %v5704_v56 = vld [vmem:[#allocation2 + $0x11] sm:$0xff]  ;;  %7782 = vst [vmem:[#allocation25_spill] sm:$0xff] %v5816_v51 }
 0x13d   : > { %v873_v57 = vld [vmem:[#allocation2 + $0x10] sm:$0xff]  ;;  %824 = vst.msk [vmem:[#allocation2 + $0x19] sm:$0xff] %vm597_vm2, %v808_v54  ;;  %5040 = vmatmul.msk.f32.gmra.mxu2 %vm597_vm2, %v5704_v56 }
 0x13e   : > { %v1243_v58 = vld [vmem:[#allocation2 + $0xa] sm:$0xff]  ;;  %v969_v59 = vmul.f32 %v5700_v52, %v873_v57  ;;  %v1508_v61 = vmul.f32 %v5647_v9, %v873_v57 }
 0x13f   : > { %v1339_v60 = vmul.f32 %v5702_v55, %v1243_v58 }
 0x140   : > { %5056 = vmatmul.msk.f32.gmra.mxu3 %vm597_vm2, %v969_v59  ;;  %5086 = vmatmul.msk.f32.vlgmr.msrb.gmra.mxu1 %vm597_vm2, %v1508_v61 }
 0x141   : > { %5071 = vmatmul.msk.f32.gmra.mxu0 %vm597_vm2, %v1339_v60 }
 0x142   : > { %v749_v1 = vpop.f32.mrf.mxu1 }
 0x143   : > { %v809_v3 = vmul.f32 %v793_v63, %v749_v1  ;;  %v5839_v63 = vpop.permute.xlu2 %929 }
 0x144   : > { %v5722_v4 = vld [vmem:[#allocation2 + $0x19] sm:$0xff]  ;;  %7783 = vst [vmem:[#allocation26_spill] sm:$0xff] %v5839_v63 }
 0x145   : > { %v874_v5 = vld [vmem:[#allocation2 + $0x18] sm:$0xff]  ;;  %825 = vst.msk [vmem:[#allocation2 + $0x21] sm:$0xff] %vm597_vm2, %v809_v3  ;;  %5041 = vmatmul.msk.f32.gmra.mxu2 %vm597_vm2, %v5722_v4 }
 0x146   : > { %v5724_v6 = vld [vmem:[#allocation2 + $0x12] sm:$0xff]  ;;  %v970_v7 = vmul.f32 %v5718_v0, %v874_v5  ;;  %v1509_v10 = vmul.f32 %v5664_v25, %v874_v5  ;;  %v5841_v5 = vpop.permute.xlu0 %1295 }
 0x147   : > { %v1340_v8 = vmul.f32 %v5720_v2, %v5724_v6 }
 0x148   : > { %5057 = vmatmul.msk.f32.gmra.mxu3 %vm597_vm2, %v970_v7  ;;  %5087 = vmatmul.msk.f32.gmra.mxu1 %vm597_vm2, %v1509_v10 }
 0x149   : > { %5072 = vmatmul.msk.f32.gmra.mxu0 %vm597_vm2, %v1340_v8 }
 0x14a   : > { %v752_v13 = vpop.f32.mrf.mxu1 }
 0x14b   : > { %v810_v15 = vmul.f32 %v794_v11, %v752_v13 }
 0x14c   : > { %v5743_v16 = vld [vmem:[#allocation2 + $0x21] sm:$0xff] }
 0x14d   : > { %v5745_v17 = vld [vmem:[#allocation2 + $0x20] sm:$0xff]  ;;  %826 = vst.msk [vmem:[#allocation2 + $0x29] sm:$0xff] %vm597_vm2, %v810_v15  ;;  %5042 = vmatmul.msk.f32.gmra.mxu2 %vm597_vm2, %v5743_v16 }
 0x14e   : > { %v5747_v18 = vld [vmem:[#allocation2 + $0x1a] sm:$0xff]  ;;  %v971_v19 = vmul.f32 %v5739_v12, %v5745_v17  ;;  %v1510_v21 = vmul.f32 %v5700_v52, %v5745_v17 }
 0x14f   : > { %v1341_v20 = vmul.f32 %v5741_v14, %v5747_v18 }
 0x150   : > { %5058 = vmatmul.msk.f32.gmra.mxu3 %vm597_vm2, %v971_v19  ;;  %5088 = vmatmul.msk.f32.gmra.mxu1 %vm597_vm2, %v1510_v21  ;;  %v1680_v19 = vld [vmem:[#allocation4 + $0x108] sm:$0xff]  ;;  %v5864_v21 = vpop.permute.xlu1 %934 }
 0x151   : > { %5073 = vmatmul.msk.f32.gmra.mxu0 %vm597_vm2, %v1341_v20  ;;  %1749 = vmatpush.msrb.mxu2 %v1680_v19  ;;  %v799_v20 = vld [vmem:[%s7617_s4 + $0x40] sm:$0xff]  ;;  %7784 = vst [vmem:[#allocation27_spill] sm:$0xff] %v5864_v21 }
 0x152   : > { %v755_v27 = vpop.f32.mrf.mxu1 }
 0x153   : > { %v811_v28 = vmul.f32 %v795_v23, %v755_v27  ;;  %v5866_v23 = vpop.permute.xlu2 %1300 }
 0x154   : > { %v5768_v30 = vld [vmem:[#allocation2 + $0x29] sm:$0xff]  ;;  %7785 = vst [vmem:[#allocation28_spill] sm:$0xff] %v5866_v23 }
 0x155   : > { %v5770_v31 = vld [vmem:[#allocation2 + $0x28] sm:$0xff]  ;;  %827 = vst.msk [vmem:[#allocation2 + $0x31] sm:$0xff] %vm597_vm2, %v811_v28  ;;  %5043 = vmatmul.msk.f32.gmra.mxu2 %vm597_vm2, %v5768_v30 }
 0x156   : > { %v5772_v32 = vld [vmem:[#allocation2 + $0x22] sm:$0xff]  ;;  %v972_v33 = vmul.f32 %v5764_v26, %v5770_v31  ;;  %v1511_v35 = vmul.f32 %v5718_v0, %v5770_v31 }
 0x157   : > { %v1342_v34 = vmul.f32 %v5766_v29, %v5772_v32 }
 0x158   : > { %5059 = vmatmul.msk.f32.gmra.mxu3 %vm597_vm2, %v972_v33  ;;  %5089 = vmatmul.msk.f32.gmra.mxu1 %vm597_vm2, %v1511_v35 }
 0x159   : > { %5074 = vmatmul.msk.f32.gmra.mxu0 %vm597_vm2, %v1342_v34 }
 0x15a   : > { %v758_v38 = vpop.f32.mrf.mxu1 }
 0x15b   : > { %v812_v40 = vmul.f32 %v796_v36, %v758_v38 }
 0x15c   : > { %v5793_v41 = vld [vmem:[#allocation2 + $0x31] sm:$0xff] }
 0x15d   : > { %v5795_v42 = vld [vmem:[#allocation2 + $0x30] sm:$0xff]  ;;  %828 = vst.msk [vmem:[#allocation2 + $0x39] sm:$0xff] %vm597_vm2, %v812_v40  ;;  %5044 = vmatmul.msk.f32.gmra.mxu2 %vm597_vm2, %v5793_v41  ;;  %v800_v40 = vld [vmem:[%s7617_s4 + $0x48] sm:$0xff] }
 0x15e   : > { %v5797_v43 = vld [vmem:[#allocation2 + $0x2a] sm:$0xff]  ;;  %v973_v44 = vmul.f32 %v5789_v37, %v5795_v42  ;;  %v1512_v46 = vmul.f32 %v5739_v12, %v5795_v42 }
 0x15f   : > { %v1343_v45 = vmul.f32 %v5791_v39, %v5797_v43 }
 0x160   : > { %5060 = vmatmul.msk.f32.gmra.mxu3 %vm597_vm2, %v973_v44  ;;  %5090 = vmatmul.msk.f32.gmra.mxu1 %vm597_vm2, %v1512_v46  ;;  %v5889_v44 = vpop.permute.xlu0 %939  ;;  %v5891_v46 = vpop.permute.xlu1 %1305 }
 0x161   : > { %5075 = vmatmul.msk.f32.gmra.mxu0 %vm597_vm2, %v1343_v45  ;;  %7786 = vst [vmem:[#allocation29_spill] sm:$0xff] %v5889_v44 }
 0x162   : > { %v761_v50 = vpop.f32.mrf.mxu1  ;;  %7787 = vst [vmem:[#allocation30_spill] sm:$0xff] %v5891_v46 }
 0x163   : > { %v813_v53 = vmul.f32 %v797_v48, %v761_v50 }
 0x164   : > { %v5818_v54 = vld [vmem:[#allocation2 + $0x39] sm:$0xff] }
 0x165   : > { %v5820_v57 = vld [vmem:[#allocation2 + $0x38] sm:$0xff]  ;;  %829 = vst.msk [vmem:[#allocation2 + $0x41] sm:$0xff] %vm597_vm2, %v813_v53  ;;  %5045 = vmatmul.msk.f32.gmra.mxu2 %vm597_vm2, %v5818_v54 }
 0x166   : > { %v5822_v58 = vld [vmem:[#allocation2 + $0x32] sm:$0xff]  ;;  %v974_v59 = vmul.f32 %v5814_v49, %v5820_v57  ;;  %v1513_v61 = vmul.f32 %v5764_v26, %v5820_v57 }
 0x167   : > { %v1344_v60 = vmul.f32 %v5816_v51, %v5822_v58 }
 0x168   : > { %5061 = vmatmul.msk.f32.gmra.mxu3 %vm597_vm2, %v974_v59  ;;  %5091 = vmatmul.msk.f32.gmra.mxu1 %vm597_vm2, %v1513_v61 }
 0x169   : > { %5076 = vmatmul.msk.f32.gmra.mxu0 %vm597_vm2, %v1344_v60 }
 0x16a   : > { %v764_v1 = vpop.f32.mrf.mxu1 }
 0x16b   : > { %v814_v3 = vmul.f32 %v798_v62, %v764_v1  ;;  %v1679_v62 = vld [vmem:[#allocation4 + $0x100] sm:$0xff] }
 0x16c   : > { %v5843_v7 = vld [vmem:[#allocation2 + $0x41] sm:$0xff]  ;;  %1750 = vmatpush.msrb.mxu2 %v1679_v62  ;;  %v801_v1 = vld [vmem:[%s7617_s4 + $0x50] sm:$0xff] }
 0x16d   : > { %v5845_v8 = vld [vmem:[#allocation2 + $0x40] sm:$0xff]  ;;  %830 = vst.msk [vmem:[#allocation2 + $0x49] sm:$0xff] %vm597_vm2, %v814_v3  ;;  %5046 = vmatmul.msk.f32.gmra.mxu2 %vm597_vm2, %v5843_v7  ;;  %v5914_v3 = vpop.permute.xlu2 %944  ;;  %v2026_v62 = vld [vmem:[#allocation4 + $0x1b8] sm:$0xff] }
 0x16e   : > { %v5847_v10 = vld [vmem:[#allocation2 + $0x3a] sm:$0xff]  ;;  %v975_v11 = vmul.f32 %v5839_v63, %v5845_v8  ;;  %v1514_v15 = vmul.f32 %v5789_v37, %v5845_v8  ;;  %7788 = vst [vmem:[#allocation31_spill] sm:$0xff] %v5914_v3  ;;  %2083 = vmatpush.msra.mxu0 %v2026_v62 }
 0x16f   : > { %v1345_v13 = vmul.f32 %v5841_v5, %v5847_v10  ;;  %v2024_v62 = vld [vmem:[#allocation4 + $0x1a8] sm:$0xff] }
 0x170   : > { %5062 = vmatmul.msk.f32.gmra.mxu3 %vm597_vm2, %v975_v11  ;;  %5092 = vmatmul.msk.f32.gmra.mxu1 %vm597_vm2, %v1514_v15  ;;  %v1856_v11 = vld [vmem:[#allocation4 + $0x178] sm:$0xff]  ;;  %v1855_v15 = vld [vmem:[#allocation4 + $0x170] sm:$0xff] }
 0x171   : > { %5077 = vmatmul.msk.f32.gmra.mxu0 %vm597_vm2, %v1345_v13  ;;  %1913 = vmatpush.msrb.mxu3 %v1856_v11 }
 0x172   : > { %v767_v22 = vpop.f32.mrf.mxu1 }
 0x173   : > { %v815_v27 = vmul.f32 %v799_v20, %v767_v22  ;;  %1914 = vmatpush.msrb.mxu3 %v1855_v15  ;;  %v5916_v20 = vpop.permute.xlu0 %1310  ;;  %v2025_v15 = vld [vmem:[#allocation4 + $0x1b0] sm:$0xff] }
 0x174   : > { %v5868_v28 = vld [vmem:[#allocation2 + $0x49] sm:$0xff]  ;;  %7789 = vst [vmem:[#allocation32_spill] sm:$0xff] %v5916_v20  ;;  %2084 = vmatpush.msra.mxu0 %v2025_v15 }
 0x175   : > { %v5870_v33 = vld [vmem:[#allocation2 + $0x48] sm:$0xff]  ;;  %831 = vst.msk [vmem:[#allocation2 + $0x51] sm:$0xff] %vm597_vm2, %v815_v27  ;;  %5047 = vmatmul.msk.f32.gmra.mxu2 %vm597_vm2, %v5868_v28  ;;  %v5941_v11 = vpop.permute.xlu2 %1315  ;;  %v2023_v15 = vld [vmem:[#allocation4 + $0x1a0] sm:$0xff] }
 0x176   : > { %v5872_v34 = vld [vmem:[#allocation2 + $0x42] sm:$0xff]  ;;  %v976_v35 = vmul.f32 %v5864_v21, %v5870_v33  ;;  %v1515_v38 = vmul.f32 %v5814_v49, %v5870_v33  ;;  %7791 = vst [vmem:[#allocation34_spill] sm:$0xff] %v5941_v11  ;;  %2085 = vmatpush.msra.mxu0 %v2024_v62 }
 0x177   : > { %v1346_v36 = vmul.f32 %v5866_v23, %v5872_v34 }
 0x178   : > { %5063 = vmatmul.msk.f32.gmra.mxu3 %vm597_vm2, %v976_v35  ;;  %5093 = vmatmul.msk.f32.gmra.mxu1 %vm597_vm2, %v1515_v38 }
 0x179   : > { %5078 = vmatmul.msk.f32.gmra.mxu0 %vm597_vm2, %v1346_v36 }
 0x17a   : > { %v770_v45 = vpop.f32.mrf.mxu1  ;;  %2086 = vmatpush.msra.mxu0 %v2023_v15  ;;  %v2020_v15 = vld [vmem:[#allocation4 + $0x188] sm:$0xff] }
 0x17b   : > { %v816_v47 = vmul.f32 %v800_v40, %v770_v45  ;;  %v1854_v45 = vld [vmem:[#allocation4 + $0x168] sm:$0xff] }
 0x17c   : > { %v5893_v48 = vld [vmem:[#allocation2 + $0x51] sm:$0xff]  ;;  %1915 = vmatpush.msrb.mxu3 %v1854_v45 }
 0x17d   : > { %v5895_v50 = vld [vmem:[#allocation2 + $0x50] sm:$0xff]  ;;  %832 = vst.msk [vmem:[#allocation2 + $0x59] sm:$0xff] %vm597_vm2, %v816_v47  ;;  %5048 = vmatmul.msk.f32.gmra.mxu2 %vm597_vm2, %v5893_v48 }
 0x17e   : > { %v5897_v53 = vld [vmem:[#allocation2 + $0x4a] sm:$0xff]  ;;  %v977_v59 = vmul.f32 %v5889_v44, %v5895_v50  ;;  %v1516_v61 = vmul.f32 %v5839_v63, %v5895_v50 }
 0x17f   : > { %v1347_v60 = vmul.f32 %v5891_v46, %v5897_v53  ;;  %v1853_v47 = vld [vmem:[#allocation4 + $0x160] sm:$0xff] }
 0x180   : > { %5064 = vmatmul.msk.f32.gmra.mxu3 %vm597_vm2, %v977_v59  ;;  %5094 = vmatmul.msk.f32.gmra.mxu1 %vm597_vm2, %v1516_v61  ;;  %v802_v59 = vld [vmem:[%s7617_s4 + $0x58] sm:$0xff]  ;;  %v1852_v61 = vld [vmem:[#allocation4 + $0x158] sm:$0xff] }
 0x181   : > { %5079 = vmatmul.msk.f32.gmra.mxu0 %vm597_vm2, %v1347_v60  ;;  %v5939_v60 = vpop.permute.xlu1 %949  ;;  %1916 = vmatpush.msrb.mxu3 %v1853_v47 }
 0x182   : > { %v773_v13 = vpop.f32.mrf.mxu1  ;;  %7790 = vst [vmem:[#allocation33_spill] sm:$0xff] %v5939_v60 }
 0x183   : > { %v817_v19 = vmul.f32 %v801_v1, %v773_v13  ;;  %1917 = vmatpush.msrb.mxu3 %v1852_v61  ;;  %v1851_v13 = vld [vmem:[#allocation4 + $0x150] sm:$0xff]  ;;  %v1850_v61 = vld [vmem:[#allocation4 + $0x148] sm:$0xff] }
 0x184   : > { %v5918_v22 = vld [vmem:[#allocation2 + $0x59] sm:$0xff] }
 0x185   : > { %v5920_v27 = vld [vmem:[#allocation2 + $0x58] sm:$0xff]  ;;  %833 = vst.msk [vmem:[#allocation2 + $0x61] sm:$0xff] %vm597_vm2, %v817_v19  ;;  %5049 = vmatmul.msk.f32.gmra.mxu2 %vm597_vm2, %v5918_v22  ;;  %1918 = vmatpush.msrb.mxu3 %v1851_v13  ;;  %v1849_v13 = vld [vmem:[#allocation4 + $0x140] sm:$0xff] }
 0x186   : > { %v5922_v35 = vld [vmem:[#allocation2 + $0x52] sm:$0xff]  ;;  %v978_v36 = vmul.f32 %v5914_v3, %v5920_v27  ;;  %v1517_v40 = vmul.f32 %v5864_v21, %v5920_v27  ;;  %v5964_v21 = vpop.permute.xlu0 %954 }
 0x187   : > { %v1348_v38 = vmul.f32 %v5916_v20, %v5922_v35  ;;  %1919 = vmatpush.msrb.mxu3 %v1850_v61  ;;  %7793 = vst [vmem:[#allocation36_spill] sm:$0xff] %v5964_v21  ;;  %v2179_v61 = vld [vmem:[#allocation4 + $0x1f0] sm:$0xff] }
 0x188   : > { %5065 = vmatmul.msk.f32.gmra.mxu3 %vm597_vm2, %v978_v36  ;;  %5095 = vmatmul.msk.f32.gmra.mxu1 %vm597_vm2, %v1517_v40 }
 0x189   : > { %5080 = vmatmul.msk.f32.gmra.mxu0 %vm597_vm2, %v1348_v38  ;;  %1920 = vmatpush.msrb.mxu3 %v1849_v13  ;;  %v5966_v20 = vpop.permute.xlu1 %1320 }
 0x18a   : > { %v776_v1 = vpop.f32.mrf.mxu1  ;;  %7794 = vst [vmem:[#allocation37_spill] sm:$0xff] %v5966_v20 }
 0x18b   : > { %v818_v19 = vmul.f32 %v802_v59, %v776_v1  ;;  %v2350_v1 = vld [vmem:[#allocation4 + $0x238] sm:$0xff] }
 0x18c   : > { %v5943_v36 = vld [vmem:[#allocation2 + $0x61] sm:$0xff]  ;;  %2407 = vmatpush.msra.mxu2 %v2350_v1 }
 0x18d   : > { %7792 = vst [vmem:[#allocation35_spill] sm:$0xff] %v5943_v36  ;;  %v5945_v38 = vld [vmem:[#allocation2 + $0x60] sm:$0xff]  ;;  %5050 = vmatmul.msk.f32.gmra.mxu2 %vm597_vm2, %v5943_v36 }
 0x18e   : > { %v5947_v40 = vld [vmem:[#allocation2 + $0x5a] sm:$0xff]  ;;  %834 = vst.msk [vmem:[#allocation2 + $0x69] sm:$0xff] %vm597_vm2, %v818_v19  ;;  %v979_v45 = vmul.f32 %v5939_v60, %v5945_v38  ;;  %v1518_v59 = vmul.f32 %v5889_v44, %v5945_v38  ;;  %v2180_v44 = vld [vmem:[#allocation4 + $0x1f8] sm:$0xff] }
 0x18f   : > { %v1349_v47 = vmul.f32 %v5941_v11, %v5947_v40  ;;  %v803_v19 = vld [vmem:[%s7617_s4 + $0x60] sm:$0xff]  ;;  %v2022_v11 = vld [vmem:[#allocation4 + $0x198] sm:$0xff]  ;;  %2237 = vmatpush.msra.mxu1 %v2180_v44 }
 0x190   : > { %5066 = vmatmul.msk.f32.gmra.mxu3 %vm597_vm2, %v979_v45  ;;  %5096 = vmatmul.msk.f32.gmra.mxu1 %vm597_vm2, %v1518_v59  ;;  %v2021_v45 = vld [vmem:[#allocation4 + $0x190] sm:$0xff]  ;;  %v2178_v59 = vld [vmem:[#allocation4 + $0x1e8] sm:$0xff] }
 0x191   : > { %5081 = vmatmul.msk.f32.gmra.mxu0 %vm597_vm2, %v1349_v47  ;;  %2238 = vmatpush.msra.mxu1 %v2179_v61  ;;  %v5985_v61 = vpop.permute.xlu2 %959 }
 0x192   : > { %v779_v62 = vpop.f32.mrf.mxu1  ;;  %2087 = vmatpush.msra.mxu0 %v2022_v11  ;;  %7797 = vst [vmem:[#allocation40_spill] sm:$0xff] %v5985_v61 }
 0x193   : > { %v819_v47 = vmul.f32 %v803_v19, %v779_v62  ;;  %2239 = vmatpush.msra.mxu1 %v2178_v59  ;;  %v2177_v19 = vld [vmem:[#allocation4 + $0x1e0] sm:$0xff]  ;;  %v2175_v59 = vld [vmem:[#allocation4 + $0x1d0] sm:$0xff] }
 0x194   : > { %2088 = vmatpush.msra.mxu0 %v2021_v45  ;;  %v2019_v62 = vld [vmem:[#allocation4 + $0x180] sm:$0xff] }
 0x195   : > { %v5968_v36 = vld [vmem:[#allocation2 + $0x69] sm:$0xff]  ;;  %835 = vst.msk [vmem:[#allocation2 + $0x71] sm:$0xff] %vm597_vm2, %v819_v47  ;;  %2240 = vmatpush.msra.mxu1 %v2177_v19  ;;  %v2174_v19 = vld [vmem:[#allocation4 + $0x1c8] sm:$0xff] }
 0x196   : > { %7795 = vst [vmem:[#allocation38_spill] sm:$0xff] %v5968_v36  ;;  %v5970_v63 = vld [vmem:[#allocation2 + $0x68] sm:$0xff]  ;;  %5051 = vmatmul.msk.f32.gmra.mxu2 %vm597_vm2, %v5968_v36  ;;  %2089 = vmatpush.msra.mxu0 %v2020_v15 }
 0x197   : > { %7796 = vst [vmem:[#allocation39_spill] sm:$0xff] %v5970_v63  ;;  %v5972_v1 = vld [vmem:[#allocation2 + $0x62] sm:$0xff]  ;;  %v980_v13 = vmul.f32 %v5964_v21, %v5970_v63  ;;  %v1519_v11 = vmul.f32 %v5914_v3, %v5970_v63 }
 0x198   : > { %v1350_v44 = vmul.f32 %v5966_v20, %v5972_v1  ;;  %v804_v47 = vld [vmem:[%s7617_s4 + $0x68] sm:$0xff]  ;;  %2090 = vmatpush.msra.mxu0 %v2019_v62  ;;  %v2349_v62 = vld [vmem:[#allocation4 + $0x230] sm:$0xff] }
 0x199   : > { %5067 = vmatmul.msk.f32.gmra.mxu3 %vm597_vm2, %v980_v13  ;;  %5097 = vmatmul.msk.f32.gmra.mxu1 %vm597_vm2, %v1519_v11  ;;  %v2176_v20 = vld [vmem:[#allocation4 + $0x1d8] sm:$0xff]  ;;  %v5991_v13 = vpop.permute.xlu0 %1325 }
 0x19a   : > { %5082 = vmatmul.msk.f32.gmra.mxu0 %vm597_vm2, %v1350_v44  ;;  %v782_v45 = vpop.f32.mrf.mxu1  ;;  %2241 = vmatpush.msra.mxu1 %v2176_v20  ;;  %7798 = vst [vmem:[#allocation41_spill] sm:$0xff] %v5991_v13 }
 0x19b   : > { %v820_v3 = vmul.f32 %v804_v47, %v782_v45  ;;  %2408 = vmatpush.msra.mxu2 %v2349_v62  ;;  %v2173_v47 = vld [vmem:[#allocation4 + $0x1c0] sm:$0xff]  ;;  %v6014_v45 = vpop.permute.xlu2 %1330  ;;  %v806_v62 = vld [vmem:[%s7617_s4 + $0x78] sm:$0xff] }
 0x19c   : > { %v5993_v44 = vld [vmem:[#allocation2 + $0x71] sm:$0xff]  ;;  %2242 = vmatpush.msra.mxu1 %v2175_v59  ;;  %7800 = vst [vmem:[#allocation43_spill] sm:$0xff] %v6014_v45 }
 0x19d   : > { %7799 = vst [vmem:[#allocation42_spill] sm:$0xff] %v5993_v44  ;;  %v5995_v36 = vld [vmem:[#allocation2 + $0x70] sm:$0xff] }
 0x19e   : > { %v5997_v63 = vld [vmem:[#allocation2 + $0x6a] sm:$0xff]  ;;  %836 = vst.msk [vmem:[#allocation2 + $0x79] sm:$0xff] %vm597_vm2, %v820_v3  ;;  %5052 = vmatmul.msk.f32.gmra.mxu2 %vm597_vm2, %v5993_v44  ;;  %v981_v11 = vmul.f32 %v5985_v61, %v5995_v36  ;;  %v1520_v20 = vmul.f32 %v5939_v60, %v5995_v36  ;;  %2243 = vmatpush.msra.mxu1 %v2174_v19  ;;  %v6016_v60 = vpop.permute.xlu1 %964 }
 0x19f   : > { %v1351_v15 = vmul.f32 %v5991_v13, %v5997_v63  ;;  %v805_v3 = vld [vmem:[%s7617_s4 + $0x70] sm:$0xff]  ;;  %7801 = vst [vmem:[#allocation44_spill] sm:$0xff] %v6016_v60 }
 0x1a0   : > { %2244 = vmatpush.msra.mxu1 %v2173_v47 }
 0x1a1   : > { %5068 = vmatmul.msk.f32.gmra.mxu3 %vm597_vm2, %v981_v11  ;;  %5098 = vmatmul.msk.f32.gmra.mxu1 %vm597_vm2, %v1520_v20 }
 0x1a2   : > { %5083 = vmatmul.msk.f32.gmra.mxu0 %vm597_vm2, %v1351_v15  ;;  %v785_v13 = vpop.f32.mrf.mxu1 }
 0x1a3   : > { %v821_v59 = vmul.f32 %v805_v3, %v785_v13 }
 0x1a5   : > { %v6018_v44 = vld [vmem:[#allocation2 + $0x79] sm:$0xff]  ;;  %837 = vst.msk [vmem:[#allocation2 + $0x81] sm:$0xff] %vm597_vm2, %v821_v59  ;;  %v6039_v59 = vpop.permute.xlu0 %1335 }
 0x1a6   : > { %7802 = vst [vmem:[#allocation45_spill] sm:$0xff] %v6018_v44  ;;  %v6020_v11 = vld [vmem:[#allocation2 + $0x78] sm:$0xff]  ;;  %5053 = vmatmul.msk.f32.gmra.mxu2 %vm597_vm2, %v6018_v44 }
 0x1a7   : > { %v6022_v15 = vld [vmem:[#allocation2 + $0x72] sm:$0xff]  ;;  %v982_v20 = vmul.f32 %v6016_v60, %v6020_v11  ;;  %v1521_v13 = vmul.f32 %v5964_v21, %v6020_v11  ;;  %7804 = vst [vmem:[#allocation47_spill] sm:$0xff] %v6039_v59 }
 0x1a8   : > { %7803 = vst [vmem:[#allocation46_spill] sm:$0xff] %v6022_v15  ;;  %v1352_v19 = vmul.f32 %v6014_v45, %v6022_v15  ;;  %v6045_v15 = vpop.f32.mrf.mxu2 }
 0x1a9   : > { %5069 = vmatmul.msk.f32.gmra.mxu3 %vm597_vm2, %v982_v20  ;;  %5099 = vmatmul.msk.f32.gmra.mxu1 %vm597_vm2, %v1521_v13  ;;  %v1832_v13 = vmul.f32 %v5662_v24, %v5724_v6  ;;  %v1833_v6 = vmul.f32 %v5702_v55, %v5747_v18  ;;  %v2003_v18 = vmul.f32 %v5664_v25, %v5770_v31 }
 0x1aa   : > { %5084 = vmatmul.msk.f32.gmra.mxu0 %vm597_vm2, %v1352_v19  ;;  %v788_v3 = vpop.f32.mrf.mxu1  ;;  %v2004_v31 = vmul.f32 %v5700_v52, %v5795_v42  ;;  %v2005_v42 = vmul.f32 %v5718_v0, %v5820_v57  ;;  %v2006_v57 = vmul.f32 %v5739_v12, %v5845_v8  ;;  %v2007_v8 = vmul.f32 %v5764_v26, %v5870_v33 }
 0x1ab   : > { %v822_v47 = vmul.f32 %v806_v62, %v788_v3  ;;  %v2348_v62 = vld [vmem:[#allocation4 + $0x228] sm:$0xff]  ;;  %v6059_v3 = vpop.f32.mrf.mxu3  ;;  %v2008_v33 = vmul.f32 %v5789_v37, %v5895_v50  ;;  %v1840_v50 = vmul.f32 %v5866_v23, %v5922_v35  ;;  %v2611_v35 = vld [vmem:[#allocation6 + $0xf0] sm:$0xff] }
 0x1ac   : > { %v6041_v44 = vld [vmem:[#allocation2 + $0x7a] sm:$0xff]  ;;  %2409 = vmatpush.msra.mxu2 %v2348_v62 }
 0x1ad   : > { %v6043_v45 = vld [vmem:[#allocation2 + $0x80] sm:$0xff]  ;;  %838 = vst.msk [vmem:[#allocation2 + $0x89] sm:$0xff] %vm597_vm2, %v822_v47  ;;  %v1353_v20 = vmul.f32 %v6039_v59, %v6041_v44 }
 0x1ae   : > { %5102 = vmatmul.msk.f32.vlgmr.msrb.gmra.mxu2 %vm597_vm2, %v5704_v56  ;;  %v1522_v19 = vmul.f32 %v6043_v45, %v5985_v61 }
 0x1b1   : > { %5118 = vmatmul.msk.f32.vlgmr.msrb.gmra.mxu3 %vm597_vm2, %v1832_v13  ;;  %5100 = vmatmul.msk.f32.gmra.mxu1 %vm597_vm2, %v1522_v19  ;;  %v6071_v13 = vpop.f32.mrf.mxu2 }
 0x1b2   : > { %5085 = vmatmul.msk.f32.gmra.mxu0 %vm597_vm2, %v1353_v20  ;;  %v2002_v20 = vmul.f32 %v5647_v9, %v5745_v17  ;;  %v2347_v17 = vld [vmem:[#allocation4 + $0x220] sm:$0xff] }
 0x1b3   : > { %v6076_v19 = vpop.f32.mrf.mxu3  ;;  %2410 = vmatpush.msra.mxu2 %v2347_v17 }
 0x1b4   : > { %v6061_v56 = vld [vmem:[#allocation2 + $0x88] sm:$0xff] }
 0x1b5   : > { %v1523_v47 = vmul.f32 %v6061_v56, %v6016_v60 }
 0x1b6   : > { %5103 = vmatmul.msk.f32.gmra.mxu2 %vm597_vm2, %v5722_v4  ;;  %v1834_v4 = vmul.f32 %v5720_v2, %v5772_v32  ;;  %v1835_v32 = vmul.f32 %v5741_v14, %v5797_v43  ;;  %v1836_v43 = vmul.f32 %v5766_v29, %v5822_v58  ;;  %v1837_v58 = vmul.f32 %v5791_v39, %v5847_v10 }
 0x1b7   : > { %v1838_v10 = vmul.f32 %v5816_v51, %v5872_v34  ;;  %v1839_v34 = vmul.f32 %v5841_v5, %v5897_v53  ;;  %v2009_v53 = vmul.f32 %v5814_v49, %v5920_v27  ;;  %v1841_v27 = vmul.f32 %v5891_v46, %v5947_v40  ;;  %v2743_v49 = vld [vmem:[#allocation3 + $0x2] sm:$0xff] }
 0x1b9   : > { %5119 = vmatmul.msk.f32.gmra.mxu3 %vm597_vm2, %v1833_v6  ;;  %5101 = vmatmul.msk.f32.gmra.mxu1 %vm597_vm2, %v1523_v47 }
 0x1ba   : > { %5134 = vmatmul.msk.f32.vlgmr.msra.gmra.mxu0 %vm597_vm2, %v2002_v20 }
 0x1be   : > { %5104 = vmatmul.msk.f32.gmra.mxu2 %vm597_vm2, %v5743_v16 }
 0x1c0   : > { %v1087_v62 = vpop.f32.mrf.mxu2 }
 0x1c1   : > { %5120 = vmatmul.msk.f32.gmra.mxu3 %vm597_vm2, %v1834_v4  ;;  %5150 = vmatmul.msk.f32.vlgmr.msra.gmra.mxu1 %vm597_vm2, %v5743_v16 }
 0x1c2   : > { %5135 = vmatmul.msk.f32.gmra.mxu0 %vm597_vm2, %v2003_v18  ;;  %v2346_v18 = vld [vmem:[#allocation4 + $0x218] sm:$0xff] }
 0x1c3   : > { %v1200_v47 = vpop.f32.mrf.mxu3  ;;  %2411 = vmatpush.msra.mxu2 %v2346_v18 }
 0x1c4   : > { %v6088_v6 = vadd.f32 %v1200_v47, %v1087_v62 }
 0x1c6   : > { %5105 = vmatmul.msk.f32.gmra.mxu2 %vm597_vm2, %v5768_v30 }
 0x1c8   : > { %v1090_v16 = vpop.f32.mrf.mxu2 }
 0x1c9   : > { %5121 = vmatmul.msk.f32.gmra.mxu3 %vm597_vm2, %v1835_v32  ;;  %5151 = vmatmul.msk.f32.gmra.mxu1 %vm597_vm2, %v5768_v30 }
 0x1ca   : > { %5136 = vmatmul.msk.f32.gmra.mxu0 %vm597_vm2, %v2004_v31  ;;  %v2345_v31 = vld [vmem:[#allocation4 + $0x210] sm:$0xff] }
 0x1cb   : > { %v1203_v20 = vpop.f32.mrf.mxu3  ;;  %2412 = vmatpush.msra.mxu2 %v2345_v31  ;;  %v2610_v31 = vld [vmem:[#allocation6 + $0xe8] sm:$0xff] }
 0x1cc   : > { %v6100_v4 = vadd.f32 %v1203_v20, %v1090_v16 }
 0x1ce   : > { %5106 = vmatmul.msk.f32.gmra.mxu2 %vm597_vm2, %v5793_v41 }
 0x1d0   : > { %v1093_v30 = vpop.f32.mrf.mxu2 }
 0x1d1   : > { %5122 = vmatmul.msk.f32.gmra.mxu3 %vm597_vm2, %v1836_v43  ;;  %5152 = vmatmul.msk.f32.gmra.mxu1 %vm597_vm2, %v5793_v41  ;;  %v6144_v43 = vpop.f32.mrf.mxu0 }
 0x1d2   : > { %5137 = vmatmul.msk.f32.gmra.mxu0 %vm597_vm2, %v2005_v42 }
 0x1d3   : > { %v1206_v17 = vpop.f32.mrf.mxu3 }
 0x1d4   : > { %v6112_v62 = vadd.f32 %v1206_v17, %v1093_v30  ;;  %v6152_v30 = vpop.f32.mrf.mxu1  ;;  %v2344_v17 = vld [vmem:[#allocation4 + $0x208] sm:$0xff] }
 0x1d5   : > { %2413 = vmatpush.msra.mxu2 %v2344_v17  ;;  %v7808_v17 = vld [vmem:[#allocation35_spill] sm:$0xff] }
 0x1d6   : > { %5107 = vmatmul.msk.f32.gmra.mxu2 %vm597_vm2, %v5818_v54 }
 0x1d8   : > { %v1096_v41 = vpop.f32.mrf.mxu2 }
 0x1d9   : > { %5123 = vmatmul.msk.f32.gmra.mxu3 %vm597_vm2, %v1837_v58  ;;  %5153 = vmatmul.msk.f32.gmra.mxu1 %vm597_vm2, %v5818_v54  ;;  %v6160_v58 = vpop.f32.mrf.mxu0 }
 0x1da   : > { %5138 = vmatmul.msk.f32.gmra.mxu0 %vm597_vm2, %v2006_v57 }
 0x1db   : > { %v1209_v47 = vpop.f32.mrf.mxu3 }
 0x1dc   : > { %v6124_v32 = vadd.f32 %v1209_v47, %v1096_v41  ;;  %v2612_v41 = vld [vmem:[#allocation6 + $0xf8] sm:$0xff] }
 0x1dd   : > { %2613 = vmatpush.msra.mxu3 %v2612_v41  ;;  %v7811_v41 = vld [vmem:[#allocation27_spill] sm:$0xff] }
 0x1de   : > { %5108 = vmatmul.msk.f32.gmra.mxu2 %vm597_vm2, %v5843_v7 }
 0x1df   : > { %2614 = vmatpush.msra.mxu3 %v2611_v35 }
 0x1e0   : > { %v1099_v54 = vpop.f32.mrf.mxu2 }
 0x1e1   : > { %5124 = vmatmul.msk.f32.gmra.mxu3 %vm597_vm2, %v1838_v10  ;;  %5154 = vmatmul.msk.f32.gmra.mxu1 %vm597_vm2, %v5843_v7  ;;  %v7806_v10 = vld [vmem:[#allocation26_spill] sm:$0xff] }
 0x1e2   : > { %5139 = vmatmul.msk.f32.gmra.mxu0 %vm597_vm2, %v2007_v8  ;;  %v2010_v8 = vmul.f32 %v7806_v10, %v5945_v38  ;;  %2615 = vmatpush.msra.mxu3 %v2610_v31  ;;  %v2608_v38 = vld [vmem:[#allocation6 + $0xd8] sm:$0xff]  ;;  %v2576_v31 = vld [vmem:[#allocation6 + $0x60] sm:$0xff] }
 0x1e3   : > { %v1212_v16 = vpop.f32.mrf.mxu3 }
 0x1e4   : > { %v6136_v20 = vadd.f32 %v1212_v16, %v1099_v54  ;;  %v2609_v16 = vld [vmem:[#allocation6 + $0xe0] sm:$0xff] }
 0x1e5   : > { %2616 = vmatpush.msra.mxu3 %v2609_v16  ;;  %v2605_v16 = vld [vmem:[#allocation6 + $0xc0] sm:$0xff] }
 0x1e6   : > { %5109 = vmatmul.msk.f32.gmra.mxu2 %vm597_vm2, %v5868_v28 }
 0x1e7   : > { %2617 = vmatpush.msra.mxu3 %v2608_v38  ;;  %v2604_v38 = vld [vmem:[#allocation6 + $0xb8] sm:$0xff] }
 0x1e8   : > { %v1102_v7 = vpop.f32.mrf.mxu2 }
 0x1e9   : > { %5125 = vmatmul.msk.f32.gmra.mxu3 %vm597_vm2, %v1839_v34  ;;  %5155 = vmatmul.msk.f32.gmra.mxu1 %vm597_vm2, %v5868_v28  ;;  %v2579_v34 = vld [vmem:[#allocation6 + $0x78] sm:$0xff] }
 0x1ea   : > { %5140 = vmatmul.msk.f32.gmra.mxu0 %vm597_vm2, %v2008_v33  ;;  %v6180_v33 = vpop.f32.mrf.mxu0 }
 0x1eb   : > { %v1215_v42 = vpop.f32.mrf.mxu3  ;;  %2678 = vmatpush.msrb.mxu0 %v2579_v34  ;;  %v2791_v34 = vld [vmem:[#allocation6 + $0x178] sm:$0xff] }
 0x1ec   : > { %v6150_v18 = vadd.f32 %v1215_v42, %v1102_v7  ;;  %v2578_v7 = vld [vmem:[#allocation6 + $0x70] sm:$0xff]  ;;  %2792 = vmatpush.msrb.mxu1 %v2791_v34  ;;  %v2573_v34 = vld [vmem:[#allocation6 + $0x48] sm:$0xff] }
 0x1ed   : > { %2679 = vmatpush.msrb.mxu0 %v2578_v7  ;;  %v2790_v7 = vld [vmem:[#allocation6 + $0x170] sm:$0xff] }
 0x1ee   : > { %5110 = vmatmul.msk.f32.gmra.mxu2 %vm597_vm2, %v5893_v48  ;;  %2793 = vmatpush.msrb.mxu1 %v2790_v7  ;;  %v2787_v7 = vld [vmem:[#allocation6 + $0x158] sm:$0xff] }
 0x1f0   : > { %v1105_v28 = vpop.f32.mrf.mxu2 }
 0x1f1   : > { %5126 = vmatmul.msk.f32.gmra.mxu3 %vm597_vm2, %v1840_v50  ;;  %5156 = vmatmul.msk.f32.gmra.mxu1 %vm597_vm2, %v5893_v48  ;;  %v6174_v48 = vpop.f32.mrf.mxu1  ;;  %v2607_v50 = vld [vmem:[#allocation6 + $0xd0] sm:$0xff] }
 0x1f2   : > { %5141 = vmatmul.msk.f32.gmra.mxu0 %vm597_vm2, %v2009_v53  ;;  %v2577_v53 = vld [vmem:[#allocation6 + $0x68] sm:$0xff]  ;;  %2618 = vmatpush.msra.mxu3 %v2607_v50  ;;  %v6198_v50 = vpop.f32.mrf.mxu0 }
 0x1f3   : > { %v1218_v57 = vpop.f32.mrf.mxu3  ;;  %2680 = vmatpush.msrb.mxu0 %v2577_v53  ;;  %v2574_v53 = vld [vmem:[#allocation6 + $0x50] sm:$0xff] }
 0x1f4   : > { %v6166_v47 = vadd.f32 %v1218_v57, %v1105_v28  ;;  %v7810_v57 = vld [vmem:[#allocation39_spill] sm:$0xff] }
 0x1f5   : > { %v2011_v35 = vmul.f32 %v7811_v41, %v7810_v57  ;;  %2681 = vmatpush.msrb.mxu0 %v2576_v31  ;;  %v7814_v57 = vld [vmem:[#allocation34_spill] sm:$0xff]  ;;  %v2603_v31 = vld [vmem:[#allocation6 + $0xb0] sm:$0xff]  ;;  %v2788_v41 = vld [vmem:[#allocation6 + $0x160] sm:$0xff] }
 0x1f6   : > { %7805 = vst [vmem:[#allocation48_spill] sm:$0xff] %v6166_v47  ;;  %5111 = vmatmul.msk.f32.gmra.mxu2 %vm597_vm2, %v5918_v22 }
 0x1f8   : > { %v1108_v54 = vpop.f32.mrf.mxu2 }
 0x1f9   : > { %5127 = vmatmul.msk.f32.gmra.mxu3 %vm597_vm2, %v1841_v27  ;;  %5157 = vmatmul.msk.f32.gmra.mxu1 %vm597_vm2, %v5918_v22  ;;  %v7809_v22 = vld [vmem:[#allocation32_spill] sm:$0xff]  ;;  %v2343_v27 = vld [vmem:[#allocation4 + $0x200] sm:$0xff] }
 0x1fa   : > { %5142 = vmatmul.msk.f32.gmra.mxu0 %vm597_vm2, %v2010_v8  ;;  %v1842_v28 = vmul.f32 %v7809_v22, %v5972_v1  ;;  %v2606_v8 = vld [vmem:[#allocation6 + $0xc8] sm:$0xff]  ;;  %2414 = vmatpush.msra.mxu2 %v2343_v27  ;;  %v2575_v1 = vld [vmem:[#allocation6 + $0x58] sm:$0xff]  ;;  %v7815_v27 = vld [vmem:[#allocation29_spill] sm:$0xff] }
 0x1fb   : > { %v1221_v40 = vpop.f32.mrf.mxu3  ;;  %2619 = vmatpush.msra.mxu3 %v2606_v8  ;;  %2682 = vmatpush.msrb.mxu0 %v2575_v1  ;;  %v2012_v8 = vmul.f32 %v7815_v27, %v5995_v36  ;;  %v2601_v36 = vld [vmem:[#allocation6 + $0xa0] sm:$0xff]  ;;  %v7819_v27 = vld [vmem:[#allocation37_spill] sm:$0xff] }
 0x1fc   : > { %v6182_v42 = vadd.f32 %v1221_v40, %v1108_v54  ;;  %v6196_v40 = vpop.f32.mrf.mxu1 }
 0x1fd   : > { %2620 = vmatpush.msra.mxu3 %v2605_v16  ;;  %2683 = vmatpush.msrb.mxu0 %v2574_v53  ;;  %v2602_v16 = vld [vmem:[#allocation6 + $0xa8] sm:$0xff] }
 0x1fe   : > { %7807 = vst [vmem:[#allocation49_spill] sm:$0xff] %v6182_v42  ;;  %5112 = vmatmul.msk.f32.gmra.mxu2 %vm597_vm2, %v7808_v17 }
 0x1ff   : > { %2621 = vmatpush.msra.mxu3 %v2604_v38  ;;  %2684 = vmatpush.msrb.mxu0 %v2573_v34  ;;  %v2571_v38 = vld [vmem:[#allocation6 + $0x38] sm:$0xff] }
 0x200   : > { %v6194_v54 = vpop.f32.mrf.mxu2 }
 0x201   : > { %5128 = vmatmul.msk.f32.gmra.mxu3 %vm597_vm2, %v1842_v28  ;;  %5158 = vmatmul.msk.f32.gmra.mxu1 %vm597_vm2, %v7808_v17  ;;  %7812 = vst [vmem:[#allocation35_spill] sm:$0xff] %v6194_v54  ;;  %v2789_v17 = vld [vmem:[#allocation6 + $0x168] sm:$0xff]  ;;  %v7813_v28 = vld [vmem:[#allocation38_spill] sm:$0xff]  ;;  %v2784_v54 = vld [vmem:[#allocation6 + $0x140] sm:$0xff] }
 0x202   : > { %5143 = vmatmul.msk.f32.gmra.mxu0 %vm597_vm2, %v2011_v35  ;;  %v1843_v35 = vmul.f32 %v7814_v57, %v5997_v63  ;;  %2794 = vmatpush.msrb.mxu1 %v2789_v17  ;;  %v2572_v63 = vld [vmem:[#allocation6 + $0x40] sm:$0xff]  ;;  %v2600_v17 = vld [vmem:[#allocation6 + $0x98] sm:$0xff] }
 0x203   : > { %2622 = vmatpush.msra.mxu3 %v2603_v31  ;;  %2685 = vmatpush.msrb.mxu0 %v2572_v63  ;;  %v7818_v31 = vld [vmem:[#allocation46_spill] sm:$0xff]  ;;  %v2599_v63 = vld [vmem:[#allocation6 + $0x90] sm:$0xff] }
 0x204   : > { %2795 = vmatpush.msrb.mxu1 %v2788_v41  ;;  %v6212_v53 = vpop.f32.mrf.mxu1  ;;  %v7820_v41 = vld [vmem:[#allocation31_spill] sm:$0xff] }
 0x205   : > { %2623 = vmatpush.msra.mxu3 %v2602_v16  ;;  %v2013_v34 = vmul.f32 %v7820_v41, %v6020_v11  ;;  %2686 = vmatpush.msrb.mxu0 %v2571_v38  ;;  %v2570_v16 = vld [vmem:[#allocation6 + $0x30] sm:$0xff]  ;;  %v2568_v11 = vld [vmem:[#allocation6 + $0x20] sm:$0xff] }
 0x206   : > { %5113 = vmatmul.msk.f32.gmra.mxu2 %vm597_vm2, %v7813_v28  ;;  %2796 = vmatpush.msrb.mxu1 %v2787_v7  ;;  %v2785_v7 = vld [vmem:[#allocation6 + $0x148] sm:$0xff]  ;;  %v2597_v38 = vld [vmem:[#allocation6 + $0x80] sm:$0xff]  ;;  %v7824_v41 = vld [vmem:[#allocation33_spill] sm:$0xff] }
 0x207   : > { %2624 = vmatpush.msra.mxu3 %v2601_v36  ;;  %v2569_v36 = vld [vmem:[#allocation6 + $0x28] sm:$0xff]  ;;  %2687 = vmatpush.msrb.mxu0 %v2570_v16 }
 0x208   : > { %v6210_v1 = vpop.f32.mrf.mxu2 }
 0x209   : > { %5129 = vmatmul.msk.f32.gmra.mxu3 %vm597_vm2, %v1843_v35  ;;  %5159 = vmatmul.msk.f32.gmra.mxu1 %vm597_vm2, %v7813_v28  ;;  %7816 = vst [vmem:[#allocation39_spill] sm:$0xff] %v6210_v1  ;;  %v2786_v35 = vld [vmem:[#allocation6 + $0x150] sm:$0xff]  ;;  %v7817_v28 = vld [vmem:[#allocation42_spill] sm:$0xff]  ;;  %v1844_v1 = vmul.f32 %v7819_v27, %v7818_v31  ;;  %v2598_v31 = vld [vmem:[#allocation6 + $0x88] sm:$0xff] }
 0x20a   : > { %5144 = vmatmul.msk.f32.gmra.mxu0 %vm597_vm2, %v2012_v8  ;;  %v6214_v8 = vpop.f32.mrf.mxu0  ;;  %2625 = vmatpush.msra.mxu3 %v2600_v17  ;;  %v2567_v17 = vld [vmem:[#allocation6 + $0x18] sm:$0xff] }
 0x20b   : > { %2797 = vmatpush.msrb.mxu1 %v2786_v35  ;;  %2688 = vmatpush.msrb.mxu0 %v2569_v36  ;;  %v2782_v36 = vld [vmem:[#allocation6 + $0x130] sm:$0xff] }
 0x20c   : > { %2626 = vmatpush.msra.mxu3 %v2599_v63  ;;  %v6228_v35 = vpop.f32.mrf.mxu1  ;;  %v2014_v63 = vmul.f32 %v6043_v45, %v7824_v41  ;;  %v2564_v45 = vld [vmem:[#allocation6] sm:$0xff] }
 0x20d   : > { %2798 = vmatpush.msrb.mxu1 %v2785_v7  ;;  %2689 = vmatpush.msrb.mxu0 %v2568_v11  ;;  %v2566_v7 = vld [vmem:[#allocation6 + $0x10] sm:$0xff] }
 0x20e   : > { %5114 = vmatmul.msk.f32.gmra.mxu2 %vm597_vm2, %v7817_v28  ;;  %2627 = vmatpush.msra.mxu3 %v2598_v31  ;;  %v2565_v31 = vld [vmem:[#allocation6 + $0x8] sm:$0xff] }
 0x20f   : > { %2799 = vmatpush.msrb.mxu1 %v2784_v54  ;;  %2690 = vmatpush.msrb.mxu0 %v2567_v17  ;;  %v6244_v17 = vld [vmem:[#allocation2 + $0x82] sm:$0xff] }
 0x210   : > { %v6226_v10 = vpop.f32.mrf.mxu2  ;;  %2628 = vmatpush.msra.mxu3 %v2597_v38  ;;  %v1676_v38 = vld [vmem:[#allocation2 + $0x81] sm:$0xff] }
 0x211   : > { %5130 = vmatmul.msk.f32.gmra.mxu3 %vm597_vm2, %v1844_v1  ;;  %5160 = vmatmul.msk.f32.gmra.mxu1 %vm597_vm2, %v7817_v28  ;;  %7821 = vst [vmem:[#allocation38_spill] sm:$0xff] %v6226_v10  ;;  %v2783_v1 = vld [vmem:[#allocation6 + $0x138] sm:$0xff]  ;;  %v7823_v28 = vld [vmem:[#allocation41_spill] sm:$0xff] }
 0x212   : > { %5145 = vmatmul.msk.f32.gmra.mxu0 %vm597_vm2, %v2013_v34  ;;  %v7822_v34 = vld [vmem:[#allocation45_spill] sm:$0xff]  ;;  %v1845_v16 = vmul.f32 %v7823_v28, %v6041_v44  ;;  %2800 = vmatpush.msrb.mxu1 %v2783_v1  ;;  %v6236_v54 = vpop.f32.mrf.mxu0  ;;  %v2781_v44 = vld [vmem:[#allocation6 + $0x128] sm:$0xff]  ;;  %v2780_v1 = vld [vmem:[#allocation6 + $0x120] sm:$0xff] }
 0x213   : > { %2691 = vmatpush.msrb.mxu0 %v2566_v7  ;;  %v2779_v7 = vld [vmem:[#allocation6 + $0x118] sm:$0xff] }
 0x214   : > { %2801 = vmatpush.msrb.mxu1 %v2782_v36  ;;  %v6251_v41 = vpop.f32.mrf.mxu1 }
 0x215   : > { %2692 = vmatpush.msrb.mxu0 %v2565_v31  ;;  %v2778_v31 = vld [vmem:[#allocation6 + $0x110] sm:$0xff] }
 0x216   : > { %5115 = vmatmul.msk.f32.gmra.mxu2 %vm597_vm2, %v7822_v34  ;;  %2802 = vmatpush.msrb.mxu1 %v2781_v44 }
 0x217   : > { %2693 = vmatpush.msrb.mxu0 %v2564_v45  ;;  %v6260_v45 = vld [vmem:[#allocation2 + $0x8a] sm:$0xff] }
 0x218   : > { %2803 = vmatpush.msrb.mxu1 %v2780_v1  ;;  %v2777_v1 = vld [vmem:[#allocation6 + $0x108] sm:$0xff] }
 0x219   : > { %5131 = vmatmul.msk.f32.gmra.mxu3 %vm597_vm2, %v1845_v16  ;;  %5161 = vmatmul.msk.f32.gmra.mxu1 %vm597_vm2, %v7822_v34  ;;  %v6242_v11 = vpop.f32.mrf.mxu2  ;;  %v7826_v16 = vld [vmem:[#allocation43_spill] sm:$0xff]  ;;  %v2015_v34 = vmul.f32 %v6061_v56, %v5964_v21  ;;  %v2310_v21 = vld [vmem:[#allocation2 + $0x22] sm:$0xff] }
 0x21a   : > { %5146 = vmatmul.msk.f32.gmra.mxu0 %vm597_vm2, %v2014_v63  ;;  %7825 = vst [vmem:[#allocation42_spill] sm:$0xff] %v6242_v11  ;;  %v1846_v63 = vmul.f32 %v6244_v17, %v7826_v16  ;;  %v6258_v44 = vpop.f32.mrf.mxu0  ;;  %2804 = vmatpush.msrb.mxu1 %v2779_v7  ;;  %v1677_v11 = vld [vmem:[#allocation2 + $0x89] sm:$0xff]  ;;  %v2326_v42 = vmul.f32 %v2310_v21, %v5662_v24 }
 0x21b   : > { %v2000_v56 = vld [vmem:[#allocation2 + $0x90] sm:$0xff] }
 0x21c   : > { %2805 = vmatpush.msrb.mxu1 %v2778_v31  ;;  %v2001_v31 = vld [vmem:[#allocation2 + $0x98] sm:$0xff] }
 0x21e   : > { %5116 = vmatmul.msk.f32.gmra.mxu2 %vm597_vm2, %v1676_v38  ;;  %2806 = vmatpush.msrb.mxu1 %v2777_v1  ;;  %v2017_v1 = vmul.f32 %v2001_v31, %v6016_v60  ;;  %v5251_v31 = vld [vmem:[#allocation3] sm:$0xff] }
 0x21f   : > { %v2548_v60 = vmul.f32 %v5251_v31, %v5647_v9 }
 0x221   : > { %5132 = vmatmul.msk.f32.gmra.mxu3 %vm597_vm2, %v1846_v63  ;;  %5162 = vmatmul.msk.f32.gmra.mxu1 %vm597_vm2, %v1676_v38  ;;  %v6256_v36 = vpop.f32.mrf.mxu2  ;;  %v1847_v63 = vmul.f32 %v6260_v45, %v6039_v59  ;;  %v2776_v38 = vld [vmem:[#allocation6 + $0x100] sm:$0xff] }
 0x222   : > { %5147 = vmatmul.msk.f32.gmra.mxu0 %vm597_vm2, %v2015_v34  ;;  %7827 = vst [vmem:[#allocation46_spill] sm:$0xff] %v6256_v36  ;;  %v2016_v34 = vmul.f32 %v2000_v56, %v5985_v61  ;;  %v6271_v36 = vpop.f32.mrf.mxu1  ;;  %2807 = vmatpush.msrb.mxu1 %v2776_v38  ;;  %v6273_v10 = vpop.f32.mrf.mxu0  ;;  %v2580_v56 = vld [vmem:[#allocation3 + $0x1] sm:$0xff] }
 0x226   : > { %5117 = vmatmul.msk.f32.gmra.mxu2 %vm597_vm2, %v1677_v11 }
 0x229   : > { %5133 = vmatmul.msk.f32.gmra.mxu3 %vm597_vm2, %v1847_v63  ;;  %5163 = vmatmul.msk.f32.gmra.mxu1 %vm597_vm2, %v1677_v11  ;;  %v6269_v7 = vpop.f32.mrf.mxu2  ;;  %v2170_v63 = vld [vmem:[#allocation2 + $0x91] sm:$0xff] }
 0x22a   : > { %5148 = vmatmul.msk.f32.gmra.mxu0 %vm597_vm2, %v2016_v34  ;;  %7828 = vst [vmem:[#allocation45_spill] sm:$0xff] %v6269_v7  ;;  %v2311_v34 = vld [vmem:[#allocation2 + $0x2a] sm:$0xff]  ;;  %v6282_v38 = vpop.f32.mrf.mxu1  ;;  %v6285_v21 = vpop.f32.mrf.mxu0 }
 0x22b   : > { %v2327_v61 = vmul.f32 %v2311_v34, %v5702_v55  ;;  %v2581_v7 = vld [vmem:[#allocation3 + $0x9] sm:$0xff]  ;;  %7829 = vst [vmem:[#allocation50_spill] sm:$0xff] %v6285_v21  ;;  %v1478_v34 = vadd.f32 %v6180_v33, %v6088_v6  ;;  %v1479_v33 = vadd.f32 %v6198_v50, %v6100_v4 }
 0x22e   : > { %5166 = vmatmul.msk.f32.vlgmr.msra.gmra.mxu2 %vm597_vm2, %v2326_v42  ;;  %v2171_v42 = vld [vmem:[#allocation2 + $0x99] sm:$0xff] }
 0x231   : > { %2629 = vmatmul.f32.vlgmr.msra.gmra.mxu3 %v2580_v56  ;;  %5164 = vmatmul.msk.f32.gmra.mxu1 %vm597_vm2, %v2170_v63  ;;  %v6280_v11 = vpop.f32.mrf.mxu2 }
 0x232   : > { %5149 = vmatmul.msk.f32.gmra.mxu0 %vm597_vm2, %v2017_v1  ;;  %v2312_v1 = vld [vmem:[#allocation2 + $0x32] sm:$0xff]  ;;  %v6295_v21 = vpop.f32.mrf.mxu1 }
 0x233   : > { %v2328_v63 = vmul.f32 %v2312_v1, %v5720_v2  ;;  %v2313_v1 = vld [vmem:[#allocation2 + $0x3a] sm:$0xff] }
 0x234   : > { %v2329_v6 = vmul.f32 %v2313_v1, %v5741_v14 }
 0x236   : > { %5167 = vmatmul.msk.f32.gmra.mxu2 %vm597_vm2, %v2327_v61  ;;  %v2549_v61 = vmul.f32 %v5251_v31, %v5664_v25  ;;  %v1649_v31 = vadd.f32 %v6212_v53, %v1479_v33 }
 0x239   : > { %2632 = vmatmul.f32.gmra.mxu3 %v2581_v7  ;;  %5165 = vmatmul.msk.f32.gmra.mxu1 %vm597_vm2, %v2171_v42  ;;  %v6290_v56 = vpop.f32.mrf.mxu2  ;;  %v1648_v7 = vadd.f32 %v6196_v40, %v1478_v34  ;;  %v6301_v42 = vpop.f32.mrf.mxu0 }
 0x23a   : > { %2694 = vmatmul.f32.vlgmr.msrb.gmra.mxu0 %v2548_v60  ;;  %v2759_v60 = vmul.f32 %v2743_v49, %v5662_v24  ;;  %v6310_v49 = vpop.f32.mrf.mxu1 }
 0x23e   : > { %5168 = vmatmul.msk.f32.gmra.mxu2 %vm597_vm2, %v2328_v63  ;;  %v2314_v63 = vld [vmem:[#allocation2 + $0x42] sm:$0xff] }
 0x241   : > { %2808 = vmatmul.f32.vlgmr.msrb.gmra.mxu1 %v2759_v60  ;;  %v1758_v47 = vpop.f32.mrf.mxu2  ;;  %v1480_v60 = vadd.f32 %v6214_v8, %v6112_v62  ;;  %v6321_v50 = vpop.f32.mrf.mxu0 }
 0x242   : > { %2697 = vmatmul.f32.gmra.mxu0 %v2549_v61  ;;  %v6303_v37 = vadd.f32 %v1758_v47, %v1648_v7  ;;  %v6314_v61 = vpop.f32.mrf.mxu3  ;;  %v2330_v47 = vmul.f32 %v2314_v63, %v5766_v29  ;;  %v2315_v7 = vld [vmem:[#allocation2 + $0x4a] sm:$0xff]  ;;  %v6323_v1 = vpop.f32.mrf.mxu1 }
 0x243   : > { %v1650_v4 = vadd.f32 %v6228_v35, %v1480_v60  ;;  %v2331_v33 = vmul.f32 %v2315_v7, %v5791_v39  ;;  %v2316_v35 = vld [vmem:[#allocation2 + $0x52] sm:$0xff]  ;;  %v2317_v7 = vld [vmem:[#allocation2 + $0x5a] sm:$0xff] }
 0x246   : > { %5169 = vmatmul.msk.f32.gmra.mxu2 %vm597_vm2, %v2329_v6 }
 0x249   : > { %v1761_v40 = vpop.f32.mrf.mxu2  ;;  %v6334_v63 = vpop.f32.mrf.mxu0 }
 0x24a   : > { %v6312_v34 = vadd.f32 %v1761_v40, %v1649_v31  ;;  %v1481_v31 = vadd.f32 %v6236_v54, %v6124_v32  ;;  %v6330_v40 = vpop.f32.mrf.mxu3  ;;  %v6338_v60 = vpop.f32.mrf.mxu1 }
 0x24c   : > { %v1651_v62 = vadd.f32 %v6251_v41, %v1481_v31 }
 0x24e   : > { %5170 = vmatmul.msk.f32.gmra.mxu2 %vm597_vm2, %v2330_v47 }
 0x251   : > { %v1764_v53 = vpop.f32.mrf.mxu2  ;;  %v6349_v31 = vpop.f32.mrf.mxu0 }
 0x252   : > { %v6325_v6 = vadd.f32 %v1764_v53, %v1650_v4  ;;  %v2332_v4 = vmul.f32 %v2316_v35, %v5816_v51  ;;  %v1482_v53 = vadd.f32 %v6258_v44, %v6136_v20  ;;  %v6345_v54 = vpop.f32.mrf.mxu3  ;;  %7831 = vst [vmem:[#allocation52_spill] sm:$0xff] %v6349_v31  ;;  %v6354_v35 = vpop.f32.mrf.mxu1  ;;  %v2318_v44 = vld [vmem:[#allocation2 + $0x62] sm:$0xff]  ;;  %v2911_v31 = vld [vmem:[#allocation6 + $0x1a8] sm:$0xff] }
 0x253   : > { %7830 = vst [vmem:[#allocation51_spill] sm:$0xff] %v6345_v54 }
 0x254   : > { %v1652_v32 = vadd.f32 %v6271_v36, %v1482_v53  ;;  %7832 = vst [vmem:[#allocation53_spill] sm:$0xff] %v6354_v35  ;;  %v2914_v35 = vld [vmem:[#allocation6 + $0x1c0] sm:$0xff] }
 0x256   : > { %5171 = vmatmul.msk.f32.gmra.mxu2 %vm597_vm2, %v2331_v33 }
 0x259   : > { %v1767_v8 = vpop.f32.mrf.mxu2 }
 0x25a   : > { %v6336_v47 = vadd.f32 %v1767_v8, %v1651_v62  ;;  %v2333_v62 = vmul.f32 %v2317_v7, %v5841_v5  ;;  %v1483_v8 = vadd.f32 %v6273_v10, %v6150_v18  ;;  %v6366_v7 = vpop.f32.mrf.mxu1  ;;  %v2319_v10 = vld [vmem:[#allocation2 + $0x6a] sm:$0xff] }
 0x25b   : > { %7835 = vst [vmem:[#allocation56_spill] sm:$0xff] %v6366_v7 }
 0x25c   : > { %v1653_v20 = vadd.f32 %v6282_v38, %v1483_v8  ;;  %v2335_v38 = vmul.f32 %v2319_v10, %v5891_v46  ;;  %v3034_v46 = vld [vmem:[#allocation6 + $0x270] sm:$0xff] }
 0x25e   : > { %5172 = vmatmul.msk.f32.gmra.mxu2 %vm597_vm2, %v2332_v4  ;;  %v6358_v4 = vpop.f32.mrf.mxu3 }
 0x25f   : > { %7833 = vst [vmem:[#allocation54_spill] sm:$0xff] %v6358_v4  ;;  %v2919_v4 = vld [vmem:[#allocation6 + $0x1e8] sm:$0xff] }
 0x261   : > { %v1770_v41 = vpop.f32.mrf.mxu2 }
 0x262   : > { %v6347_v33 = vadd.f32 %v1770_v41, %v1652_v32  ;;  %v2334_v32 = vmul.f32 %v2318_v44, %v5866_v23  ;;  %v6363_v41 = vpop.f32.mrf.mxu0  ;;  %v6378_v44 = vpop.f32.mrf.mxu1 }
 0x263   : > { %7834 = vst [vmem:[#allocation55_spill] sm:$0xff] %v6363_v41 }
 0x264   : > { %7838 = vst [vmem:[#allocation59_spill] sm:$0xff] %v6378_v44  ;;  %v2920_v44 = vld [vmem:[#allocation6 + $0x1f0] sm:$0xff] }
 0x266   : > { %5173 = vmatmul.msk.f32.gmra.mxu2 %vm597_vm2, %v2333_v62  ;;  %v6370_v62 = vpop.f32.mrf.mxu3 }
 0x267   : > { %7836 = vst [vmem:[#allocation57_spill] sm:$0xff] %v6370_v62  ;;  %v2321_v62 = vld [vmem:[#allocation2 + $0x7a] sm:$0xff] }
 0x269   : > { %v1773_v36 = vpop.f32.mrf.mxu2 }
 0x26a   : > { %v6360_v53 = vadd.f32 %v1773_v36, %v1653_v20  ;;  %v6374_v8 = vpop.f32.mrf.mxu0  ;;  %v2320_v36 = vld [vmem:[#allocation2 + $0x72] sm:$0xff]  ;;  %v6388_v10 = vpop.f32.mrf.mxu1 }
 0x26b   : > { %7837 = vst [vmem:[#allocation58_spill] sm:$0xff] %v6374_v8  ;;  %v2921_v8 = vld [vmem:[#allocation6 + $0x1f8] sm:$0xff] }
 0x26c   : > { %7841 = vst [vmem:[#allocation62_spill] sm:$0xff] %v6388_v10  ;;  %2922 = vmatpush.msrb.mxu2 %v2921_v8  ;;  %v2338_v10 = vmul.f32 %v6244_v17, %v7819_v27  ;;  %v2916_v8 = vld [vmem:[#allocation6 + $0x1d0] sm:$0xff]  ;;  %v2339_v17 = vmul.f32 %v6260_v45, %v7823_v28 }
 0x26e   : > { %5174 = vmatmul.msk.f32.gmra.mxu2 %vm597_vm2, %v2334_v32  ;;  %v2336_v32 = vmul.f32 %v2320_v36, %v7809_v22  ;;  %v6381_v24 = vpop.f32.mrf.mxu3 }
 0x26f   : > { %7839 = vst [vmem:[#allocation60_spill] sm:$0xff] %v6381_v24  ;;  %2923 = vmatpush.msrb.mxu2 %v2920_v44 }
 0x271   : > { %v6368_v18 = vpop.f32.mrf.mxu2  ;;  %2924 = vmatpush.msrb.mxu2 %v2919_v4 }
 0x272   : > { %v6386_v41 = vpop.f32.mrf.mxu0 }
 0x273   : > { %7840 = vst [vmem:[#allocation61_spill] sm:$0xff] %v6386_v41  ;;  %v6400_v41 = vpop.f32.mrf.mxu1 }
 0x276   : > { %5175 = vmatmul.msk.f32.gmra.mxu2 %vm597_vm2, %v2335_v38  ;;  %v2337_v38 = vmul.f32 %v2321_v62, %v7814_v57  ;;  %v6392_v36 = vpop.f32.mrf.mxu3  ;;  %v2917_v62 = vld [vmem:[#allocation6 + $0x1d8] sm:$0xff]  ;;  %v2915_v57 = vld [vmem:[#allocation6 + $0x1c8] sm:$0xff] }
 0x279   : > { %v6376_v20 = vpop.f32.mrf.mxu2 }
 0x27a   : > { %v6396_v22 = vpop.f32.mrf.mxu0 }
 0x27e   : > { %5176 = vmatmul.msk.f32.gmra.mxu2 %vm597_vm2, %v2336_v32  ;;  %v2918_v32 = vld [vmem:[#allocation6 + $0x1e0] sm:$0xff]  ;;  %v1925_v4 = vpop.f32.mrf.mxu3 }
 0x27f   : > { %2925 = vmatpush.msrb.mxu2 %v2918_v32  ;;  %v2913_v32 = vld [vmem:[#allocation6 + $0x1b8] sm:$0xff] }
 0x281   : > { %v6384_v7 = vpop.f32.mrf.mxu2  ;;  %2926 = vmatpush.msrb.mxu2 %v2917_v62  ;;  %v2249_v62 = vpop.f32.mrf.mxu1 }
 0x282   : > { %v2095_v27 = vpop.f32.mrf.mxu0 }
 0x283   : > { %2927 = vmatpush.msrb.mxu2 %v2916_v8 }
 0x285   : > { %2928 = vmatpush.msrb.mxu2 %v2915_v57  ;;  %v2910_v57 = vld [vmem:[#allocation6 + $0x1a0] sm:$0xff] }
 0x286   : > { %5177 = vmatmul.msk.f32.gmra.mxu2 %vm597_vm2, %v2337_v38  ;;  %v3035_v38 = vld [vmem:[#allocation6 + $0x278] sm:$0xff]  ;;  %v1928_v8 = vpop.f32.mrf.mxu3 }
 0x287   : > { %3036 = vmatpush.msrb.mxu3 %v3035_v38  ;;  %2929 = vmatpush.msrb.mxu2 %v2914_v35  ;;  %v2909_v35 = vld [vmem:[#allocation6 + $0x198] sm:$0xff] }
 0x289   : > { %v6394_v24 = vpop.f32.mrf.mxu2  ;;  %2930 = vmatpush.msrb.mxu2 %v2913_v32  ;;  %3037 = vmatpush.msrb.mxu3 %v3034_v46  ;;  %v2908_v32 = vld [vmem:[#allocation6 + $0x190] sm:$0xff] }
 0x28a   : > { %7842 = vst [vmem:[#allocation63_spill] sm:$0xff] %v6394_v24  ;;  %v2098_v28 = vpop.f32.mrf.mxu0  ;;  %v2907_v24 = vld [vmem:[#allocation6 + $0x188] sm:$0xff] }
 0x28b   : > { %v2325_v46 = vld [vmem:[#allocation2 + $0x9a] sm:$0xff] }
 0x28e   : > { %5178 = vmatmul.msk.f32.gmra.mxu2 %vm597_vm2, %v2338_v10  ;;  %v2912_v10 = vld [vmem:[#allocation6 + $0x1b0] sm:$0xff] }
 0x28f   : > { %2931 = vmatpush.msrb.mxu2 %v2912_v10  ;;  %v2906_v10 = vld [vmem:[#allocation6 + $0x180] sm:$0xff] }
 0x291   : > { %v6403_v44 = vpop.f32.mrf.mxu2  ;;  %2932 = vmatpush.msrb.mxu2 %v2911_v31 }
 0x292   : > { %7843 = vst [vmem:[#allocation64_spill] sm:$0xff] %v6403_v44  ;;  %v2324_v44 = vld [vmem:[#allocation2 + $0x92] sm:$0xff] }
 0x293   : > { %v2340_v45 = vmul.f32 %v2324_v44, %v7826_v16  ;;  %2933 = vmatpush.msrb.mxu2 %v2910_v57  ;;  %v2252_v44 = vpop.f32.mrf.mxu1 }
 0x295   : > { %2934 = vmatpush.msrb.mxu2 %v2909_v35  ;;  %v1198_v35 = vadd.f32 %v6076_v19, %v6071_v13  ;;  %v6434_v13 = vld [vmem:[%s7621_s8] ss:$0 sm:$0xff]  ;;  %v3031_v19 = vld [vmem:[#allocation6 + $0x258] sm:$0xff] }
 0x296   : > { %5179 = vmatmul.msk.f32.gmra.mxu2 %vm597_vm2, %v2339_v17  ;;  %v1195_v17 = vadd.f32 %v6059_v3, %v6045_v15  ;;  %v2341_v15 = vmul.f32 %v2325_v46, %v6039_v59 }
 0x297   : > { %2935 = vmatpush.msrb.mxu2 %v2908_v32  ;;  %v3032_v32 = vld [vmem:[#allocation6 + $0x260] sm:$0xff] }
 0x298   : > { %v1476_v31 = vadd.f32 %v6144_v43, %v1195_v17 }
 0x299   : > { %v6408_v38 = vpop.f32.mrf.mxu2  ;;  %2936 = vmatpush.msrb.mxu2 %v2907_v24  ;;  %v1477_v24 = vadd.f32 %v6160_v58, %v1198_v35 }
 0x29a   : > { %7844 = vst [vmem:[#allocation65_spill] sm:$0xff] %v6408_v38  ;;  %v3033_v38 = vld [vmem:[#allocation6 + $0x268] sm:$0xff]  ;;  %v1646_v57 = vadd.f32 %v6152_v30, %v1476_v31  ;;  %v2101_v30 = vpop.f32.mrf.mxu0 }
 0x29b   : > { %3038 = vmatpush.msrb.mxu3 %v3033_v38  ;;  %2937 = vmatpush.msrb.mxu2 %v2906_v10  ;;  %v1647_v17 = vadd.f32 %v6174_v48, %v1477_v24  ;;  %v2255_v46 = vpop.f32.mrf.mxu1  ;;  %v1972_v24 = vadd.f32 %v1928_v8, %v6303_v37 }
 0x29c   : > { %v1800_v3 = vadd.f32 %v6280_v11, %v1646_v57 }
 0x29d   : > { %3039 = vmatpush.msrb.mxu3 %v3032_v32  ;;  %v1801_v31 = vadd.f32 %v6290_v56, %v1647_v17 }
 0x29e   : > { %5180 = vmatmul.msk.f32.gmra.mxu2 %vm597_vm2, %v2340_v45  ;;  %v1931_v45 = vpop.f32.mrf.mxu3  ;;  %v1970_v43 = vadd.f32 %v6392_v36, %v1800_v3 }
 0x29f   : > { %3040 = vmatpush.msrb.mxu3 %v3031_v19  ;;  %v1971_v36 = vadd.f32 %v1925_v4, %v1801_v31  ;;  %v2142_v31 = vadd.f32 %v2098_v28, %v1972_v24  ;;  %v1973_v28 = vadd.f32 %v1931_v45, %v6312_v34 }
 0x2a0   : > { %v2140_v11 = vadd.f32 %v6396_v22, %v1970_v43 }
 0x2a1   : > { %v6414_v54 = vpop.f32.mrf.mxu2  ;;  %v2141_v35 = vadd.f32 %v2095_v27, %v1971_v36  ;;  %v2296_v19 = vadd.f32 %v2252_v44, %v2142_v31  ;;  %v2143_v24 = vadd.f32 %v2101_v30, %v1973_v28 }
 0x2a2   : > { %v2294_v10 = vadd.f32 %v6400_v41, %v2140_v11  ;;  %v2104_v3 = vpop.f32.mrf.mxu0  ;;  %v3030_v41 = vld [vmem:[#allocation6 + $0x250] sm:$0xff] }
 0x2a3   : > { %v2258_v22 = vpop.f32.mrf.mxu1  ;;  %v2295_v56 = vadd.f32 %v2249_v62, %v2141_v35  ;;  %3041 = vmatpush.msrb.mxu3 %v3030_v41 }
 0x2a6   : > { %5181 = vmatmul.msk.f32.gmra.mxu2 %vm597_vm2, %v2341_v15  ;;  %v1934_v57 = vpop.f32.mrf.mxu3 }
 0x2a7   : > { %v1974_v30 = vadd.f32 %v1934_v57, %v6325_v6 }
 0x2a9   : > { %v6423_v38 = vpop.f32.mrf.mxu2 }
 0x2ab   : > { %v2261_v36 = vpop.f32.mrf.mxu1 }
 0x2ae   : > { %v1937_v17 = vpop.f32.mrf.mxu3 }
 0x2b1   : > { %v2416_v58 = vpop.f32.mrf.mxu2 }
 0x2b2   : > { %v2464_v15 = vadd.f32 %v2416_v58, %v2294_v10  ;;  %v6443_v10 = vpop.f32.mrf.mxu0 }
 0x2b4   : > { %v2484_v48 = vadd.f32 %v6434_v13, %v2464_v15 }
 0x2b6   : > { %v6437_v32 = vmax.f32 %v2484_v48, 0.0  ;;  %v3029_v48 = vld [vmem:[#allocation6 + $0x248] sm:$0xff]  ;;  %v1940_v44 = vpop.f32.mrf.mxu3 }
 0x2b7   : > { %3042 = vmatpush.msrb.mxu3 %v3029_v48  ;;  %v2144_v48 = vadd.f32 %v2104_v3, %v1974_v30  ;;  %v3027_v3 = vld [vmem:[#allocation6 + $0x238] sm:$0xff] }
 0x2b8   : > { %2516 = vst [vmem:[#allocation3 + $0x11] sm:$0xff] %v6437_v32  ;;  %2635 = vmatmul.f32.gmra.mxu3 %v6437_v32 }
 0x2b9   : > { %v2419_v43 = vpop.f32.mrf.mxu2 }
 0x2ba   : > { %v2465_v4 = vadd.f32 %v2419_v43, %v2295_v56 }
 0x2bc   : > { %v2485_v11 = vadd.f32 %v6434_v13, %v2465_v4  ;;  %v2297_v4 = vadd.f32 %v2255_v46, %v2143_v24  ;;  %v2264_v46 = vpop.f32.mrf.mxu1 }
 0x2be   : > { %v6445_v27 = vmax.f32 %v2485_v11, 0.0  ;;  %v1943_v28 = vpop.f32.mrf.mxu3 }
 0x2bf   : > { %v2534_v62 = vld [vmem:[#allocation3 + $0x10] sm:$0xff] }
 0x2c0   : > { %v2744_v58 = vld [vmem:[#allocation3 + $0xa] sm:$0xff]  ;;  %2517 = vst [vmem:[#allocation3 + $0x19] sm:$0xff] %v6445_v27  ;;  %v2550_v15 = vmul.f32 %v2534_v62, %v5700_v52  ;;  %v2889_v8 = vmul.f32 %v2534_v62, %v5647_v9  ;;  %2638 = vmatmul.f32.gmra.mxu3 %v6445_v27  ;;  %v2110_v62 = vpop.f32.mrf.mxu0 }
 0x2c1   : > { %v2760_v37 = vmul.f32 %v2744_v58, %v5702_v55  ;;  %v2422_v35 = vpop.f32.mrf.mxu2  ;;  %v3028_v58 = vld [vmem:[#allocation6 + $0x240] sm:$0xff] }
 0x2c2   : > { %v2466_v56 = vadd.f32 %v2422_v35, %v2296_v19  ;;  %2700 = vmatmul.f32.gmra.mxu0 %v2550_v15  ;;  %2938 = vmatmul.f32.vlgmr.msrb.gmra.mxu2 %v2889_v8 }
 0x2c3   : > { %2811 = vmatmul.f32.gmra.mxu1 %v2760_v37  ;;  %3043 = vmatpush.msrb.mxu3 %v3028_v58 }
 0x2c4   : > { %v2486_v41 = vadd.f32 %v6434_v13, %v2466_v56  ;;  %v2298_v56 = vadd.f32 %v2258_v22, %v2144_v48  ;;  %v1975_v22 = vadd.f32 %v1937_v17, %v6336_v47 }
 0x2c5   : > { %3044 = vmatpush.msrb.mxu3 %v3027_v3 }
 0x2c6   : > { %v6454_v43 = vmax.f32 %v2486_v41, 0.0  ;;  %v2145_v30 = vadd.f32 %v6443_v10, %v1975_v22  ;;  %v1946_v47 = vpop.f32.mrf.mxu3  ;;  %v3026_v10 = vld [vmem:[#allocation6 + $0x230] sm:$0xff] }
 0x2c7   : > { %v2535_v11 = vld [vmem:[#allocation3 + $0x18] sm:$0xff]  ;;  %3045 = vmatpush.msrb.mxu3 %v3026_v10  ;;  %v1977_v10 = vadd.f32 %v1943_v28, %v6360_v53 }
 0x2c8   : > { %v6456_v31 = vld [vmem:[#allocation3 + $0x12] sm:$0xff]  ;;  %2518 = vst [vmem:[#allocation3 + $0x21] sm:$0xff] %v6454_v43  ;;  %v2551_v34 = vmul.f32 %v2535_v11, %v5718_v0  ;;  %v2890_v19 = vmul.f32 %v2535_v11, %v5664_v25  ;;  %2641 = vmatmul.f32.gmra.mxu3 %v6454_v43 }
 0x2c9   : > { %v2761_v45 = vmul.f32 %v6456_v31, %v5720_v2  ;;  %v2425_v15 = vpop.f32.mrf.mxu2 }
 0x2ca   : > { %v2467_v37 = vadd.f32 %v2425_v15, %v2297_v4  ;;  %2703 = vmatmul.f32.gmra.mxu0 %v2551_v34  ;;  %2941 = vmatmul.f32.gmra.mxu2 %v2890_v19  ;;  %v2113_v34 = vpop.f32.mrf.mxu0  ;;  %v2267_v19 = vpop.f32.mrf.mxu1 }
 0x2cb   : > { %2814 = vmatmul.f32.gmra.mxu1 %v2761_v45 }
 0x2cc   : > { %v2487_v8 = vadd.f32 %v6434_v13, %v2467_v37  ;;  %v2299_v37 = vadd.f32 %v2261_v36, %v2145_v30  ;;  %v1976_v36 = vadd.f32 %v1940_v44, %v6347_v33  ;;  %v7847_v33 = vld [vmem:[#allocation22_spill] sm:$0xff] }
 0x2ce   : > { %v6466_v35 = vmax.f32 %v2487_v8, 0.0 }
 0x2cf   : > { %v6468_v41 = vld [vmem:[#allocation3 + $0x20] sm:$0xff] }
 0x2d0   : > { %v6470_v24 = vld [vmem:[#allocation3 + $0x1a] sm:$0xff]  ;;  %2519 = vst [vmem:[#allocation3 + $0x29] sm:$0xff] %v6466_v35  ;;  %v2552_v6 = vmul.f32 %v6468_v41, %v5739_v12  ;;  %v2891_v4 = vmul.f32 %v6468_v41, %v5700_v52  ;;  %2644 = vmatmul.f32.gmra.mxu3 %v6466_v35 }
 0x2d1   : > { %v2762_v57 = vmul.f32 %v6470_v24, %v5741_v14  ;;  %v2428_v11 = vpop.f32.mrf.mxu2 }
 0x2d2   : > { %v2468_v45 = vadd.f32 %v2428_v11, %v2298_v56  ;;  %2706 = vmatmul.f32.gmra.mxu0 %v2552_v6  ;;  %2944 = vmatmul.f32.gmra.mxu2 %v2891_v4  ;;  %v2116_v3 = vpop.f32.mrf.mxu0  ;;  %v2146_v11 = vadd.f32 %v2110_v62, %v1976_v36  ;;  %v3025_v62 = vld [vmem:[#allocation6 + $0x228] sm:$0xff] }
 0x2d3   : > { %2817 = vmatmul.f32.gmra.mxu1 %v2762_v57  ;;  %3046 = vmatpush.msrb.mxu3 %v3025_v62 }
 0x2d4   : > { %v2488_v58 = vadd.f32 %v6434_v13, %v2468_v45  ;;  %v2270_v45 = vpop.f32.mrf.mxu1  ;;  %v2300_v30 = vadd.f32 %v2264_v46, %v2146_v11  ;;  %v7849_v46 = vld [vmem:[#allocation50_spill] sm:$0xff] }
 0x2d6   : > { %v6483_v15 = vmax.f32 %v2488_v58, 0.0 }
 0x2d7   : > { %v6485_v8 = vld [vmem:[#allocation3 + $0x28] sm:$0xff] }
 0x2d8   : > { %7845 = vst [vmem:[#allocation66_spill] sm:$0xff] %v6483_v15  ;;  %v6487_v48 = vld [vmem:[#allocation3 + $0x22] sm:$0xff]  ;;  %v2553_v17 = vmul.f32 %v6485_v8, %v5764_v26  ;;  %v2892_v6 = vmul.f32 %v6485_v8, %v5718_v0  ;;  %2647 = vmatmul.f32.gmra.mxu3 %v6483_v15 }
 0x2d9   : > { %2520 = vst [vmem:[#allocation3 + $0x31] sm:$0xff] %v6483_v15  ;;  %v2763_v56 = vmul.f32 %v6487_v48, %v5766_v29  ;;  %v2431_v57 = vpop.f32.mrf.mxu2 }
 0x2da   : > { %v2469_v4 = vadd.f32 %v2431_v57, %v2299_v37  ;;  %2709 = vmatmul.f32.gmra.mxu0 %v2553_v17  ;;  %2947 = vmatmul.f32.gmra.mxu2 %v2892_v6  ;;  %v1949_v57 = vpop.f32.mrf.mxu3 }
 0x2db   : > { %2820 = vmatmul.f32.gmra.mxu1 %v2763_v56  ;;  %v7848_v56 = vld [vmem:[#allocation48_spill] sm:$0xff] }
 0x2dc   : > { %v2489_v22 = vadd.f32 %v6434_v13, %v2469_v4  ;;  %v1484_v6 = vadd.f32 %v7849_v46, %v7848_v56  ;;  %v2273_v28 = vpop.f32.mrf.mxu1 }
 0x2de   : > { %v6499_v58 = vmax.f32 %v2489_v22, 0.0  ;;  %v1654_v22 = vadd.f32 %v6295_v21, %v1484_v6 }
 0x2e0   : > { %7846 = vst [vmem:[#allocation67_spill] sm:$0xff] %v6499_v58  ;;  %v6501_v0 = vld [vmem:[#allocation3 + $0x30] sm:$0xff]  ;;  %2650 = vmatmul.f32.gmra.mxu3 %v6499_v58 }
 0x2e1   : > { %v6503_v29 = vld [vmem:[#allocation3 + $0x2a] sm:$0xff]  ;;  %2521 = vst [vmem:[#allocation3 + $0x39] sm:$0xff] %v6499_v58  ;;  %v2554_v44 = vmul.f32 %v6501_v0, %v7847_v33  ;;  %v2893_v17 = vmul.f32 %v6501_v0, %v5739_v12  ;;  %v2434_v36 = vpop.f32.mrf.mxu2  ;;  %v2147_v12 = vadd.f32 %v2113_v34, %v1977_v10  ;;  %v2119_v58 = vpop.f32.mrf.mxu0 }
 0x2e2   : > { %v2764_v37 = vmul.f32 %v6503_v29, %v5791_v39  ;;  %v2470_v4 = vadd.f32 %v2434_v36, %v2300_v30  ;;  %v1808_v39 = vadd.f32 %v6368_v18, %v1654_v22  ;;  %v7850_v30 = vld [vmem:[#allocation24_spill] sm:$0xff]  ;;  %v3024_v34 = vld [vmem:[#allocation6 + $0x220] sm:$0xff]  ;;  %v1952_v10 = vpop.f32.mrf.mxu3 }
 0x2e3   : > { %2712 = vmatmul.f32.gmra.mxu0 %v2554_v44  ;;  %2950 = vmatmul.f32.gmra.mxu2 %v2893_v17  ;;  %v2301_v56 = vadd.f32 %v2267_v19, %v2147_v12  ;;  %v7851_v12 = vld [vmem:[#allocation49_spill] sm:$0xff] }
 0x2e4   : > { %2823 = vmatmul.f32.gmra.mxu1 %v2764_v37  ;;  %v2490_v11 = vadd.f32 %v6434_v13, %v2470_v4  ;;  %v1485_v19 = vadd.f32 %v6301_v42, %v7851_v12  ;;  %v1978_v37 = vadd.f32 %v1946_v47, %v1808_v39  ;;  %3047 = vmatpush.msrb.mxu3 %v3024_v34  ;;  %v7852_v4 = vld [vmem:[#allocation35_spill] sm:$0xff]  ;;  %v2276_v34 = vpop.f32.mrf.mxu1 }
 0x2e5   : > { %v1225_v22 = vadd.f32 %v6314_v61, %v7852_v4  ;;  %v3165_v4 = vld [vmem:[#allocation6 + $0x2f8] sm:$0xff] }
 0x2e6   : > { %v6519_v15 = vmax.f32 %v2490_v11, 0.0  ;;  %v1655_v6 = vadd.f32 %v6310_v49, %v1485_v19  ;;  %v2148_v11 = vadd.f32 %v2116_v3, %v1978_v37  ;;  %v7853_v49 = vld [vmem:[#allocation26_spill] sm:$0xff]  ;;  %3166 = vmatpush.msra.mxu0 %v3165_v4 }
 0x2e7   : > { %v1486_v3 = vadd.f32 %v6321_v50, %v1225_v22 }
 0x2e8   : > { %v6521_v46 = vld [vmem:[#allocation3 + $0x38] sm:$0xff]  ;;  %2522 = vst [vmem:[#allocation3 + $0x41] sm:$0xff] %v6519_v15  ;;  %2653 = vmatmul.f32.gmra.mxu3 %v6519_v15  ;;  %v2302_v39 = vadd.f32 %v2270_v45, %v2148_v11 }
 0x2e9   : > { %v6523_v53 = vld [vmem:[#allocation3 + $0x32] sm:$0xff]  ;;  %v2555_v21 = vmul.f32 %v6521_v46, %v7850_v30  ;;  %v2894_v18 = vmul.f32 %v6521_v46, %v5764_v26  ;;  %v2437_v17 = vpop.f32.mrf.mxu2  ;;  %v1809_v26 = vadd.f32 %v6376_v20, %v1655_v6  ;;  %v3023_v20 = vld [vmem:[#allocation6 + $0x218] sm:$0xff]  ;;  %v1656_v19 = vadd.f32 %v6323_v1, %v1486_v3 }
 0x2ea   : > { %v2765_v44 = vmul.f32 %v6523_v53, %v5816_v51  ;;  %v2471_v62 = vadd.f32 %v2437_v17, %v2301_v56  ;;  %v2122_v56 = vpop.f32.mrf.mxu0  ;;  %3048 = vmatpush.msrb.mxu3 %v3023_v20  ;;  %v7854_v17 = vld [vmem:[#allocation39_spill] sm:$0xff]  ;;  %v1955_v50 = vpop.f32.mrf.mxu3  ;;  %v3164_v1 = vld [vmem:[#allocation6 + $0x2f0] sm:$0xff] }
 0x2eb   : > { %2715 = vmatmul.f32.gmra.mxu0 %v2555_v21  ;;  %2953 = vmatmul.f32.gmra.mxu2 %v2894_v18  ;;  %v1979_v45 = vadd.f32 %v1949_v57, %v1809_v26 }
 0x2ec   : > { %2826 = vmatmul.f32.gmra.mxu1 %v2765_v44  ;;  %v2491_v36 = vadd.f32 %v6434_v13, %v2471_v62  ;;  %v1228_v62 = vadd.f32 %v6330_v40, %v7854_v17  ;;  %3167 = vmatpush.msra.mxu0 %v3164_v1  ;;  %v7856_v17 = vld [vmem:[#allocation38_spill] sm:$0xff] }
 0x2ed   : > { %v2149_v6 = vadd.f32 %v2119_v58, %v1979_v45  ;;  %v3163_v58 = vld [vmem:[#allocation6 + $0x2e8] sm:$0xff] }
 0x2ee   : > { %v6540_v51 = vmax.f32 %v2491_v36, 0.0  ;;  %v1810_v36 = vadd.f32 %v6384_v7, %v1656_v19  ;;  %3168 = vmatpush.msra.mxu0 %v3163_v58  ;;  %v2279_v19 = vpop.f32.mrf.mxu1 }
 0x2ef   : > { %v6542_v42 = vld [vmem:[#allocation3 + $0x40] sm:$0xff]  ;;  %v2303_v57 = vadd.f32 %v2273_v28, %v2149_v6  ;;  %v3022_v28 = vld [vmem:[#allocation6 + $0x210] sm:$0xff]  ;;  %v7857_v6 = vld [vmem:[#allocation51_spill] sm:$0xff] }
 0x2f0   : > { %v6544_v47 = vld [vmem:[#allocation3 + $0x3a] sm:$0xff]  ;;  %2523 = vst [vmem:[#allocation3 + $0x49] sm:$0xff] %v6540_v51  ;;  %v2556_v21 = vmul.f32 %v6542_v42, %v7853_v49  ;;  %v2895_v61 = vmul.f32 %v6542_v42, %v7847_v33  ;;  %2656 = vmatmul.f32.gmra.mxu3 %v6540_v51  ;;  %v1231_v4 = vadd.f32 %v7857_v6, %v7856_v17  ;;  %v3293_v6 = vld [vmem:[#allocation6 + $0x368] sm:$0xff] }
 0x2f1   : > { %v2766_v44 = vmul.f32 %v6544_v47, %v5841_v5  ;;  %v2440_v18 = vpop.f32.mrf.mxu2  ;;  %3049 = vmatpush.msrb.mxu3 %v3022_v28  ;;  %v7860_v28 = vld [vmem:[#allocation29_spill] sm:$0xff] }
 0x2f2   : > { %v2472_v12 = vadd.f32 %v2440_v18, %v2302_v39  ;;  %v7855_v39 = vld [vmem:[#allocation27_spill] sm:$0xff]  ;;  %v2125_v3 = vpop.f32.mrf.mxu0  ;;  %v1958_v58 = vpop.f32.mrf.mxu3 }
 0x2f3   : > { %2718 = vmatmul.f32.gmra.mxu0 %v2556_v21  ;;  %2956 = vmatmul.f32.gmra.mxu2 %v2895_v61  ;;  %v1980_v61 = vadd.f32 %v1952_v10, %v1810_v36  ;;  %v3295_v36 = vld [vmem:[#allocation6 + $0x378] sm:$0xff] }
 0x2f4   : > { %2829 = vmatmul.f32.gmra.mxu1 %v2766_v44  ;;  %v2492_v37 = vadd.f32 %v6434_v13, %v2472_v12  ;;  %v1487_v44 = vadd.f32 %v6334_v63, %v1228_v62  ;;  %v3162_v12 = vld [vmem:[#allocation6 + $0x2e0] sm:$0xff]  ;;  %v3161_v62 = vld [vmem:[#allocation6 + $0x2d8] sm:$0xff] }
 0x2f5   : > { %v2150_v1 = vadd.f32 %v2122_v56, %v1980_v61  ;;  %v7858_v63 = vld [vmem:[#allocation63_spill] sm:$0xff]  ;;  %3169 = vmatpush.msra.mxu0 %v3162_v12  ;;  %3296 = vmatpush.msra.mxu1 %v3295_v36 }
 0x2f6   : > { %v6560_v26 = vmax.f32 %v2492_v37, 0.0  ;;  %v1657_v18 = vadd.f32 %v6338_v60, %v1487_v44  ;;  %v7861_v44 = vld [vmem:[#allocation30_spill] sm:$0xff] }
 0x2f7   : > { %v6562_v22 = vld [vmem:[#allocation3 + $0x48] sm:$0xff]  ;;  %3170 = vmatpush.msra.mxu0 %v3161_v62  ;;  %v7863_v62 = vld [vmem:[#allocation53_spill] sm:$0xff] }
 0x2f8   : > { %v6564_v11 = vld [vmem:[#allocation3 + $0x42] sm:$0xff]  ;;  %2524 = vst [vmem:[#allocation3 + $0x51] sm:$0xff] %v6560_v26  ;;  %v2557_v21 = vmul.f32 %v6562_v22, %v7855_v39  ;;  %v2896_v7 = vmul.f32 %v6562_v22, %v7850_v30  ;;  %2659 = vmatmul.f32.gmra.mxu3 %v6560_v26  ;;  %v1811_v10 = vadd.f32 %v7858_v63, %v1657_v18  ;;  %v7862_v18 = vld [vmem:[#allocation52_spill] sm:$0xff] }
 0x2f9   : > { %v2767_v40 = vmul.f32 %v6564_v11, %v5866_v23  ;;  %v2443_v20 = vpop.f32.mrf.mxu2  ;;  %v1488_v12 = vadd.f32 %v7862_v18, %v1231_v4  ;;  %v7865_v4 = vld [vmem:[#allocation54_spill] sm:$0xff] }
 0x2fa   : > { %v2473_v45 = vadd.f32 %v2443_v20, %v2303_v57 }
 0x2fb   : > { %2721 = vmatmul.f32.gmra.mxu0 %v2557_v21  ;;  %2959 = vmatmul.f32.gmra.mxu2 %v2896_v7  ;;  %v2304_v21 = vadd.f32 %v2276_v34, %v2150_v1  ;;  %v3160_v7 = vld [vmem:[#allocation6 + $0x2d0] sm:$0xff]  ;;  %v3021_v1 = vld [vmem:[#allocation6 + $0x208] sm:$0xff]  ;;  %v1658_v36 = vadd.f32 %v7863_v62, %v1488_v12  ;;  %v2282_v12 = vpop.f32.mrf.mxu1  ;;  %v7872_v62 = vld [vmem:[#allocation55_spill] sm:$0xff] }
 0x2fc   : > { %2832 = vmatmul.f32.gmra.mxu1 %v2767_v40  ;;  %v2493_v37 = vadd.f32 %v6434_v13, %v2473_v45  ;;  %v3294_v34 = vld [vmem:[#allocation6 + $0x370] sm:$0xff]  ;;  %v3159_v45 = vld [vmem:[#allocation6 + $0x2c8] sm:$0xff]  ;;  %3171 = vmatpush.msra.mxu0 %v3160_v7 }
 0x2fd   : > { %3297 = vmatpush.msra.mxu1 %v3294_v34  ;;  %3050 = vmatpush.msrb.mxu3 %v3021_v1  ;;  %v7866_v34 = vld [vmem:[#allocation64_spill] sm:$0xff]  ;;  %v3156_v1 = vld [vmem:[#allocation6 + $0x2b0] sm:$0xff] }
 0x2fe   : > { %v6580_v57 = vmax.f32 %v2493_v37, 0.0  ;;  %v1981_v37 = vadd.f32 %v1955_v50, %v1811_v10  ;;  %3172 = vmatpush.msra.mxu0 %v3159_v45  ;;  %v7864_v50 = vld [vmem:[#allocation42_spill] sm:$0xff]  ;;  %v1812_v18 = vadd.f32 %v7866_v34, %v1658_v36  ;;  %v3407_v34 = vld [vmem:[#allocation6 + $0x3e8] sm:$0xff] }
 0x2ff   : > { %v6582_v60 = vld [vmem:[#allocation3 + $0x50] sm:$0xff]  ;;  %3298 = vmatpush.msra.mxu1 %v3293_v6  ;;  %v1234_v10 = vadd.f32 %v7865_v4, %v7864_v50 }
 0x300   : > { %7859 = vst [vmem:[#allocation22_spill] sm:$0xff] %v6580_v57  ;;  %v6584_v40 = vld [vmem:[#allocation3 + $0x4a] sm:$0xff]  ;;  %v2558_v56 = vmul.f32 %v6582_v60, %v7860_v28  ;;  %v2897_v20 = vmul.f32 %v6582_v60, %v7853_v49  ;;  %2662 = vmatmul.f32.gmra.mxu3 %v6580_v57  ;;  %v2151_v7 = vadd.f32 %v2125_v3, %v1981_v37 }
 0x301   : > { %2525 = vst [vmem:[#allocation3 + $0x59] sm:$0xff] %v6580_v57  ;;  %v2768_v61 = vmul.f32 %v6584_v40, %v7861_v44  ;;  %v2446_v17 = vpop.f32.mrf.mxu2  ;;  %v3158_v49 = vld [vmem:[#allocation6 + $0x2c0] sm:$0xff]  ;;  %v2128_v57 = vpop.f32.mrf.mxu0  ;;  %v7871_v37 = vld [vmem:[#allocation32_spill] sm:$0xff]  ;;  %v1489_v36 = vadd.f32 %v7872_v62, %v1234_v10  ;;  %v1982_v50 = vadd.f32 %v1958_v58, %v1812_v18  ;;  %v7874_v18 = vld [vmem:[#allocation46_spill] sm:$0xff] }
 0x302   : > { %v2474_v63 = vadd.f32 %v2446_v17, %v2304_v21  ;;  %v3292_v44 = vld [vmem:[#allocation6 + $0x360] sm:$0xff]  ;;  %3173 = vmatpush.msra.mxu0 %v3158_v49  ;;  %v3157_v21 = vld [vmem:[#allocation6 + $0x2b8] sm:$0xff]  ;;  %v2305_v45 = vadd.f32 %v2279_v19, %v2151_v7  ;;  %v3290_v19 = vld [vmem:[#allocation6 + $0x350] sm:$0xff] }
 0x303   : > { %2724 = vmatmul.f32.gmra.mxu0 %v2558_v56  ;;  %2962 = vmatmul.f32.gmra.mxu2 %v2897_v20  ;;  %v3291_v56 = vld [vmem:[#allocation6 + $0x358] sm:$0xff]  ;;  %v7870_v3 = vld [vmem:[#allocation31_spill] sm:$0xff]  ;;  %v3155_v7 = vld [vmem:[#allocation6 + $0x2a8] sm:$0xff]  ;;  %v2152_v62 = vadd.f32 %v2128_v57, %v1982_v50 }
 0x304   : > { %2835 = vmatmul.f32.gmra.mxu1 %v2768_v61  ;;  %v2494_v30 = vadd.f32 %v6434_v13, %v2474_v63  ;;  %v3409_v61 = vld [vmem:[#allocation6 + $0x3f8] sm:$0xff]  ;;  %3174 = vmatpush.msra.mxu0 %v3157_v21  ;;  %v1961_v21 = vpop.f32.mrf.mxu3  ;;  %v3288_v58 = vld [vmem:[#allocation6 + $0x340] sm:$0xff]  ;;  %v7879_v57 = vld [vmem:[#allocation33_spill] sm:$0xff] }
 0x305   : > { %3299 = vmatpush.msra.mxu1 %v3292_v44  ;;  %3410 = vmatpush.msra.mxu2 %v3409_v61  ;;  %v3408_v44 = vld [vmem:[#allocation6 + $0x3f0] sm:$0xff]  ;;  %v7881_v50 = vld [vmem:[#allocation58_spill] sm:$0xff] }
 0x306   : > { %v6600_v20 = vmax.f32 %v2494_v30, 0.0  ;;  %3175 = vmatpush.msra.mxu0 %v3156_v1  ;;  %v7875_v1 = vld [vmem:[#allocation57_spill] sm:$0xff] }
 0x307   : > { %3300 = vmatpush.msra.mxu1 %v3291_v56  ;;  %3411 = vmatpush.msra.mxu2 %v3408_v44  ;;  %v3154_v56 = vld [vmem:[#allocation6 + $0x2a0] sm:$0xff]  ;;  %v1237_v44 = vadd.f32 %v7875_v1, %v7874_v18  ;;  %v3286_v18 = vld [vmem:[#allocation6 + $0x330] sm:$0xff] }
 0x308   : > { %7867 = vst [vmem:[#allocation48_spill] sm:$0xff] %v6600_v20  ;;  %v6602_v17 = vld [vmem:[#allocation3 + $0x58] sm:$0xff]  ;;  %2665 = vmatmul.f32.gmra.mxu3 %v6600_v20  ;;  %3176 = vmatpush.msra.mxu0 %v3155_v7 }
 0x309   : > { %7868 = vst [vmem:[#allocation50_spill] sm:$0xff] %v6602_v17  ;;  %v6604_v6 = vld [vmem:[#allocation3 + $0x52] sm:$0xff]  ;;  %v2559_v49 = vmul.f32 %v6602_v17, %v7870_v3  ;;  %v2898_v30 = vmul.f32 %v6602_v17, %v7855_v39  ;;  %v2449_v4 = vpop.f32.mrf.mxu2  ;;  %3301 = vmatpush.msra.mxu1 %v3290_v19  ;;  %3412 = vmatpush.msra.mxu2 %v3407_v34  ;;  %v3405_v19 = vld [vmem:[#allocation6 + $0x3d8] sm:$0xff] }
 0x30a   : > { %7869 = vst [vmem:[#allocation49_spill] sm:$0xff] %v6604_v6  ;;  %v2769_v63 = vmul.f32 %v6604_v6, %v7871_v37  ;;  %v2475_v61 = vadd.f32 %v2449_v4, %v2305_v45  ;;  %v3289_v37 = vld [vmem:[#allocation6 + $0x348] sm:$0xff]  ;;  %v3020_v6 = vld [vmem:[#allocation6 + $0x200] sm:$0xff]  ;;  %v7876_v45 = vld [vmem:[#allocation65_spill] sm:$0xff]  ;;  %v2131_v4 = vpop.f32.mrf.mxu0  ;;  %3177 = vmatpush.msra.mxu0 %v3154_v56  ;;  %v1490_v56 = vadd.f32 %v7881_v50, %v1237_v44 }
 0x30b   : > { %2526 = vst [vmem:[#allocation3 + $0x61] sm:$0xff] %v6600_v20  ;;  %2727 = vmatmul.f32.gmra.mxu0 %v2559_v49  ;;  %v7873_v39 = vld [vmem:[#allocation56_spill] sm:$0xff]  ;;  %2965 = vmatmul.f32.gmra.mxu2 %v2898_v30  ;;  %v3406_v20 = vld [vmem:[#allocation6 + $0x3e0] sm:$0xff]  ;;  %v3287_v30 = vld [vmem:[#allocation6 + $0x338] sm:$0xff] }
 0x30c   : > { %2838 = vmatmul.f32.gmra.mxu1 %v2769_v63  ;;  %v1659_v17 = vadd.f32 %v7873_v39, %v1489_v36  ;;  %v2495_v10 = vadd.f32 %v6434_v13, %v2475_v61  ;;  %3051 = vmatpush.msrb.mxu3 %v3020_v6  ;;  %v3153_v63 = vld [vmem:[#allocation6 + $0x298] sm:$0xff]  ;;  %v2306_v36 = vadd.f32 %v2282_v12, %v2152_v62  ;;  %v2285_v61 = vpop.f32.mrf.mxu1  ;;  %v3152_v12 = vld [vmem:[#allocation6 + $0x290] sm:$0xff] }
 0x30d   : > { %3302 = vmatpush.msra.mxu1 %v3289_v37  ;;  %3413 = vmatpush.msra.mxu2 %v3406_v20  ;;  %v7880_v6 = vld [vmem:[#allocation34_spill] sm:$0xff]  ;;  %v3404_v1 = vld [vmem:[#allocation6 + $0x3d0] sm:$0xff] }
 0x30e   : > { %v1813_v49 = vadd.f32 %v7876_v45, %v1659_v17  ;;  %v6620_v39 = vmax.f32 %v2495_v10, 0.0  ;;  %3178 = vmatpush.msra.mxu0 %v3153_v63  ;;  %v3151_v45 = vld [vmem:[#allocation6 + $0x288] sm:$0xff] }
 0x30f   : > { %3303 = vmatpush.msra.mxu1 %v3288_v58  ;;  %3414 = vmatpush.msra.mxu2 %v3405_v19  ;;  %v3403_v63 = vld [vmem:[#allocation6 + $0x3c8] sm:$0xff] }
 0x310   : > { %7877 = vst [vmem:[#allocation35_spill] sm:$0xff] %v6620_v39  ;;  %2668 = vmatmul.f32.gmra.mxu3 %v6620_v39  ;;  %v1983_v10 = vadd.f32 %v1961_v21, %v1813_v49  ;;  %3179 = vmatpush.msra.mxu0 %v3152_v12  ;;  %v3150_v21 = vld [vmem:[#allocation6 + $0x280] sm:$0xff]  ;;  %v7883_v49 = vld [vmem:[#allocation45_spill] sm:$0xff] }
 0x311   : > { %2527 = vst [vmem:[#allocation3 + $0x69] sm:$0xff] %v6620_v39  ;;  %v2452_v58 = vpop.f32.mrf.mxu2  ;;  %3304 = vmatpush.msra.mxu1 %v3287_v30  ;;  %v1964_v39 = vpop.f32.mrf.mxu3  ;;  %3415 = vmatpush.msra.mxu2 %v3404_v1  ;;  %v7884_v30 = vld [vmem:[#allocation60_spill] sm:$0xff]  ;;  %v3402_v12 = vld [vmem:[#allocation6 + $0x3c0] sm:$0xff] }
 0x312   : > { %v6622_v7 = vld [vmem:[#allocation3 + $0x60] sm:$0xff]  ;;  %v2476_v62 = vadd.f32 %v2452_v58, %v2306_v36  ;;  %v1240_v19 = vadd.f32 %v7884_v30, %v7883_v49  ;;  %v2153_v36 = vadd.f32 %v2131_v4, %v1983_v10  ;;  %3180 = vmatpush.msra.mxu0 %v3151_v45  ;;  %v7886_v4 = vld [vmem:[#allocation37_spill] sm:$0xff] }
 0x313   : > { %v6624_v34 = vld [vmem:[#allocation3 + $0x5a] sm:$0xff]  ;;  %v2560_v17 = vmul.f32 %v6622_v7, %v7879_v57  ;;  %v2899_v20 = vmul.f32 %v6622_v7, %v7860_v28  ;;  %v3285_v28 = vld [vmem:[#allocation6 + $0x328] sm:$0xff]  ;;  %3305 = vmatpush.msra.mxu1 %v3286_v18  ;;  %3416 = vmatpush.msra.mxu2 %v3403_v63  ;;  %v2134_v18 = vpop.f32.mrf.mxu0 }
 0x314   : > { %7878 = vst [vmem:[#allocation39_spill] sm:$0xff] %v6624_v34  ;;  %v2770_v37 = vmul.f32 %v6624_v34, %v7880_v6  ;;  %v3539_v6 = vld [vmem:[#allocation6 + $0x478] sm:$0xff]  ;;  %v7882_v34 = vld [vmem:[#allocation59_spill] sm:$0xff]  ;;  %v2496_v44 = vadd.f32 %v6434_v13, %v2476_v62  ;;  %v2307_v50 = vadd.f32 %v2285_v61, %v2153_v36  ;;  %3181 = vmatpush.msra.mxu0 %v3150_v21  ;;  %v7887_v10 = vld [vmem:[#allocation61_spill] sm:$0xff] }
 0x315   : > { %2730 = vmatmul.f32.gmra.mxu0 %v2560_v17  ;;  %v1660_v23 = vadd.f32 %v7882_v34, %v1490_v56  ;;  %2968 = vmatmul.f32.gmra.mxu2 %v2899_v20  ;;  %v3538_v34 = vld [vmem:[#allocation6 + $0x470] sm:$0xff]  ;;  %v3283_v61 = vld [vmem:[#allocation6 + $0x318] sm:$0xff]  ;;  %v1491_v1 = vadd.f32 %v7887_v10, %v1240_v19  ;;  %v3399_v19 = vld [vmem:[#allocation6 + $0x3a8] sm:$0xff] }
 0x316   : > { %2841 = vmatmul.f32.gmra.mxu1 %v2770_v37  ;;  %3540 = vmatpush.msra.mxu3 %v3539_v6  ;;  %v3284_v37 = vld [vmem:[#allocation6 + $0x320] sm:$0xff]  ;;  %v6640_v20 = vmax.f32 %v2496_v44, 0.0  ;;  %v3401_v63 = vld [vmem:[#allocation6 + $0x3b8] sm:$0xff]  ;;  %v2288_v44 = vpop.f32.mrf.mxu1  ;;  %v3282_v49 = vld [vmem:[#allocation6 + $0x310] sm:$0xff] }
 0x317   : > { %v1814_v17 = vadd.f32 %v6414_v54, %v1660_v23  ;;  %3306 = vmatpush.msra.mxu1 %v3285_v28  ;;  %v7885_v23 = vld [vmem:[#allocation36_spill] sm:$0xff]  ;;  %3417 = vmatpush.msra.mxu2 %v3402_v12  ;;  %v7888_v30 = vld [vmem:[#allocation62_spill] sm:$0xff]  ;;  %v7890_v10 = vld [vmem:[#allocation41_spill] sm:$0xff] }
 0x318   : > { %v6642_v56 = vld [vmem:[#allocation3 + $0x68] sm:$0xff]  ;;  %3541 = vmatpush.msra.mxu3 %v3538_v34  ;;  %2528 = vst [vmem:[#allocation3 + $0x71] sm:$0xff] %v6640_v20  ;;  %v1661_v36 = vadd.f32 %v7888_v30, %v1491_v1  ;;  %v3400_v34 = vld [vmem:[#allocation6 + $0x3b0] sm:$0xff] }
 0x319   : > { %v6644_v58 = vld [vmem:[#allocation3 + $0x62] sm:$0xff]  ;;  %v2561_v54 = vmul.f32 %v6642_v56, %v7885_v23  ;;  %v2900_v28 = vmul.f32 %v6642_v56, %v7870_v3  ;;  %2671 = vmatmul.f32.gmra.mxu3 %v6640_v20  ;;  %3307 = vmatpush.msra.mxu1 %v3284_v37  ;;  %v1984_v62 = vadd.f32 %v1964_v39, %v1814_v17  ;;  %v2455_v45 = vpop.f32.mrf.mxu2  ;;  %v3281_v37 = vld [vmem:[#allocation6 + $0x308] sm:$0xff]  ;;  %v1967_v17 = vpop.f32.mrf.mxu3 }
 0x31a   : > { %v2771_v6 = vmul.f32 %v6644_v58, %v7886_v4  ;;  %v2477_v21 = vadd.f32 %v2455_v45, %v2307_v50  ;;  %3418 = vmatpush.msra.mxu2 %v3401_v63  ;;  %v1815_v39 = vadd.f32 %v6423_v38, %v1661_v36  ;;  %v3280_v50 = vld [vmem:[#allocation6 + $0x300] sm:$0xff] }
 0x31b   : > { %3308 = vmatpush.msra.mxu1 %v3283_v61  ;;  %v2154_v4 = vadd.f32 %v2134_v18, %v1984_v62  ;;  %v7889_v61 = vld [vmem:[#allocation40_spill] sm:$0xff]  ;;  %v3398_v45 = vld [vmem:[#allocation6 + $0x3a0] sm:$0xff]  ;;  %v2137_v63 = vpop.f32.mrf.mxu0 }
 0x31c   : > { %v2497_v3 = vadd.f32 %v6434_v13, %v2477_v21  ;;  %3419 = vmatpush.msra.mxu2 %v3400_v34  ;;  %v1985_v1 = vadd.f32 %v1967_v17, %v1815_v39  ;;  %v3397_v21 = vld [vmem:[#allocation6 + $0x398] sm:$0xff]  ;;  %v3396_v34 = vld [vmem:[#allocation6 + $0x390] sm:$0xff] }
 0x31d   : > { %2733 = vmatmul.f32.gmra.mxu0 %v2561_v54  ;;  %2971 = vmatmul.f32.gmra.mxu2 %v2900_v28  ;;  %v2308_v54 = vadd.f32 %v2288_v44, %v2154_v4  ;;  %v3537_v4 = vld [vmem:[#allocation6 + $0x468] sm:$0xff] }
 0x31e   : > { %2844 = vmatmul.f32.gmra.mxu1 %v2771_v6  ;;  %v6658_v12 = vmax.f32 %v2497_v3, 0.0  ;;  %3420 = vmatpush.msra.mxu2 %v3399_v19  ;;  %v2155_v36 = vadd.f32 %v2137_v63, %v1985_v1  ;;  %v3394_v63 = vld [vmem:[#allocation6 + $0x380] sm:$0xff] }
 0x31f   : > { %3309 = vmatpush.msra.mxu1 %v3282_v49  ;;  %v6660_v6 = vld [vmem:[#allocation3 + $0x70] sm:$0xff]  ;;  %3542 = vmatpush.msra.mxu3 %v3537_v4  ;;  %v2291_v49 = vpop.f32.mrf.mxu1 }
 0x320   : > { %v6662_v28 = vld [vmem:[#allocation3 + $0x6a] sm:$0xff]  ;;  %2529 = vst [vmem:[#allocation3 + $0x79] sm:$0xff] %v6658_v12  ;;  %v2562_v18 = vmul.f32 %v6660_v6, %v7889_v61  ;;  %v2901_v3 = vmul.f32 %v6660_v6, %v7879_v57  ;;  %3421 = vmatpush.msra.mxu2 %v3398_v45  ;;  %v2309_v39 = vadd.f32 %v2291_v49, %v2155_v36 }
 0x321   : > { %3310 = vmatpush.msra.mxu1 %v3281_v37  ;;  %v2772_v38 = vmul.f32 %v6662_v28, %v7890_v10  ;;  %2674 = vmatmul.f32.gmra.mxu3 %v6658_v12  ;;  %v2458_v62 = vpop.f32.mrf.mxu2  ;;  %v6687_v4 = vpop.f32.mrf.mxu3 }
 0x322   : > { %v2478_v44 = vadd.f32 %v2458_v62, %v2308_v54  ;;  %3422 = vmatpush.msra.mxu2 %v3397_v21  ;;  %v3395_v62 = vld [vmem:[#allocation6 + $0x388] sm:$0xff] }
 0x323   : > { %3311 = vmatpush.msra.mxu1 %v3280_v50  ;;  %v7891_v50 = vld [vmem:[#allocation44_spill] sm:$0xff] }
 0x324   : > { %v2498_v30 = vadd.f32 %v6434_v13, %v2478_v44  ;;  %3423 = vmatpush.msra.mxu2 %v3396_v34  ;;  %v7892_v34 = vld [vmem:[#allocation12_spill] sm:$0xff] }
 0x325   : > { %2736 = vmatmul.f32.gmra.mxu0 %v2562_v18  ;;  %2974 = vmatmul.f32.gmra.mxu2 %v2901_v3  ;;  %v3536_v3 = vld [vmem:[#allocation6 + $0x460] sm:$0xff] }
 0x326   : > { %2847 = vmatmul.f32.gmra.mxu1 %v2772_v38  ;;  %v6673_v37 = vmax.f32 %v2498_v30, 0.0  ;;  %3543 = vmatpush.msra.mxu3 %v3536_v3 }
 0x327   : > { %v6675_v19 = vld [vmem:[#allocation3 + $0x78] sm:$0xff]  ;;  %3424 = vmatpush.msra.mxu2 %v3395_v62 }
 0x328   : > { %v6677_v17 = vld [vmem:[#allocation3 + $0x72] sm:$0xff]  ;;  %2530 = vst [vmem:[#allocation3 + $0x81] sm:$0xff] %v6673_v37  ;;  %v2563_v54 = vmul.f32 %v6675_v19, %v7891_v50  ;;  %v2902_v38 = vmul.f32 %v6675_v19, %v7885_v23 }
 0x329   : > { %v2773_v18 = vmul.f32 %v6677_v17, %v7826_v16  ;;  %3052 = vmatmul.f32.vlgmr.msrb.gmra.mxu3 %v6437_v32  ;;  %v2461_v1 = vpop.f32.mrf.mxu2  ;;  %3425 = vmatpush.msra.mxu2 %v3394_v63  ;;  %v3534_v62 = vld [vmem:[#allocation6 + $0x450] sm:$0xff] }
 0x32a   : > { %v2479_v45 = vadd.f32 %v2461_v1, %v2309_v39  ;;  %v3133_v39 = vmul.f32 %v6456_v31, %v7892_v34  ;;  %v3134_v31 = vmul.f32 %v6470_v24, %v5702_v55  ;;  %v3264_v24 = vmul.f32 %v6485_v8, %v5664_v25  ;;  %v7893_v8 = vld [vmem:[#allocation66_spill] sm:$0xff] }
 0x32c   : > { %v2499_v44 = vadd.f32 %v6434_v13, %v2479_v45  ;;  %v3535_v13 = vld [vmem:[#allocation6 + $0x458] sm:$0xff] }
 0x32d   : > { %2739 = vmatmul.f32.gmra.mxu0 %v2563_v54  ;;  %2977 = vmatmul.f32.gmra.mxu2 %v2902_v38  ;;  %v6704_v54 = vpop.f32.mrf.mxu0  ;;  %v6708_v38 = vpop.f32.mrf.mxu1 }
 0x32e   : > { %2850 = vmatmul.f32.gmra.mxu1 %v2773_v18  ;;  %v6690_v21 = vmax.f32 %v2499_v44, 0.0  ;;  %3544 = vmatpush.msra.mxu3 %v3535_v13  ;;  %v6706_v18 = vpop.f32.mrf.mxu3 }
 0x32f   : > { %v6692_v49 = vld [vmem:[#allocation3 + $0x7a] sm:$0xff] }
 0x330   : > { %v6694_v32 = vld [vmem:[#allocation3 + $0x80] sm:$0xff]  ;;  %2531 = vst [vmem:[#allocation3 + $0x89] sm:$0xff] %v6690_v21  ;;  %v2774_v30 = vmul.f32 %v6692_v49, %v6039_v59  ;;  %3545 = vmatpush.msra.mxu3 %v3534_v62 }
 0x331   : > { %v2903_v36 = vmul.f32 %v6694_v32, %v7889_v61  ;;  %3055 = vmatmul.f32.gmra.mxu3 %v6445_v27  ;;  %v3263_v27 = vmul.f32 %v6468_v41, %v5647_v9  ;;  %v3533_v41 = vld [vmem:[#allocation6 + $0x448] sm:$0xff] }
 0x332   : > { %3546 = vmatpush.msra.mxu3 %v3533_v41  ;;  %v7895_v41 = vld [vmem:[#allocation21_spill] sm:$0xff] }
 0x333   : > { %v3137_v25 = vmul.f32 %v6523_v53, %v7895_v41  ;;  %v7899_v41 = vld [vmem:[#allocation18_spill] sm:$0xff] }
 0x335   : > { %3182 = vmatmul.f32.vlgmr.msra.gmra.mxu0 %v3133_v39  ;;  %2980 = vmatmul.f32.gmra.mxu2 %v2903_v36  ;;  %v6719_v63 = vpop.f32.mrf.mxu0 }
 0x336   : > { %2853 = vmatmul.f32.gmra.mxu1 %v2774_v30  ;;  %v3135_v30 = vmul.f32 %v6487_v48, %v5720_v2  ;;  %v3265_v48 = vmul.f32 %v6501_v0, %v5700_v52  ;;  %v7897_v0 = vld [vmem:[#allocation67_spill] sm:$0xff]  ;;  %v3531_v52 = vld [vmem:[#allocation6 + $0x438] sm:$0xff] }
 0x337   : > { %v6710_v3 = vld [vmem:[#allocation3 + $0x88] sm:$0xff] }
 0x338   : > { %v2904_v1 = vmul.f32 %v6710_v3, %v7891_v50 }
 0x339   : > { %3058 = vmatmul.f32.gmra.mxu3 %v6454_v43 }
 0x33b   : > { %v2636_v45 = vpop.f32.mrf.mxu3 }
 0x33d   : > { %3185 = vmatmul.f32.gmra.mxu0 %v3134_v31  ;;  %2983 = vmatmul.f32.gmra.mxu2 %v2904_v1  ;;  %v3136_v31 = vmul.f32 %v6503_v29, %v5741_v14  ;;  %v7896_v29 = vld [vmem:[#allocation16_spill] sm:$0xff] }
 0x33e   : > { %3312 = vmatmul.f32.vlgmr.msra.gmra.mxu1 %v3263_v27  ;;  %v3532_v27 = vld [vmem:[#allocation6 + $0x440] sm:$0xff]  ;;  %v3266_v14 = vmul.f32 %v6521_v46, %v7896_v29  ;;  %v3267_v46 = vmul.f32 %v6542_v42, %v7899_v41 }
 0x33f   : > { %v2701_v39 = vpop.f32.mrf.mxu0  ;;  %3547 = vmatpush.msra.mxu3 %v3532_v27 }
 0x340   : > { %v6721_v44 = vpop.f32.mrf.mxu1 }
 0x341   : > { %3061 = vmatmul.f32.gmra.mxu3 %v6466_v35 }
 0x342   : > { %3548 = vmatpush.msra.mxu3 %v3531_v52  ;;  %v3530_v52 = vld [vmem:[#allocation6 + $0x430] sm:$0xff] }
 0x343   : > { %v2639_v36 = vpop.f32.mrf.mxu3 }
 0x344   : > { %3549 = vmatpush.msra.mxu3 %v3530_v52 }
 0x345   : > { %3188 = vmatmul.f32.gmra.mxu0 %v3135_v30  ;;  %3426 = vmatmul.f32.vlgmr.msra.gmra.mxu2 %v6454_v43  ;;  %v6729_v13 = vpop.f32.mrf.mxu2 }
 0x346   : > { %3315 = vmatmul.f32.gmra.mxu1 %v3264_v24 }
 0x347   : > { %v2704_v62 = vpop.f32.mrf.mxu0 }
 0x348   : > { %v2815_v1 = vpop.f32.mrf.mxu1 }
 0x349   : > { %3064 = vmatmul.f32.gmra.mxu3 %v7893_v8 }
 0x34b   : > { %v2642_v43 = vpop.f32.mrf.mxu3 }
 0x34d   : > { %3191 = vmatmul.f32.gmra.mxu0 %v3136_v31  ;;  %3429 = vmatmul.f32.gmra.mxu2 %v6466_v35  ;;  %v6737_v30 = vpop.f32.mrf.mxu2  ;;  %v2702_v31 = vadd.f32 %v2701_v39, %v2636_v45 }
 0x34e   : > { %3318 = vmatmul.f32.gmra.mxu1 %v3265_v48  ;;  %7894 = vst [vmem:[#allocation38_spill] sm:$0xff] %v6737_v30  ;;  %v7898_v30 = vld [vmem:[#allocation23_spill] sm:$0xff] }
 0x34f   : > { %v2859_v48 = vadd.f32 %v2815_v1, %v2702_v31  ;;  %v2707_v2 = vpop.f32.mrf.mxu0  ;;  %v3138_v53 = vmul.f32 %v6544_v47, %v7898_v30  ;;  %v7900_v31 = vld [vmem:[#allocation25_spill] sm:$0xff] }
 0x350   : > { %v2818_v24 = vpop.f32.mrf.mxu1  ;;  %v3139_v47 = vmul.f32 %v6564_v11, %v7900_v31  ;;  %v3140_v11 = vmul.f32 %v6584_v40, %v5841_v5  ;;  %v7902_v40 = vld [vmem:[#allocation28_spill] sm:$0xff] }
 0x351   : > { %3067 = vmatmul.f32.gmra.mxu3 %v7897_v0 }
 0x353   : > { %v2645_v35 = vpop.f32.mrf.mxu3 }
 0x355   : > { %3194 = vmatmul.f32.gmra.mxu0 %v3137_v25  ;;  %3432 = vmatmul.f32.gmra.mxu2 %v7893_v8  ;;  %v2945_v27 = vpop.f32.mrf.mxu2 }
 0x356   : > { %3321 = vmatmul.f32.gmra.mxu1 %v3266_v14  ;;  %v6745_v9 = vadd.f32 %v2945_v27, %v2859_v48  ;;  %v2705_v14 = vadd.f32 %v2704_v62, %v2639_v36  ;;  %v7901_v48 = vld [vmem:[#allocation20_spill] sm:$0xff]  ;;  %v2708_v36 = vadd.f32 %v2707_v2, %v2642_v43 }
 0x357   : > { %v3268_v42 = vmul.f32 %v6562_v22, %v7901_v48  ;;  %v3529_v27 = vld [vmem:[#allocation6 + $0x428] sm:$0xff]  ;;  %v3269_v22 = vmul.f32 %v6582_v60, %v7847_v33 }
 0x358   : > { %v2821_v25 = vpop.f32.mrf.mxu1  ;;  %v2860_v39 = vadd.f32 %v2818_v24, %v2705_v14  ;;  %3550 = vmatpush.msra.mxu3 %v3529_v27  ;;  %v3528_v14 = vld [vmem:[#allocation6 + $0x420] sm:$0xff]  ;;  %v7904_v60 = vld [vmem:[#allocation24_spill] sm:$0xff] }
 0x359   : > { %3070 = vmatmul.f32.gmra.mxu3 %v6519_v15 }
 0x35a   : > { %3551 = vmatpush.msra.mxu3 %v3528_v14 }
 0x35b   : > { %v2648_v45 = vpop.f32.mrf.mxu3 }
 0x35d   : > { %3197 = vmatmul.f32.gmra.mxu0 %v3138_v53  ;;  %3435 = vmatmul.f32.gmra.mxu2 %v7897_v0  ;;  %v2948_v1 = vpop.f32.mrf.mxu2  ;;  %v2710_v53 = vpop.f32.mrf.mxu0  ;;  %v2861_v0 = vadd.f32 %v2821_v25, %v2708_v36  ;;  %v7905_v36 = vld [vmem:[#allocation50_spill] sm:$0xff] }
 0x35e   : > { %3324 = vmatmul.f32.gmra.mxu1 %v3267_v46  ;;  %v6753_v8 = vadd.f32 %v2948_v1, %v2860_v39  ;;  %v2711_v2 = vadd.f32 %v2710_v53, %v2645_v35 }
 0x361   : > { %3073 = vmatmul.f32.gmra.mxu3 %v6540_v51  ;;  %v2824_v24 = vpop.f32.mrf.mxu1 }
 0x362   : > { %v2862_v25 = vadd.f32 %v2824_v24, %v2711_v2 }
 0x363   : > { %v2651_v62 = vpop.f32.mrf.mxu3 }
 0x365   : > { %3200 = vmatmul.f32.gmra.mxu0 %v3139_v47  ;;  %3438 = vmatmul.f32.gmra.mxu2 %v6519_v15  ;;  %v2713_v43 = vpop.f32.mrf.mxu0 }
 0x366   : > { %3327 = vmatmul.f32.gmra.mxu1 %v3268_v42  ;;  %v2951_v46 = vpop.f32.mrf.mxu2  ;;  %v7903_v42 = vld [vmem:[#allocation49_spill] sm:$0xff] }
 0x367   : > { %v6761_v52 = vadd.f32 %v2951_v46, %v2861_v0  ;;  %v3141_v27 = vmul.f32 %v7903_v42, %v7902_v40  ;;  %v3270_v0 = vmul.f32 %v7905_v36, %v7904_v60  ;;  %v7906_v46 = vld [vmem:[#allocation22_spill] sm:$0xff] }
 0x368   : > { %v7909_v36 = vld [vmem:[#allocation26_spill] sm:$0xff] }
 0x369   : > { %3076 = vmatmul.f32.gmra.mxu3 %v6560_v26  ;;  %v2827_v39 = vpop.f32.mrf.mxu1  ;;  %v3271_v60 = vmul.f32 %v6622_v7, %v7909_v36  ;;  %v3752_v7 = vld [vmem:[#allocation8 + $0xf0] sm:$0xff]  ;;  %v7911_v36 = vld [vmem:[#allocation32_spill] sm:$0xff] }
 0x36b   : > { %v2654_v15 = vpop.f32.mrf.mxu3 }
 0x36d   : > { %3203 = vmatmul.f32.gmra.mxu0 %v3140_v11  ;;  %3441 = vmatmul.f32.gmra.mxu2 %v6540_v51  ;;  %v3527_v11 = vld [vmem:[#allocation6 + $0x418] sm:$0xff]  ;;  %v2714_v51 = vadd.f32 %v2713_v43, %v2648_v45  ;;  %v2716_v24 = vpop.f32.mrf.mxu0 }
 0x36e   : > { %3330 = vmatmul.f32.gmra.mxu1 %v3269_v22  ;;  %v2954_v1 = vpop.f32.mrf.mxu2  ;;  %3552 = vmatpush.msra.mxu3 %v3527_v11  ;;  %v7910_v11 = vld [vmem:[#allocation48_spill] sm:$0xff]  ;;  %v3753_v43 = vld [vmem:[#allocation8 + $0xf8] sm:$0xff] }
 0x36f   : > { %v6769_v47 = vadd.f32 %v2954_v1, %v2862_v25  ;;  %v2863_v53 = vadd.f32 %v2827_v39, %v2714_v51  ;;  %v7907_v25 = vld [vmem:[#allocation30_spill] sm:$0xff]  ;;  %v7908_v1 = vld [vmem:[#allocation39_spill] sm:$0xff]  ;;  %3754 = vmatpush.msrb.mxu0 %v3753_v43  ;;  %v3718_v43 = vld [vmem:[#allocation8 + $0x68] sm:$0xff] }
 0x370   : > { %v3142_v42 = vmul.f32 %v7908_v1, %v7907_v25  ;;  %v3720_v39 = vld [vmem:[#allocation8 + $0x78] sm:$0xff] }
 0x371   : > { %3079 = vmatmul.f32.gmra.mxu3 %v7906_v46  ;;  %v2830_v2 = vpop.f32.mrf.mxu1  ;;  %3819 = vmatpush.msrb.mxu1 %v3720_v39 }
 0x372   : > { %3755 = vmatpush.msrb.mxu0 %v3752_v7 }
 0x373   : > { %v6777_v35 = vpop.f32.mrf.mxu3 }
 0x375   : > { %3206 = vmatmul.f32.gmra.mxu0 %v3141_v27  ;;  %3444 = vmatmul.f32.gmra.mxu2 %v6560_v26  ;;  %v3526_v27 = vld [vmem:[#allocation6 + $0x410] sm:$0xff]  ;;  %v2717_v26 = vadd.f32 %v2716_v24, %v2651_v62  ;;  %v2719_v1 = vpop.f32.mrf.mxu0  ;;  %v3751_v24 = vld [vmem:[#allocation8 + $0xe8] sm:$0xff] }
 0x376   : > { %3333 = vmatmul.f32.gmra.mxu1 %v3270_v0  ;;  %v2957_v22 = vpop.f32.mrf.mxu2  ;;  %3553 = vmatpush.msra.mxu3 %v3526_v27  ;;  %v3525_v27 = vld [vmem:[#allocation6 + $0x408] sm:$0xff]  ;;  %v2720_v39 = vadd.f32 %v2719_v1, %v2654_v15  ;;  %v3931_v15 = vld [vmem:[#allocation8 + $0x170] sm:$0xff]  ;;  %v7914_v1 = vld [vmem:[#allocation34_spill] sm:$0xff] }
 0x377   : > { %v6779_v14 = vadd.f32 %v2957_v22, %v2863_v53  ;;  %v2864_v0 = vadd.f32 %v2830_v2, %v2717_v26  ;;  %v3719_v22 = vld [vmem:[#allocation8 + $0x70] sm:$0xff]  ;;  %v3750_v26 = vld [vmem:[#allocation8 + $0xe0] sm:$0xff]  ;;  %3756 = vmatpush.msrb.mxu0 %v3751_v24 }
 0x378   : > { %3820 = vmatpush.msrb.mxu1 %v3719_v22  ;;  %3554 = vmatpush.msra.mxu3 %v3525_v27  ;;  %v3716_v22 = vld [vmem:[#allocation8 + $0x58] sm:$0xff] }
 0x379   : > { %3082 = vmatmul.f32.gmra.mxu3 %v7910_v11  ;;  %v2833_v2 = vpop.f32.mrf.mxu1  ;;  %3757 = vmatpush.msrb.mxu0 %v3750_v26  ;;  %v3930_v26 = vld [vmem:[#allocation8 + $0x168] sm:$0xff] }
 0x37a   : > { %3821 = vmatpush.msrb.mxu1 %v3718_v43  ;;  %v2865_v7 = vadd.f32 %v2833_v2, %v2720_v39  ;;  %v3715_v43 = vld [vmem:[#allocation8 + $0x50] sm:$0xff]  ;;  %v3747_v2 = vld [vmem:[#allocation8 + $0xc8] sm:$0xff]  ;;  %v3524_v39 = vld [vmem:[#allocation6 + $0x400] sm:$0xff] }
 0x37b   : > { %v6787_v45 = vpop.f32.mrf.mxu3  ;;  %3555 = vmatpush.msra.mxu3 %v3524_v39  ;;  %v3926_v39 = vld [vmem:[#allocation8 + $0x148] sm:$0xff] }
 0x37d   : > { %3209 = vmatmul.f32.gmra.mxu0 %v3142_v42  ;;  %3447 = vmatmul.f32.gmra.mxu2 %v7906_v46  ;;  %v3143_v42 = vmul.f32 %v6644_v58, %v7911_v36  ;;  %v7913_v46 = vld [vmem:[#allocation35_spill] sm:$0xff] }
 0x37e   : > { %3336 = vmatmul.f32.gmra.mxu1 %v3271_v60  ;;  %v2960_v51 = vpop.f32.mrf.mxu2  ;;  %v7912_v60 = vld [vmem:[#allocation27_spill] sm:$0xff] }
 0x37f   : > { %v6789_v53 = vadd.f32 %v2960_v51, %v2864_v0  ;;  %v3272_v62 = vmul.f32 %v6642_v56, %v7912_v60  ;;  %v3717_v58 = vld [vmem:[#allocation8 + $0x60] sm:$0xff]  ;;  %v3932_v56 = vld [vmem:[#allocation8 + $0x178] sm:$0xff] }
 0x380   : > { %v3749_v51 = vld [vmem:[#allocation8 + $0xd8] sm:$0xff]  ;;  %3933 = vmatpush.msrb.mxu2 %v3932_v56  ;;  %3822 = vmatpush.msrb.mxu1 %v3717_v58  ;;  %v3929_v56 = vld [vmem:[#allocation8 + $0x160] sm:$0xff] }
 0x381   : > { %3085 = vmatmul.f32.gmra.mxu3 %v7913_v46  ;;  %3758 = vmatpush.msrb.mxu0 %v3749_v51  ;;  %v3745_v51 = vld [vmem:[#allocation8 + $0xb8] sm:$0xff] }
 0x382   : > { %3823 = vmatpush.msrb.mxu1 %v3716_v22  ;;  %3934 = vmatpush.msrb.mxu2 %v3931_v15  ;;  %v3928_v22 = vld [vmem:[#allocation8 + $0x158] sm:$0xff] }
 0x383   : > { %v6797_v0 = vpop.f32.mrf.mxu3 }
 0x384   : > { %3824 = vmatpush.msrb.mxu1 %v3715_v43  ;;  %3935 = vmatpush.msrb.mxu2 %v3930_v26  ;;  %v3711_v43 = vld [vmem:[#allocation8 + $0x30] sm:$0xff]  ;;  %v3743_v26 = vld [vmem:[#allocation8 + $0xa8] sm:$0xff] }
 0x385   : > { %3212 = vmatmul.f32.gmra.mxu0 %v3143_v42  ;;  %3450 = vmatmul.f32.gmra.mxu2 %v7910_v11  ;;  %v3748_v42 = vld [vmem:[#allocation8 + $0xd0] sm:$0xff]  ;;  %v3144_v11 = vmul.f32 %v6662_v28, %v7914_v1  ;;  %v3746_v28 = vld [vmem:[#allocation8 + $0xc0] sm:$0xff] }
 0x386   : > { %3339 = vmatmul.f32.gmra.mxu1 %v3272_v62  ;;  %v2963_v60 = vpop.f32.mrf.mxu2  ;;  %v7915_v62 = vld [vmem:[#allocation29_spill] sm:$0xff]  ;;  %3759 = vmatpush.msrb.mxu0 %v3748_v42 }
 0x387   : > { %v6799_v27 = vadd.f32 %v2963_v60, %v2865_v7  ;;  %v3273_v24 = vmul.f32 %v6660_v6, %v7915_v62  ;;  %v3714_v60 = vld [vmem:[#allocation8 + $0x48] sm:$0xff]  ;;  %v3713_v6 = vld [vmem:[#allocation8 + $0x40] sm:$0xff]  ;;  %3936 = vmatpush.msrb.mxu2 %v3929_v56  ;;  %v3712_v7 = vld [vmem:[#allocation8 + $0x38] sm:$0xff] }
 0x388   : > { %3760 = vmatpush.msrb.mxu0 %v3747_v2  ;;  %3825 = vmatpush.msrb.mxu1 %v3714_v60  ;;  %v7917_v42 = vld [vmem:[#allocation37_spill] sm:$0xff]  ;;  %v3925_v56 = vld [vmem:[#allocation8 + $0x140] sm:$0xff] }
 0x389   : > { %3088 = vmatmul.f32.gmra.mxu3 %v6640_v20  ;;  %v3145_v15 = vmul.f32 %v6677_v17, %v7917_v42  ;;  %3937 = vmatpush.msrb.mxu2 %v3928_v22  ;;  %v3927_v2 = vld [vmem:[#allocation8 + $0x150] sm:$0xff]  ;;  %v3710_v17 = vld [vmem:[#allocation8 + $0x28] sm:$0xff]  ;;  %v3924_v22 = vld [vmem:[#allocation8 + $0x138] sm:$0xff] }
 0x38a   : > { %3761 = vmatpush.msrb.mxu0 %v3746_v28  ;;  %3826 = vmatpush.msrb.mxu1 %v3713_v6  ;;  %v3709_v28 = vld [vmem:[#allocation8 + $0x20] sm:$0xff]  ;;  %v3741_v6 = vld [vmem:[#allocation8 + $0x98] sm:$0xff] }
 0x38b   : > { %v6807_v58 = vpop.f32.mrf.mxu3  ;;  %3938 = vmatpush.msrb.mxu2 %v3927_v2  ;;  %v6825_v2 = vld [vmem:[#allocation3 + $0x82] sm:$0xff] }
 0x38c   : > { %7916 = vst [vmem:[#allocation51_spill] sm:$0xff] %v6807_v58  ;;  %3762 = vmatpush.msrb.mxu0 %v3745_v51  ;;  %3827 = vmatpush.msrb.mxu1 %v3712_v7  ;;  %v3146_v51 = vmul.f32 %v6692_v49, %v7890_v10  ;;  %v3708_v7 = vld [vmem:[#allocation8 + $0x18] sm:$0xff]  ;;  %v3923_v49 = vld [vmem:[#allocation8 + $0x130] sm:$0xff] }
 0x38d   : > { %3215 = vmatmul.f32.gmra.mxu0 %v3144_v11  ;;  %3453 = vmatmul.f32.gmra.mxu2 %v7913_v46  ;;  %v7918_v46 = vld [vmem:[#allocation31_spill] sm:$0xff] }
 0x38e   : > { %3342 = vmatmul.f32.gmra.mxu1 %v3273_v24  ;;  %v3274_v11 = vmul.f32 %v6675_v19, %v7918_v46  ;;  %v3744_v24 = vld [vmem:[#allocation8 + $0xb0] sm:$0xff]  ;;  %v3742_v19 = vld [vmem:[#allocation8 + $0xa0] sm:$0xff]  ;;  %3939 = vmatpush.msrb.mxu2 %v3926_v39  ;;  %v4056_v46 = vld [vmem:[#allocation8 + $0x1c8] sm:$0xff] }
 0x38f   : > { %3763 = vmatpush.msrb.mxu0 %v3744_v24  ;;  %3828 = vmatpush.msrb.mxu1 %v3711_v43  ;;  %v3739_v43 = vld [vmem:[#allocation8 + $0x88] sm:$0xff]  ;;  %v3705_v39 = vld [vmem:[#allocation8] sm:$0xff] }
 0x390   : > { %3940 = vmatpush.msrb.mxu2 %v3925_v56 }
 0x391   : > { %3091 = vmatmul.f32.gmra.mxu3 %v6658_v12  ;;  %3764 = vmatpush.msrb.mxu0 %v3743_v26  ;;  %v3922_v26 = vld [vmem:[#allocation8 + $0x128] sm:$0xff] }
 0x392   : > { %3829 = vmatpush.msrb.mxu1 %v3710_v17  ;;  %3941 = vmatpush.msrb.mxu2 %v3924_v22  ;;  %v3738_v17 = vld [vmem:[#allocation8 + $0x80] sm:$0xff]  ;;  %v3919_v22 = vld [vmem:[#allocation8 + $0x110] sm:$0xff] }
 0x393   : > { %v6815_v60 = vpop.f32.mrf.mxu3  ;;  %3765 = vmatpush.msrb.mxu0 %v3742_v19  ;;  %v3276_v19 = vmul.f32 %v6710_v3, %v7885_v23  ;;  %v2696_v3 = vadd.f32 %v6704_v54, %v6687_v4  ;;  %v3492_v54 = vld [vmem:[#allocation3 + $0x2a] sm:$0xff] }
 0x394   : > { %7919 = vst [vmem:[#allocation63_spill] sm:$0xff] %v6815_v60  ;;  %3830 = vmatpush.msrb.mxu1 %v3709_v28  ;;  %3942 = vmatpush.msrb.mxu2 %v3923_v49  ;;  %v3921_v28 = vld [vmem:[#allocation8 + $0x120] sm:$0xff] }
 0x395   : > { %3218 = vmatmul.f32.gmra.mxu0 %v3145_v15  ;;  %3456 = vmatmul.f32.gmra.mxu2 %v6640_v20  ;;  %v3275_v20 = vmul.f32 %v6694_v32, %v7879_v57  ;;  %v3740_v15 = vld [vmem:[#allocation8 + $0x90] sm:$0xff]  ;;  %v3706_v32 = vld [vmem:[#allocation8 + $0x8] sm:$0xff] }
 0x396   : > { %3345 = vmatmul.f32.gmra.mxu1 %v3274_v11  ;;  %3766 = vmatpush.msrb.mxu0 %v3741_v6  ;;  %v3707_v11 = vld [vmem:[#allocation8 + $0x10] sm:$0xff]  ;;  %v3491_v6 = vld [vmem:[#allocation3 + $0x22] sm:$0xff]  ;;  %v3500_v23 = vld [vmem:[#allocation3 + $0x6a] sm:$0xff] }
 0x397   : > { %3831 = vmatpush.msrb.mxu1 %v3708_v7  ;;  %3943 = vmatpush.msrb.mxu2 %v3922_v26  ;;  %v3261_v7 = vld [vmem:[#allocation3 + $0x90] sm:$0xff]  ;;  %v3917_v26 = vld [vmem:[#allocation8 + $0x100] sm:$0xff] }
 0x398   : > { %3767 = vmatpush.msrb.mxu0 %v3740_v15  ;;  %v3507_v15 = vmul.f32 %v3491_v6, %v7892_v34  ;;  %v3277_v49 = vmul.f32 %v3261_v7, %v7889_v61  ;;  %v3499_v61 = vld [vmem:[#allocation3 + $0x62] sm:$0xff] }
 0x399   : > { %3094 = vmatmul.f32.gmra.mxu3 %v6673_v37  ;;  %3832 = vmatpush.msrb.mxu1 %v3707_v11  ;;  %v2857_v11 = vadd.f32 %v6708_v38, %v2696_v3  ;;  %v3262_v38 = vld [vmem:[#allocation3 + $0x98] sm:$0xff] }
 0x39a   : > { %3768 = vmatpush.msrb.mxu0 %v3739_v43  ;;  %3944 = vmatpush.msrb.mxu2 %v3921_v28  ;;  %v3918_v43 = vld [vmem:[#allocation8 + $0x108] sm:$0xff]  ;;  %v3278_v28 = vmul.f32 %v3262_v38, %v7891_v50  ;;  %v6864_v38 = vpop.f32.mrf.mxu1 }
 0x39b   : > { %3833 = vmatpush.msrb.mxu1 %v3706_v32  ;;  %v2987_v32 = vadd.f32 %v6729_v13, %v2857_v11  ;;  %v7924_v11 = vld [vmem:[#allocation11_spill] sm:$0xff] }
 0x39c   : > { %v6823_v24 = vpop.f32.mrf.mxu3  ;;  %3769 = vmatpush.msrb.mxu0 %v3738_v17 }
 0x39d   : > { %3221 = vmatmul.f32.gmra.mxu0 %v3146_v51  ;;  %3459 = vmatmul.f32.gmra.mxu2 %v6658_v12  ;;  %7920 = vst [vmem:[#allocation52_spill] sm:$0xff] %v6823_v24  ;;  %v3147_v12 = vmul.f32 %v6825_v2, %v7826_v16  ;;  %v3920_v51 = vld [vmem:[#allocation8 + $0x118] sm:$0xff] }
 0x39e   : > { %3348 = vmatmul.f32.gmra.mxu1 %v3275_v20  ;;  %v6835_v20 = vld [vmem:[#allocation3 + $0x8a] sm:$0xff]  ;;  %3945 = vmatpush.msrb.mxu2 %v3920_v51  ;;  %v5252_v51 = vld [vmem:[#allocation3] sm:$0xff] }
 0x39f   : > { %3834 = vmatpush.msrb.mxu1 %v3705_v39  ;;  %v2699_v39 = vadd.f32 %v6719_v63, %v6706_v18  ;;  %v7923_v18 = vld [vmem:[#allocation17_spill] sm:$0xff] }
 0x3a0   : > { %3946 = vmatpush.msrb.mxu2 %v3919_v22  ;;  %v3493_v22 = vld [vmem:[#allocation3 + $0x32] sm:$0xff] }
 0x3a1   : > { %3097 = vmatmul.f32.gmra.mxu3 %v6690_v21  ;;  %v2858_v13 = vadd.f32 %v6721_v44, %v2699_v39  ;;  %v3509_v63 = vmul.f32 %v3493_v22, %v7923_v18  ;;  %v6858_v44 = vpop.f32.mrf.mxu0  ;;  %v7926_v39 = vld [vmem:[#allocation13_spill] sm:$0xff] }
 0x3a2   : > { %3947 = vmatpush.msrb.mxu2 %v3918_v43  ;;  %v3494_v43 = vld [vmem:[#allocation3 + $0x3a] sm:$0xff] }
 0x3a4   : > { %v6833_v56 = vpop.f32.mrf.mxu3  ;;  %3948 = vmatpush.msrb.mxu2 %v3917_v26 }
 0x3a5   : > { %3224 = vmatmul.f32.gmra.mxu0 %v3147_v12  ;;  %3462 = vmatmul.f32.gmra.mxu2 %v6673_v37  ;;  %7921 = vst [vmem:[#allocation53_spill] sm:$0xff] %v6833_v56  ;;  %v3148_v37 = vmul.f32 %v6835_v20, %v6039_v59  ;;  %v3508_v12 = vmul.f32 %v3492_v54, %v5702_v55  ;;  %v7925_v54 = vld [vmem:[#allocation19_spill] sm:$0xff] }
 0x3a6   : > { %3351 = vmatmul.f32.gmra.mxu1 %v3276_v19  ;;  %v3721_v19 = vld [vmem:[#allocation3 + $0x1] sm:$0xff]  ;;  %v3510_v26 = vmul.f32 %v3494_v43, %v7925_v54 }
 0x3a9   : > { %3556 = vmatmul.f32.vlgmr.msra.gmra.mxu3 %v3507_v15  ;;  %v3722_v15 = vld [vmem:[#allocation3 + $0x9] sm:$0xff] }
 0x3ac   : > { %v3053_v4 = vpop.f32.mrf.mxu3 }
 0x3ad   : > { %3227 = vmatmul.f32.gmra.mxu0 %v3148_v37  ;;  %3465 = vmatmul.f32.gmra.mxu2 %v6690_v21  ;;  %v6846_v17 = vadd.f32 %v3053_v4, %v2987_v32  ;;  %v7922_v21 = vld [vmem:[#allocation38_spill] sm:$0xff]  ;;  %v3689_v37 = vmul.f32 %v5252_v51, %v7924_v11 }
 0x3ae   : > { %3354 = vmatmul.f32.gmra.mxu1 %v3277_v49  ;;  %v2988_v6 = vadd.f32 %v7922_v21, %v2858_v13  ;;  %v3884_v4 = vld [vmem:[#allocation3 + $0x2] sm:$0xff]  ;;  %v6868_v13 = vpop.f32.mrf.mxu2 }
 0x3b1   : > { %3559 = vmatmul.f32.gmra.mxu3 %v3508_v12  ;;  %v3690_v12 = vmul.f32 %v5252_v51, %v7926_v39 }
 0x3b4   : > { %v3056_v7 = vpop.f32.mrf.mxu3 }
 0x3b5   : > { %3770 = vmatmul.f32.vlgmr.msrb.gmra.mxu0 %v3721_v19  ;;  %3468 = vmatmul.f32.gmra.mxu2 %v5252_v51  ;;  %v6854_v3 = vadd.f32 %v3056_v7, %v2988_v6  ;;  %v3900_v19 = vmul.f32 %v3884_v4, %v7892_v34  ;;  %v3495_v6 = vld [vmem:[#allocation3 + $0x42] sm:$0xff]  ;;  %v7927_v7 = vld [vmem:[#allocation21_spill] sm:$0xff] }
 0x3b6   : > { %3357 = vmatmul.f32.gmra.mxu1 %v3278_v28  ;;  %v6870_v28 = vpop.f32.mrf.mxu0  ;;  %v3511_v22 = vmul.f32 %v3495_v6, %v7927_v7 }
 0x3b9   : > { %3562 = vmatmul.f32.gmra.mxu3 %v3509_v63  ;;  %v6876_v63 = vpop.f32.mrf.mxu1 }
 0x3bc   : > { %v3059_v49 = vpop.f32.mrf.mxu3 }
 0x3bd   : > { %3773 = vmatmul.f32.gmra.mxu0 %v3722_v15  ;;  %3471 = vmatmul.f32.gmra.mxu2 %v5252_v51  ;;  %v6861_v32 = vadd.f32 %v3059_v49, %v6745_v9  ;;  %v3496_v15 = vld [vmem:[#allocation3 + $0x4a] sm:$0xff] }
 0x3be   : > { %3835 = vmatmul.f32.vlgmr.msrb.gmra.mxu1 %v3689_v37  ;;  %v6878_v37 = vpop.f32.mrf.mxu2  ;;  %v6883_v43 = vpop.f32.mrf.mxu0  ;;  %v3512_v4 = vmul.f32 %v3496_v15, %v7898_v30 }
 0x3c1   : > { %3565 = vmatmul.f32.gmra.mxu3 %v3510_v26 }
 0x3c4   : > { %v3062_v21 = vpop.f32.mrf.mxu3 }
 0x3c5   : > { %3949 = vmatmul.f32.vlgmr.msrb.gmra.mxu2 %v3900_v19  ;;  %v6873_v9 = vadd.f32 %v3062_v21, %v6753_v8  ;;  %v3497_v8 = vld [vmem:[#allocation3 + $0x52] sm:$0xff] }
 0x3c6   : > { %3838 = vmatmul.f32.gmra.mxu1 %v3690_v12  ;;  %v6886_v12 = vpop.f32.mrf.mxu1  ;;  %v6891_v21 = vpop.f32.mrf.mxu2  ;;  %v3513_v6 = vmul.f32 %v3497_v8, %v7900_v31 }
 0x3c9   : > { %3568 = vmatmul.f32.gmra.mxu3 %v3511_v22  ;;  %v6894_v22 = vpop.f32.mrf.mxu0 }
 0x3ca   : > { %7928 = vst [vmem:[#allocation42_spill] sm:$0xff] %v6894_v22 }
 0x3cc   : > { %v3065_v51 = vpop.f32.mrf.mxu3 }
 0x3cd   : > { %v6881_v49 = vadd.f32 %v3065_v51, %v6761_v52  ;;  %v3498_v51 = vld [vmem:[#allocation3 + $0x5a] sm:$0xff] }
 0x3ce   : > { %v6899_v15 = vpop.f32.mrf.mxu1  ;;  %v6902_v50 = vpop.f32.mrf.mxu2 }
 0x3cf   : > { %7929 = vst [vmem:[#allocation54_spill] sm:$0xff] %v6899_v15 }
 0x3d0   : > { %7930 = vst [vmem:[#allocation64_spill] sm:$0xff] %v6902_v50 }
 0x3d1   : > { %3571 = vmatmul.f32.gmra.mxu3 %v3512_v4  ;;  %v3514_v4 = vmul.f32 %v3498_v51, %v5841_v5 }
 0x3d4   : > { %v3068_v26 = vpop.f32.mrf.mxu3 }
 0x3d5   : > { %v6889_v19 = vadd.f32 %v3068_v26, %v6769_v47  ;;  %v6904_v47 = vpop.f32.mrf.mxu0 }
 0x3d6   : > { %7931 = vst [vmem:[#allocation55_spill] sm:$0xff] %v6904_v47  ;;  %v6910_v56 = vpop.f32.mrf.mxu1 }
 0x3d7   : > { %7932 = vst [vmem:[#allocation56_spill] sm:$0xff] %v6910_v56 }
 0x3d9   : > { %3574 = vmatmul.f32.gmra.mxu3 %v3513_v6  ;;  %v3515_v6 = vmul.f32 %v3499_v61, %v7902_v40 }
 0x3dc   : > { %v3071_v52 = vpop.f32.mrf.mxu3 }
 0x3dd   : > { %v6897_v34 = vadd.f32 %v3071_v52, %v6779_v14  ;;  %v6912_v14 = vpop.f32.mrf.mxu2  ;;  %v6914_v52 = vpop.f32.mrf.mxu0 }
 0x3de   : > { %7933 = vst [vmem:[#allocation46_spill] sm:$0xff] %v6912_v14  ;;  %v6919_v24 = vpop.f32.mrf.mxu1 }
 0x3df   : > { %7934 = vst [vmem:[#allocation57_spill] sm:$0xff] %v6914_v52  ;;  %v3502_v52 = vld [vmem:[#allocation3 + $0x7a] sm:$0xff] }
 0x3e0   : > { %7935 = vst [vmem:[#allocation65_spill] sm:$0xff] %v6919_v24  ;;  %v4062_v24 = vld [vmem:[#allocation8 + $0x1f8] sm:$0xff] }
 0x3e1   : > { %3577 = vmatmul.f32.gmra.mxu3 %v3514_v4  ;;  %v3516_v4 = vmul.f32 %v3500_v23, %v7907_v25  ;;  %v3518_v23 = vmul.f32 %v3502_v52, %v7914_v1  ;;  %v3520_v1 = vmul.f32 %v6835_v20, %v7890_v10  ;;  %v4052_v20 = vld [vmem:[#allocation8 + $0x1a8] sm:$0xff]  ;;  %v3506_v10 = vld [vmem:[#allocation3 + $0x9a] sm:$0xff] }
 0x3e2   : > { %4063 = vmatpush.msrb.mxu3 %v4062_v24  ;;  %v4058_v24 = vld [vmem:[#allocation8 + $0x1d8] sm:$0xff]  ;;  %v3522_v58 = vmul.f32 %v3506_v10, %v6039_v59 }
 0x3e4   : > { %v3074_v26 = vpop.f32.mrf.mxu3 }
 0x3e5   : > { %v6907_v8 = vadd.f32 %v3074_v26, %v6789_v53  ;;  %v3501_v53 = vld [vmem:[#allocation3 + $0x72] sm:$0xff]  ;;  %v6923_v26 = vpop.f32.mrf.mxu2  ;;  %v6925_v61 = vpop.f32.mrf.mxu0 }
 0x3e6   : > { %7936 = vst [vmem:[#allocation58_spill] sm:$0xff] %v6923_v26  ;;  %v6930_v56 = vpop.f32.mrf.mxu1 }
 0x3e7   : > { %7937 = vst [vmem:[#allocation59_spill] sm:$0xff] %v6925_v61  ;;  %v4061_v61 = vld [vmem:[#allocation8 + $0x1f0] sm:$0xff] }
 0x3e8   : > { %7938 = vst [vmem:[#allocation45_spill] sm:$0xff] %v6930_v56  ;;  %4064 = vmatpush.msrb.mxu3 %v4061_v61  ;;  %v4176_v61 = vld [vmem:[#allocation8 + $0x278] sm:$0xff] }
 0x3e9   : > { %3580 = vmatmul.f32.gmra.mxu3 %v3515_v6  ;;  %v3517_v6 = vmul.f32 %v3501_v53, %v7911_v36  ;;  %v3519_v53 = vmul.f32 %v6825_v2, %v7917_v42  ;;  %4177 = vmatpush.msra.mxu0 %v4176_v61 }
 0x3ec   : > { %v6916_v51 = vpop.f32.mrf.mxu3 }
 0x3ed   : > { %v6932_v47 = vpop.f32.mrf.mxu2 }
 0x3ee   : > { %7939 = vst [vmem:[#allocation60_spill] sm:$0xff] %v6932_v47  ;;  %v6939_v60 = vpop.f32.mrf.mxu1  ;;  %v4059_v47 = vld [vmem:[#allocation8 + $0x1e0] sm:$0xff] }
 0x3f1   : > { %3583 = vmatmul.f32.gmra.mxu3 %v3516_v4  ;;  %v6935_v4 = vpop.f32.mrf.mxu0 }
 0x3f4   : > { %v6921_v57 = vpop.f32.mrf.mxu3 }
 0x3f5   : > { %v3427_v56 = vpop.f32.mrf.mxu2 }
 0x3f6   : > { %v3316_v2 = vpop.f32.mrf.mxu1 }
 0x3f9   : > { %3586 = vmatmul.f32.gmra.mxu3 %v3517_v6  ;;  %v4060_v6 = vld [vmem:[#allocation8 + $0x1e8] sm:$0xff]  ;;  %v6943_v36 = vpop.f32.mrf.mxu0 }
 0x3fa   : > { %4065 = vmatpush.msrb.mxu3 %v4060_v6 }
 0x3fc   : > { %v6928_v14 = vpop.f32.mrf.mxu3  ;;  %4066 = vmatpush.msrb.mxu3 %v4059_v47  ;;  %v4054_v47 = vld [vmem:[#allocation8 + $0x1b8] sm:$0xff] }
 0x3fd   : > { %v3430_v42 = vpop.f32.mrf.mxu2 }
 0x3fe   : > { %4067 = vmatpush.msrb.mxu3 %v4058_v24  ;;  %v4053_v24 = vld [vmem:[#allocation8 + $0x1b0] sm:$0xff] }
 0x401   : > { %3589 = vmatmul.f32.gmra.mxu3 %v3518_v23  ;;  %v4057_v23 = vld [vmem:[#allocation8 + $0x1d0] sm:$0xff]  ;;  %v3189_v50 = vpop.f32.mrf.mxu0 }
 0x402   : > { %4068 = vmatpush.msrb.mxu3 %v4057_v23  ;;  %v4175_v23 = vld [vmem:[#allocation8 + $0x270] sm:$0xff] }
 0x403   : > { %4178 = vmatpush.msra.mxu0 %v4175_v23 }
 0x404   : > { %v6937_v26 = vpop.f32.mrf.mxu3  ;;  %4069 = vmatpush.msrb.mxu3 %v4056_v46  ;;  %v3319_v46 = vpop.f32.mrf.mxu1 }
 0x405   : > { %7940 = vst [vmem:[#allocation61_spill] sm:$0xff] %v6937_v26  ;;  %v3433_v22 = vpop.f32.mrf.mxu2 }
 0x409   : > { %3592 = vmatmul.f32.gmra.mxu3 %v3519_v53  ;;  %v4055_v53 = vld [vmem:[#allocation8 + $0x1c0] sm:$0xff] }
 0x40a   : > { %4070 = vmatpush.msrb.mxu3 %v4055_v53  ;;  %v3192_v53 = vpop.f32.mrf.mxu0 }
 0x40c   : > { %v6945_v52 = vpop.f32.mrf.mxu3  ;;  %4071 = vmatpush.msrb.mxu3 %v4054_v47  ;;  %v4049_v47 = vld [vmem:[#allocation8 + $0x190] sm:$0xff]  ;;  %v3322_v23 = vpop.f32.mrf.mxu1 }
 0x40d   : > { %7941 = vst [vmem:[#allocation62_spill] sm:$0xff] %v6945_v52  ;;  %v3505_v52 = vld [vmem:[#allocation3 + $0x92] sm:$0xff] }
 0x40e   : > { %v3521_v15 = vmul.f32 %v3505_v52, %v7826_v16  ;;  %4072 = vmatpush.msrb.mxu3 %v4053_v24  ;;  %v4048_v52 = vld [vmem:[#allocation8 + $0x188] sm:$0xff]  ;;  %v4047_v24 = vld [vmem:[#allocation8 + $0x180] sm:$0xff]  ;;  %v3436_v16 = vpop.f32.mrf.mxu2 }
 0x410   : > { %4073 = vmatpush.msrb.mxu3 %v4052_v20 }
 0x411   : > { %3595 = vmatmul.f32.gmra.mxu3 %v3520_v1  ;;  %v4051_v1 = vld [vmem:[#allocation8 + $0x1a0] sm:$0xff] }
 0x412   : > { %4074 = vmatpush.msrb.mxu3 %v4051_v1  ;;  %v3231_v1 = vadd.f32 %v6935_v4, %v6846_v17  ;;  %v3232_v17 = vadd.f32 %v6943_v36, %v6854_v3  ;;  %v3233_v36 = vadd.f32 %v3189_v50, %v6861_v32  ;;  %v4170_v50 = vld [vmem:[#allocation8 + $0x248] sm:$0xff] }
 0x414   : > { %v6949_v6 = vpop.f32.mrf.mxu3  ;;  %v3361_v10 = vadd.f32 %v6939_v60, %v3231_v1  ;;  %v3325_v4 = vpop.f32.mrf.mxu1 }
 0x415   : > { %7942 = vst [vmem:[#allocation66_spill] sm:$0xff] %v6949_v6  ;;  %v4050_v6 = vld [vmem:[#allocation8 + $0x198] sm:$0xff] }
 0x416   : > { %4075 = vmatpush.msrb.mxu3 %v4050_v6  ;;  %v4173_v6 = vld [vmem:[#allocation8 + $0x260] sm:$0xff]  ;;  %v3439_v26 = vpop.f32.mrf.mxu2 }
 0x418   : > { %4076 = vmatpush.msrb.mxu3 %v4049_v47  ;;  %v3475_v47 = vadd.f32 %v3427_v56, %v3361_v10 }
 0x419   : > { %3598 = vmatmul.f32.gmra.mxu3 %v3521_v15  ;;  %v4174_v15 = vld [vmem:[#allocation8 + $0x268] sm:$0xff] }
 0x41a   : > { %4077 = vmatpush.msrb.mxu3 %v4048_v52  ;;  %4179 = vmatpush.msra.mxu0 %v4174_v15  ;;  %v4172_v52 = vld [vmem:[#allocation8 + $0x258] sm:$0xff] }
 0x41c   : > { %v6952_v61 = vpop.f32.mrf.mxu3  ;;  %4078 = vmatpush.msrb.mxu3 %v4047_v24  ;;  %4180 = vmatpush.msra.mxu0 %v4173_v6  ;;  %v4171_v6 = vld [vmem:[#allocation8 + $0x250] sm:$0xff] }
 0x41d   : > { %7943 = vst [vmem:[#allocation67_spill] sm:$0xff] %v6952_v61  ;;  %v6959_v61 = vpop.f32.mrf.mxu0 }
 0x41e   : > { %4181 = vmatpush.msra.mxu0 %v4172_v52  ;;  %v3363_v52 = vadd.f32 %v3319_v46, %v3233_v36 }
 0x420   : > { %4182 = vmatpush.msra.mxu0 %v4171_v6 }
 0x421   : > { %3601 = vmatmul.f32.gmra.mxu3 %v3522_v58  ;;  %v6965_v58 = vld [vmem:[%s7623_s10] ss:$0 sm:$0xff] }
 0x422   : > { %4183 = vmatpush.msra.mxu0 %v4170_v50 }
 0x424   : > { %v6955_v20 = vpop.f32.mrf.mxu3 }
 0x425   : > { %7944 = vst [vmem:[#allocation28_spill] sm:$0xff] %v6955_v20  ;;  %v3362_v20 = vadd.f32 %v3316_v2, %v3232_v17  ;;  %v6972_v56 = vpop.f32.mrf.mxu0  ;;  %v6978_v2 = vpop.f32.mrf.mxu1  ;;  %v7946_v17 = vld [vmem:[#allocation14_spill] sm:$0xff] }
 0x427   : > { %v3476_v1 = vadd.f32 %v3430_v42, %v3362_v20  ;;  %v3442_v20 = vpop.f32.mrf.mxu2 }
 0x42c   : > { %v3557_v15 = vpop.f32.mrf.mxu3 }
 0x42d   : > { %v3605_v24 = vadd.f32 %v3557_v15, %v3475_v47  ;;  %v3477_v15 = vadd.f32 %v3433_v22, %v3363_v52  ;;  %v6987_v32 = vpop.f32.mrf.mxu0  ;;  %v3234_v22 = vadd.f32 %v3192_v53, %v6873_v9  ;;  %v4169_v53 = vld [vmem:[#allocation8 + $0x240] sm:$0xff] }
 0x42e   : > { %4184 = vmatpush.msra.mxu0 %v4169_v53 }
 0x42f   : > { %v3625_v59 = vadd.f32 %v6965_v58, %v3605_v24  ;;  %v3364_v36 = vadd.f32 %v3322_v23, %v3234_v22 }
 0x431   : > { %v6970_v60 = vmax.f32 %v3625_v59, 0.0  ;;  %v3478_v52 = vadd.f32 %v3436_v16, %v3364_v36 }
 0x433   : > { %7945 = vst [vmem:[#allocation49_spill] sm:$0xff] %v6970_v60  ;;  %3776 = vmatmul.f32.gmra.mxu0 %v6970_v60 }
 0x434   : > { %3657 = vst [vmem:[#allocation3 + $0x11] sm:$0xff] %v6970_v60  ;;  %v3560_v10 = vpop.f32.mrf.mxu3 }
 0x435   : > { %v3606_v47 = vadd.f32 %v3560_v10, %v3476_v1 }
 0x437   : > { %v3626_v3 = vadd.f32 %v6965_v58, %v3606_v47 }
 0x439   : > { %v6980_v59 = vmax.f32 %v3626_v3, 0.0 }
 0x43b   : > { %v3675_v24 = vld [vmem:[#allocation3 + $0x10] sm:$0xff]  ;;  %3658 = vst [vmem:[#allocation3 + $0x19] sm:$0xff] %v6980_v59  ;;  %3779 = vmatmul.f32.gmra.mxu0 %v6980_v59 }
 0x43c   : > { %v3885_v42 = vld [vmem:[#allocation3 + $0xa] sm:$0xff]  ;;  %v3691_v60 = vmul.f32 %v3675_v24, %v7946_v17  ;;  %v4030_v1 = vmul.f32 %v3675_v24, %v7924_v11  ;;  %v3563_v46 = vpop.f32.mrf.mxu3  ;;  %v3331_v11 = vpop.f32.mrf.mxu1 }
 0x43d   : > { %v3901_v6 = vmul.f32 %v3885_v42, %v5702_v55  ;;  %v3607_v10 = vadd.f32 %v3563_v46, %v3477_v15  ;;  %v3445_v15 = vpop.f32.mrf.mxu2 }
 0x43e   : > { %3841 = vmatmul.f32.gmra.mxu1 %v3691_v60  ;;  %4079 = vmatmul.f32.vlgmr.msrb.gmra.mxu3 %v4030_v1  ;;  %v7003_v1 = vpop.f32.mrf.mxu0 }
 0x43f   : > { %3952 = vmatmul.f32.gmra.mxu2 %v3901_v6  ;;  %v3627_v47 = vadd.f32 %v6965_v58, %v3607_v10  ;;  %v3235_v6 = vadd.f32 %v6959_v61, %v6881_v49 }
 0x441   : > { %v6991_v3 = vmax.f32 %v3627_v47, 0.0  ;;  %v3365_v10 = vadd.f32 %v3325_v4, %v3235_v6  ;;  %v4168_v4 = vld [vmem:[#allocation8 + $0x238] sm:$0xff] }
 0x442   : > { %v3676_v24 = vld [vmem:[#allocation3 + $0x18] sm:$0xff]  ;;  %4185 = vmatpush.msra.mxu0 %v4168_v4 }
 0x443   : > { %v6993_v42 = vld [vmem:[#allocation3 + $0x12] sm:$0xff]  ;;  %3659 = vst [vmem:[#allocation3 + $0x21] sm:$0xff] %v6991_v3  ;;  %v3692_v50 = vmul.f32 %v3676_v24, %v7896_v29  ;;  %v4031_v9 = vmul.f32 %v3676_v24, %v7926_v39  ;;  %3782 = vmatmul.f32.gmra.mxu0 %v6991_v3  ;;  %v3479_v47 = vadd.f32 %v3439_v26, %v3365_v10 }
 0x444   : > { %v3902_v60 = vmul.f32 %v6993_v42, %v7923_v18  ;;  %v3566_v23 = vpop.f32.mrf.mxu3  ;;  %v3334_v26 = vpop.f32.mrf.mxu1 }
 0x445   : > { %v3608_v16 = vadd.f32 %v3566_v23, %v3478_v52  ;;  %v3448_v53 = vpop.f32.mrf.mxu2 }
 0x446   : > { %3844 = vmatmul.f32.gmra.mxu1 %v3692_v50  ;;  %4082 = vmatmul.f32.gmra.mxu3 %v4031_v9  ;;  %v3236_v9 = vadd.f32 %v6972_v56, %v6889_v19  ;;  %v3207_v6 = vpop.f32.mrf.mxu0 }
 0x447   : > { %3955 = vmatmul.f32.gmra.mxu2 %v3902_v60  ;;  %v3628_v46 = vadd.f32 %v6965_v58, %v3608_v16 }
 0x448   : > { %v3366_v16 = vadd.f32 %v6978_v2, %v3236_v9  ;;  %v4167_v2 = vld [vmem:[#allocation8 + $0x230] sm:$0xff] }
 0x449   : > { %v7006_v22 = vmax.f32 %v3628_v46, 0.0  ;;  %4186 = vmatpush.msra.mxu0 %v4167_v2 }
 0x44a   : > { %v7008_v36 = vld [vmem:[#allocation3 + $0x20] sm:$0xff]  ;;  %v3480_v10 = vadd.f32 %v3442_v20, %v3366_v16 }
 0x44b   : > { %v7010_v24 = vld [vmem:[#allocation3 + $0x1a] sm:$0xff]  ;;  %3660 = vst [vmem:[#allocation3 + $0x29] sm:$0xff] %v7006_v22  ;;  %v3693_v52 = vmul.f32 %v7008_v36, %v7899_v41  ;;  %v4032_v61 = vmul.f32 %v7008_v36, %v7946_v17  ;;  %3785 = vmatmul.f32.gmra.mxu0 %v7006_v22 }
 0x44c   : > { %v3903_v49 = vmul.f32 %v7010_v24, %v7925_v54  ;;  %v3569_v50 = vpop.f32.mrf.mxu3 }
 0x44d   : > { %v3609_v60 = vadd.f32 %v3569_v50, %v3479_v47  ;;  %v3451_v9 = vpop.f32.mrf.mxu2 }
 0x44e   : > { %3847 = vmatmul.f32.gmra.mxu1 %v3693_v52  ;;  %4085 = vmatmul.f32.gmra.mxu3 %v4032_v61  ;;  %v3337_v61 = vpop.f32.mrf.mxu1 }
 0x44f   : > { %3958 = vmatmul.f32.gmra.mxu2 %v3903_v49  ;;  %v3629_v23 = vadd.f32 %v6965_v58, %v3609_v60  ;;  %v3237_v49 = vadd.f32 %v6987_v32, %v6897_v34 }
 0x451   : > { %v7024_v46 = vmax.f32 %v3629_v23, 0.0  ;;  %v3367_v60 = vadd.f32 %v3331_v11, %v3237_v49 }
 0x452   : > { %v7026_v17 = vld [vmem:[#allocation3 + $0x28] sm:$0xff] }
 0x453   : > { %v7028_v4 = vld [vmem:[#allocation3 + $0x22] sm:$0xff]  ;;  %3661 = vst [vmem:[#allocation3 + $0x31] sm:$0xff] %v7024_v46  ;;  %v3694_v47 = vmul.f32 %v7026_v17, %v7901_v48  ;;  %v4033_v56 = vmul.f32 %v7026_v17, %v7896_v29  ;;  %3788 = vmatmul.f32.gmra.mxu0 %v7024_v46  ;;  %v3481_v16 = vadd.f32 %v3445_v15, %v3367_v60  ;;  %v7043_v29 = vpop.f32.mrf.mxu0  ;;  %v4166_v15 = vld [vmem:[#allocation8 + $0x228] sm:$0xff] }
 0x454   : > { %v3904_v19 = vmul.f32 %v7028_v4, %v7927_v7  ;;  %v3572_v52 = vpop.f32.mrf.mxu3  ;;  %4187 = vmatpush.msra.mxu0 %v4166_v15 }
 0x455   : > { %v3610_v20 = vadd.f32 %v3572_v52, %v3480_v10 }
 0x456   : > { %3850 = vmatmul.f32.gmra.mxu1 %v3694_v47  ;;  %4088 = vmatmul.f32.gmra.mxu3 %v4033_v56 }
 0x457   : > { %3961 = vmatmul.f32.gmra.mxu2 %v3904_v19  ;;  %v3630_v50 = vadd.f32 %v6965_v58, %v3610_v20  ;;  %v3238_v19 = vadd.f32 %v7003_v1, %v6907_v8  ;;  %v3340_v20 = vpop.f32.mrf.mxu1 }
 0x459   : > { %v7041_v23 = vmax.f32 %v3630_v50, 0.0  ;;  %v3368_v52 = vadd.f32 %v3334_v26, %v3238_v19  ;;  %v4165_v26 = vld [vmem:[#allocation8 + $0x220] sm:$0xff] }
 0x45a   : > { %v7045_v7 = vld [vmem:[#allocation3 + $0x30] sm:$0xff]  ;;  %4188 = vmatpush.msra.mxu0 %v4165_v26  ;;  %v2726_v26 = vadd.f32 %v6870_v28, %v6787_v45  ;;  %v7949_v45 = vld [vmem:[#allocation27_spill] sm:$0xff] }
 0x45b   : > { %v7047_v2 = vld [vmem:[#allocation3 + $0x2a] sm:$0xff]  ;;  %3662 = vst [vmem:[#allocation3 + $0x39] sm:$0xff] %v7041_v23  ;;  %v3695_v34 = vmul.f32 %v7045_v7, %v7847_v33  ;;  %v4034_v11 = vmul.f32 %v7045_v7, %v7899_v41  ;;  %3791 = vmatmul.f32.gmra.mxu0 %v7041_v23  ;;  %v3482_v50 = vadd.f32 %v3448_v53, %v3368_v52 }
 0x45c   : > { %v3905_v32 = vmul.f32 %v7047_v2, %v7898_v30  ;;  %v3575_v10 = vpop.f32.mrf.mxu3  ;;  %v3454_v30 = vpop.f32.mrf.mxu2  ;;  %v3109_v53 = vadd.f32 %v6916_v51, %v6799_v27 }
 0x45d   : > { %v3611_v47 = vadd.f32 %v3575_v10, %v3481_v16  ;;  %v7947_v16 = vld [vmem:[#allocation24_spill] sm:$0xff]  ;;  %v2723_v10 = vadd.f32 %v6858_v44, %v6777_v35  ;;  %v7948_v35 = vld [vmem:[#allocation26_spill] sm:$0xff] }
 0x45e   : > { %3853 = vmatmul.f32.gmra.mxu1 %v3695_v34  ;;  %4091 = vmatmul.f32.gmra.mxu3 %v4034_v11 }
 0x45f   : > { %3964 = vmatmul.f32.gmra.mxu2 %v3905_v32  ;;  %v3631_v56 = vadd.f32 %v6965_v58, %v3611_v47  ;;  %v3213_v32 = vpop.f32.mrf.mxu0  ;;  %v3239_v47 = vadd.f32 %v3207_v6, %v3109_v53 }
 0x461   : > { %v7060_v49 = vmax.f32 %v3631_v56, 0.0  ;;  %v2866_v56 = vadd.f32 %v6864_v38, %v2723_v10  ;;  %v3369_v52 = vadd.f32 %v3337_v61, %v3239_v47  ;;  %v2867_v10 = vadd.f32 %v6876_v63, %v2726_v26 }
 0x462   : > { %v7062_v60 = vld [vmem:[#allocation3 + $0x38] sm:$0xff] }
 0x463   : > { %v7064_v41 = vld [vmem:[#allocation3 + $0x32] sm:$0xff]  ;;  %3663 = vst [vmem:[#allocation3 + $0x41] sm:$0xff] %v7060_v49  ;;  %v3696_v34 = vmul.f32 %v7062_v60, %v7947_v16  ;;  %v4035_v1 = vmul.f32 %v7062_v60, %v7901_v48  ;;  %3794 = vmatmul.f32.gmra.mxu0 %v7060_v49  ;;  %v2996_v27 = vadd.f32 %v6868_v13, %v2866_v56  ;;  %v4164_v13 = vld [vmem:[#allocation8 + $0x218] sm:$0xff] }
 0x464   : > { %v3906_v8 = vmul.f32 %v7064_v41, %v7900_v31  ;;  %v3578_v11 = vpop.f32.mrf.mxu3  ;;  %v3483_v51 = vadd.f32 %v3451_v9, %v3369_v52  ;;  %4189 = vmatpush.msra.mxu0 %v4164_v13  ;;  %v4304_v13 = vld [vmem:[#allocation8 + $0x2e8] sm:$0xff] }
 0x465   : > { %v3612_v15 = vadd.f32 %v3578_v11, %v3482_v50  ;;  %v3110_v61 = vadd.f32 %v6921_v57, %v2996_v27  ;;  %v2997_v57 = vadd.f32 %v6878_v37, %v2867_v10  ;;  %v4305_v37 = vld [vmem:[#allocation8 + $0x2f0] sm:$0xff] }
 0x466   : > { %3856 = vmatmul.f32.gmra.mxu1 %v3696_v34  ;;  %4094 = vmatmul.f32.gmra.mxu3 %v4035_v1  ;;  %v3343_v34 = vpop.f32.mrf.mxu1 }
 0x467   : > { %3967 = vmatmul.f32.gmra.mxu2 %v3906_v8  ;;  %v3632_v19 = vadd.f32 %v6965_v58, %v3612_v15  ;;  %v3457_v8 = vpop.f32.mrf.mxu2  ;;  %v3240_v53 = vadd.f32 %v7043_v29, %v3110_v61  ;;  %v3216_v11 = vpop.f32.mrf.mxu0  ;;  %v2729_v61 = vadd.f32 %v6883_v43, %v6797_v0  ;;  %v4303_v43 = vld [vmem:[#allocation8 + $0x2e0] sm:$0xff] }
 0x469   : > { %v7080_v48 = vmax.f32 %v3632_v19, 0.0  ;;  %v3370_v47 = vadd.f32 %v3340_v20, %v3240_v53  ;;  %v4306_v20 = vld [vmem:[#allocation8 + $0x2f8] sm:$0xff] }
 0x46a   : > { %v7083_v31 = vld [vmem:[#allocation3 + $0x40] sm:$0xff]  ;;  %4307 = vmatpush.msra.mxu1 %v4306_v20  ;;  %v4435_v20 = vld [vmem:[#allocation8 + $0x370] sm:$0xff] }
 0x46b   : > { %v7085_v50 = vld [vmem:[#allocation3 + $0x3a] sm:$0xff]  ;;  %3664 = vst [vmem:[#allocation3 + $0x49] sm:$0xff] %v7080_v48  ;;  %v3697_v44 = vmul.f32 %v7083_v31, %v7948_v35  ;;  %v4036_v38 = vmul.f32 %v7083_v31, %v7847_v33  ;;  %3797 = vmatmul.f32.gmra.mxu0 %v7080_v48  ;;  %v3484_v56 = vadd.f32 %v3454_v30, %v3370_v47 }
 0x46c   : > { %v3907_v6 = vmul.f32 %v7085_v50, %v5841_v5  ;;  %v3581_v9 = vpop.f32.mrf.mxu3  ;;  %v3111_v30 = vadd.f32 %v6928_v14, %v2997_v57  ;;  %4308 = vmatpush.msra.mxu1 %v4305_v37  ;;  %v2868_v14 = vadd.f32 %v6886_v12, %v2729_v61 }
 0x46d   : > { %v3613_v1 = vadd.f32 %v3581_v9, %v3483_v51 }
 0x46e   : > { %3859 = vmatmul.f32.gmra.mxu1 %v3697_v44  ;;  %4097 = vmatmul.f32.gmra.mxu3 %v4036_v38  ;;  %v4163_v44 = vld [vmem:[#allocation8 + $0x210] sm:$0xff]  ;;  %v3241_v9 = vadd.f32 %v3213_v32, %v3111_v30  ;;  %v2998_v47 = vadd.f32 %v6891_v21, %v2868_v14  ;;  %v4302_v21 = vld [vmem:[#allocation8 + $0x2d8] sm:$0xff] }
 0x46f   : > { %3970 = vmatmul.f32.gmra.mxu2 %v3907_v6  ;;  %v3633_v15 = vadd.f32 %v6965_v58, %v3613_v1  ;;  %v3346_v6 = vpop.f32.mrf.mxu1  ;;  %v3460_v1 = vpop.f32.mrf.mxu2  ;;  %4190 = vmatpush.msra.mxu0 %v4163_v44  ;;  %v4301_v30 = vld [vmem:[#allocation8 + $0x2d0] sm:$0xff]  ;;  %v7951_v44 = vld [vmem:[#allocation51_spill] sm:$0xff] }
 0x470   : > { %v3371_v53 = vadd.f32 %v3343_v34, %v3241_v9  ;;  %4309 = vmatpush.msra.mxu1 %v4304_v13  ;;  %v4434_v9 = vld [vmem:[#allocation8 + $0x368] sm:$0xff] }
 0x471   : > { %v7101_v19 = vmax.f32 %v3633_v15, 0.0  ;;  %v7121_v15 = vpop.f32.mrf.mxu0 }
 0x472   : > { %v7104_v52 = vld [vmem:[#allocation3 + $0x48] sm:$0xff]  ;;  %v3485_v57 = vadd.f32 %v3457_v8, %v3371_v53  ;;  %4310 = vmatpush.msra.mxu1 %v4303_v43  ;;  %v4436_v8 = vld [vmem:[#allocation8 + $0x378] sm:$0xff]  ;;  %v4300_v53 = vld [vmem:[#allocation8 + $0x2c8] sm:$0xff] }
 0x473   : > { %v7106_v27 = vld [vmem:[#allocation3 + $0x42] sm:$0xff]  ;;  %3665 = vst [vmem:[#allocation3 + $0x51] sm:$0xff] %v7101_v19  ;;  %v3698_v29 = vmul.f32 %v7104_v52, %v7949_v45  ;;  %v4037_v63 = vmul.f32 %v7104_v52, %v7947_v16  ;;  %3800 = vmatmul.f32.gmra.mxu0 %v7101_v19  ;;  %4437 = vmatpush.msra.mxu2 %v4436_v8  ;;  %v7955_v8 = vld [vmem:[#allocation64_spill] sm:$0xff] }
 0x474   : > { %v3908_v28 = vmul.f32 %v7106_v27, %v7902_v40  ;;  %v3584_v51 = vpop.f32.mrf.mxu3  ;;  %4311 = vmatpush.msra.mxu1 %v4302_v21 }
 0x475   : > { %v3614_v38 = vadd.f32 %v3584_v51, %v3484_v56  ;;  %v4162_v51 = vld [vmem:[#allocation8 + $0x208] sm:$0xff]  ;;  %4438 = vmatpush.msra.mxu2 %v4435_v20  ;;  %v7956_v20 = vld [vmem:[#allocation31_spill] sm:$0xff] }
 0x476   : > { %3862 = vmatmul.f32.gmra.mxu1 %v3698_v29  ;;  %4100 = vmatmul.f32.gmra.mxu3 %v4037_v63  ;;  %v7950_v29 = vld [vmem:[#allocation61_spill] sm:$0xff] }
 0x477   : > { %3973 = vmatmul.f32.gmra.mxu2 %v3908_v28  ;;  %v3634_v26 = vadd.f32 %v6965_v58, %v3614_v38  ;;  %v3112_v28 = vadd.f32 %v7950_v29, %v2998_v47  ;;  %v7952_v38 = vld [vmem:[#allocation42_spill] sm:$0xff]  ;;  %4191 = vmatpush.msra.mxu0 %v4162_v51 }
 0x478   : > { %v2732_v13 = vadd.f32 %v7952_v38, %v7951_v44  ;;  %v7953_v47 = vld [vmem:[#allocation54_spill] sm:$0xff]  ;;  %4312 = vmatpush.msra.mxu1 %v4301_v30  ;;  %4439 = vmatpush.msra.mxu2 %v4434_v9 }
 0x479   : > { %v7123_v10 = vmax.f32 %v3634_v26, 0.0  ;;  %v3242_v61 = vadd.f32 %v3216_v11, %v3112_v28  ;;  %v3349_v26 = vpop.f32.mrf.mxu1  ;;  %v7146_v11 = vpop.f32.mrf.mxu0  ;;  %v4298_v44 = vld [vmem:[#allocation8 + $0x2b8] sm:$0xff] }
 0x47a   : > { %v7126_v56 = vld [vmem:[#allocation3 + $0x50] sm:$0xff]  ;;  %v2869_v43 = vadd.f32 %v7953_v47, %v2732_v13  ;;  %4313 = vmatpush.msra.mxu1 %v4300_v53  ;;  %v7958_v38 = vld [vmem:[#allocation62_spill] sm:$0xff]  ;;  %v4297_v47 = vld [vmem:[#allocation8 + $0x2b0] sm:$0xff] }
 0x47b   : > { %v7128_v0 = vld [vmem:[#allocation3 + $0x4a] sm:$0xff]  ;;  %3666 = vst [vmem:[#allocation3 + $0x59] sm:$0xff] %v7123_v10  ;;  %v3699_v32 = vmul.f32 %v7126_v56, %v7915_v62  ;;  %v4038_v34 = vmul.f32 %v7126_v56, %v7948_v35  ;;  %3803 = vmatmul.f32.gmra.mxu0 %v7123_v10  ;;  %v4550_v9 = vld [vmem:[#allocation8 + $0x3f8] sm:$0xff] }
 0x47c   : > { %v3909_v12 = vmul.f32 %v7128_v0, %v7907_v25  ;;  %v3587_v63 = vpop.f32.mrf.mxu3  ;;  %v2999_v29 = vadd.f32 %v7955_v8, %v2869_v43  ;;  %v7959_v43 = vld [vmem:[#allocation63_spill] sm:$0xff]  ;;  %4551 = vmatpush.msra.mxu3 %v4550_v9 }
 0x47d   : > { %v3615_v37 = vadd.f32 %v3587_v63, %v3485_v57  ;;  %v3372_v57 = vadd.f32 %v3346_v6, %v3242_v61  ;;  %v4299_v63 = vld [vmem:[#allocation8 + $0x2c0] sm:$0xff] }
 0x47e   : > { %3865 = vmatmul.f32.gmra.mxu1 %v3699_v32  ;;  %4103 = vmatmul.f32.gmra.mxu3 %v4038_v34  ;;  %v3463_v32 = vpop.f32.mrf.mxu2  ;;  %v3113_v13 = vadd.f32 %v7958_v38, %v2999_v29  ;;  %v4161_v35 = vld [vmem:[#allocation8 + $0x200] sm:$0xff] }
 0x47f   : > { %3976 = vmatmul.f32.gmra.mxu2 %v3909_v12  ;;  %v3635_v14 = vadd.f32 %v6965_v58, %v3615_v37  ;;  %v3486_v34 = vadd.f32 %v3460_v1, %v3372_v57  ;;  %v7957_v37 = vld [vmem:[#allocation32_spill] sm:$0xff]  ;;  %v4433_v1 = vld [vmem:[#allocation8 + $0x360] sm:$0xff]  ;;  %4314 = vmatpush.msra.mxu1 %v4299_v63 }
 0x480   : > { %4440 = vmatpush.msra.mxu2 %v4433_v1  ;;  %v7960_v57 = vld [vmem:[#allocation55_spill] sm:$0xff]  ;;  %v4296_v63 = vld [vmem:[#allocation8 + $0x2a8] sm:$0xff]  ;;  %4192 = vmatpush.msra.mxu0 %v4161_v35 }
 0x481   : > { %v7143_v12 = vmax.f32 %v3635_v14, 0.0  ;;  %v4432_v14 = vld [vmem:[#allocation8 + $0x358] sm:$0xff]  ;;  %v2735_v8 = vadd.f32 %v7960_v57, %v7959_v43  ;;  %4315 = vmatpush.msra.mxu1 %v4298_v44  ;;  %v7961_v1 = vld [vmem:[#allocation56_spill] sm:$0xff]  ;;  %v3352_v38 = vpop.f32.mrf.mxu1 }
 0x482   : > { %v7148_v21 = vld [vmem:[#allocation3 + $0x58] sm:$0xff]  ;;  %4441 = vmatpush.msra.mxu2 %v4432_v14  ;;  %v4295_v14 = vld [vmem:[#allocation8 + $0x2a0] sm:$0xff] }
 0x483   : > { %7954 = vst [vmem:[#allocation50_spill] sm:$0xff] %v7143_v12  ;;  %v7150_v28 = vld [vmem:[#allocation3 + $0x52] sm:$0xff]  ;;  %v3700_v6 = vmul.f32 %v7148_v21, %v7956_v20  ;;  %v4039_v51 = vmul.f32 %v7148_v21, %v7949_v45  ;;  %3806 = vmatmul.f32.gmra.mxu0 %v7143_v12  ;;  %v3243_v45 = vadd.f32 %v7121_v15, %v3113_v13 }
 0x484   : > { %3667 = vst [vmem:[#allocation3 + $0x61] sm:$0xff] %v7143_v12  ;;  %v3910_v30 = vmul.f32 %v7150_v28, %v7957_v37  ;;  %v3590_v61 = vpop.f32.mrf.mxu3  ;;  %v4431_v37 = vld [vmem:[#allocation8 + $0x350] sm:$0xff]  ;;  %4316 = vmatpush.msra.mxu1 %v4297_v47  ;;  %v4548_v15 = vld [vmem:[#allocation8 + $0x3e8] sm:$0xff]  ;;  %v7968_v47 = vld [vmem:[#allocation66_spill] sm:$0xff] }
 0x485   : > { %v3616_v53 = vadd.f32 %v3590_v61, %v3486_v34  ;;  %v4549_v12 = vld [vmem:[#allocation8 + $0x3f0] sm:$0xff]  ;;  %v2870_v34 = vadd.f32 %v7961_v1, %v2735_v8  ;;  %4442 = vmatpush.msra.mxu2 %v4431_v37  ;;  %v3225_v8 = vpop.f32.mrf.mxu0  ;;  %v4294_v1 = vld [vmem:[#allocation8 + $0x298] sm:$0xff] }
 0x486   : > { %3868 = vmatmul.f32.gmra.mxu1 %v3700_v6  ;;  %4106 = vmatmul.f32.gmra.mxu3 %v4039_v51  ;;  %v3373_v6 = vadd.f32 %v3349_v26, %v3243_v45  ;;  %v7963_v51 = vld [vmem:[#allocation46_spill] sm:$0xff]  ;;  %v7966_v45 = vld [vmem:[#allocation33_spill] sm:$0xff] }
 0x487   : > { %3979 = vmatmul.f32.gmra.mxu2 %v3910_v30  ;;  %v3636_v29 = vadd.f32 %v6965_v58, %v3616_v53  ;;  %v4430_v30 = vld [vmem:[#allocation8 + $0x348] sm:$0xff]  ;;  %4552 = vmatpush.msra.mxu3 %v4549_v12  ;;  %v3000_v44 = vadd.f32 %v7963_v51, %v2870_v34  ;;  %v3466_v53 = vpop.f32.mrf.mxu2  ;;  %v7967_v26 = vld [vmem:[#allocation34_spill] sm:$0xff] }
 0x488   : > { %v3487_v13 = vadd.f32 %v3463_v32, %v3373_v6  ;;  %4317 = vmatpush.msra.mxu1 %v4296_v63  ;;  %4443 = vmatpush.msra.mxu2 %v4430_v30  ;;  %v4429_v32 = vld [vmem:[#allocation8 + $0x340] sm:$0xff]  ;;  %v4428_v6 = vld [vmem:[#allocation8 + $0x338] sm:$0xff]  ;;  %v7969_v51 = vld [vmem:[#allocation52_spill] sm:$0xff] }
 0x489   : > { %v7166_v61 = vmax.f32 %v3636_v29, 0.0  ;;  %v3114_v57 = vadd.f32 %v7968_v47, %v3000_v44  ;;  %4553 = vmatpush.msra.mxu3 %v4548_v15  ;;  %v4547_v63 = vld [vmem:[#allocation8 + $0x3e0] sm:$0xff]  ;;  %v4546_v30 = vld [vmem:[#allocation8 + $0x3d8] sm:$0xff]  ;;  %v4427_v15 = vld [vmem:[#allocation8 + $0x330] sm:$0xff] }
 0x48a   : > { %4318 = vmatpush.msra.mxu1 %v4295_v14  ;;  %4444 = vmatpush.msra.mxu2 %v4429_v32  ;;  %v4680_v44 = vld [vmem:[#allocation8 + $0x478] sm:$0xff]  ;;  %v7971_v14 = vld [vmem:[#allocation65_spill] sm:$0xff] }
 0x48b   : > { %7962 = vst [vmem:[#allocation22_spill] sm:$0xff] %v7166_v61  ;;  %v7169_v43 = vld [vmem:[#allocation3 + $0x60] sm:$0xff]  ;;  %3809 = vmatmul.f32.gmra.mxu0 %v7166_v61  ;;  %4554 = vmatpush.msra.mxu3 %v4547_v63 }
 0x48c   : > { %7964 = vst [vmem:[#allocation30_spill] sm:$0xff] %v7169_v43  ;;  %v7171_v9 = vld [vmem:[#allocation3 + $0x5a] sm:$0xff]  ;;  %v3701_v35 = vmul.f32 %v7169_v43, %v7966_v45  ;;  %v4040_v12 = vmul.f32 %v7169_v43, %v7915_v62  ;;  %v3593_v29 = vpop.f32.mrf.mxu3  ;;  %v3244_v62 = vadd.f32 %v7146_v11, %v3114_v57  ;;  %4319 = vmatpush.msra.mxu1 %v4294_v1  ;;  %v4292_v11 = vld [vmem:[#allocation8 + $0x288] sm:$0xff]  ;;  %v3355_v1 = vpop.f32.mrf.mxu1 }
 0x48d   : > { %7965 = vst [vmem:[#allocation39_spill] sm:$0xff] %v7171_v9  ;;  %v3911_v37 = vmul.f32 %v7171_v9, %v7967_v26  ;;  %v3617_v34 = vadd.f32 %v3593_v29, %v3487_v13  ;;  %v7970_v26 = vld [vmem:[#allocation57_spill] sm:$0xff]  ;;  %4445 = vmatpush.msra.mxu2 %v4428_v6  ;;  %4681 = vmatpush.msrb.mxu0 %v4680_v44  ;;  %v7978_v6 = vld [vmem:[#allocation67_spill] sm:$0xff] }
 0x48e   : > { %3668 = vst [vmem:[#allocation3 + $0x69] sm:$0xff] %v7166_v61  ;;  %3871 = vmatmul.f32.gmra.mxu1 %v3701_v35  ;;  %v2738_v9 = vadd.f32 %v7970_v26, %v7969_v51  ;;  %4109 = vmatmul.f32.gmra.mxu3 %v4040_v12  ;;  %v4293_v61 = vld [vmem:[#allocation8 + $0x290] sm:$0xff]  ;;  %v3374_v35 = vadd.f32 %v3352_v38, %v3244_v62  ;;  %v4426_v26 = vld [vmem:[#allocation8 + $0x328] sm:$0xff]  ;;  %v7973_v12 = vld [vmem:[#allocation58_spill] sm:$0xff] }
 0x48f   : > { %3982 = vmatmul.f32.gmra.mxu2 %v3911_v37  ;;  %v3637_v47 = vadd.f32 %v6965_v58, %v3617_v34  ;;  %v4545_v37 = vld [vmem:[#allocation8 + $0x3d0] sm:$0xff]  ;;  %4555 = vmatpush.msra.mxu3 %v4546_v30  ;;  %v7976_v62 = vld [vmem:[#allocation36_spill] sm:$0xff] }
 0x490   : > { %v2871_v13 = vadd.f32 %v7971_v14, %v2738_v9  ;;  %4320 = vmatpush.msra.mxu1 %v4293_v61  ;;  %v3488_v57 = vadd.f32 %v3466_v53, %v3374_v35  ;;  %4446 = vmatpush.msra.mxu2 %v4427_v15  ;;  %v7977_v9 = vld [vmem:[#allocation37_spill] sm:$0xff]  ;;  %v4291_v53 = vld [vmem:[#allocation8 + $0x280] sm:$0xff]  ;;  %v4544_v15 = vld [vmem:[#allocation8 + $0x3c8] sm:$0xff] }
 0x491   : > { %v7187_v29 = vmax.f32 %v3637_v47, 0.0  ;;  %4556 = vmatpush.msra.mxu3 %v4545_v37  ;;  %v4425_v14 = vld [vmem:[#allocation8 + $0x320] sm:$0xff] }
 0x492   : > { %v3001_v32 = vadd.f32 %v7973_v12, %v2871_v13  ;;  %4321 = vmatpush.msra.mxu1 %v4292_v11  ;;  %4447 = vmatpush.msra.mxu2 %v4426_v26  ;;  %v3469_v13 = vpop.f32.mrf.mxu2  ;;  %v4679_v12 = vld [vmem:[#allocation8 + $0x470] sm:$0xff]  ;;  %v4543_v37 = vld [vmem:[#allocation8 + $0x3c0] sm:$0xff] }
 0x493   : > { %7972 = vst [vmem:[#allocation48_spill] sm:$0xff] %v7187_v29  ;;  %3812 = vmatmul.f32.gmra.mxu0 %v7187_v29  ;;  %4557 = vmatpush.msra.mxu3 %v4544_v15  ;;  %v7981_v11 = vld [vmem:[#allocation45_spill] sm:$0xff]  ;;  %v7985_v15 = vld [vmem:[#allocation28_spill] sm:$0xff] }
 0x494   : > { %3669 = vst [vmem:[#allocation3 + $0x71] sm:$0xff] %v7187_v29  ;;  %v3115_v30 = vadd.f32 %v7978_v6, %v3001_v32  ;;  %v3596_v47 = vpop.f32.mrf.mxu3  ;;  %4322 = vmatpush.msra.mxu1 %v4291_v53  ;;  %v4424_v29 = vld [vmem:[#allocation8 + $0x318] sm:$0xff]  ;;  %4448 = vmatpush.msra.mxu2 %v4425_v14 }
 0x495   : > { %v7190_v51 = vld [vmem:[#allocation3 + $0x68] sm:$0xff]  ;;  %v3618_v35 = vadd.f32 %v3596_v47, %v3488_v57  ;;  %v4542_v57 = vld [vmem:[#allocation8 + $0x3b8] sm:$0xff]  ;;  %4682 = vmatpush.msrb.mxu0 %v4679_v12  ;;  %4558 = vmatpush.msra.mxu3 %v4543_v37  ;;  %v4678_v47 = vld [vmem:[#allocation8 + $0x468] sm:$0xff] }
 0x496   : > { %7974 = vst [vmem:[#allocation35_spill] sm:$0xff] %v7190_v51  ;;  %v7192_v63 = vld [vmem:[#allocation3 + $0x62] sm:$0xff]  ;;  %v3702_v38 = vmul.f32 %v7190_v51, %v7976_v62  ;;  %v4041_v61 = vmul.f32 %v7190_v51, %v7956_v20  ;;  %v3228_v20 = vpop.f32.mrf.mxu0  ;;  %v3245_v51 = vadd.f32 %v3225_v8, %v3115_v30  ;;  %5185 = vmatpush.msrb.mxu1 %v4680_v44  ;;  %v7982_v8 = vld [vmem:[#allocation60_spill] sm:$0xff] }
 0x497   : > { %7975 = vst [vmem:[#allocation38_spill] sm:$0xff] %v7192_v63  ;;  %v3912_v34 = vmul.f32 %v7192_v63, %v7977_v9  ;;  %v7979_v9 = vld [vmem:[#allocation53_spill] sm:$0xff]  ;;  %v7980_v63 = vld [vmem:[#allocation59_spill] sm:$0xff]  ;;  %v3638_v32 = vadd.f32 %v6965_v58, %v3618_v35  ;;  %4449 = vmatpush.msra.mxu2 %v4424_v29  ;;  %4559 = vmatpush.msra.mxu3 %v4542_v57  ;;  %v4422_v30 = vld [vmem:[#allocation8 + $0x308] sm:$0xff] }
 0x498   : > { %3874 = vmatmul.f32.gmra.mxu1 %v3702_v38  ;;  %v2741_v43 = vadd.f32 %v7980_v63, %v7979_v9  ;;  %4112 = vmatmul.f32.gmra.mxu3 %v4041_v61  ;;  %v3375_v6 = vadd.f32 %v3355_v1, %v3245_v51  ;;  %v4423_v63 = vld [vmem:[#allocation8 + $0x310] sm:$0xff] }
 0x499   : > { %3985 = vmatmul.f32.gmra.mxu2 %v3912_v34  ;;  %v7207_v38 = vmax.f32 %v3638_v32, 0.0  ;;  %5186 = vmatpush.msrb.mxu1 %v4679_v12  ;;  %v7984_v1 = vld [vmem:[#allocation41_spill] sm:$0xff]  ;;  %v3358_v12 = vpop.f32.mrf.mxu1  ;;  %v4421_v32 = vld [vmem:[#allocation8 + $0x300] sm:$0xff] }
 0x49a   : > { %v2872_v26 = vadd.f32 %v7981_v11, %v2741_v43  ;;  %v3489_v34 = vadd.f32 %v3469_v13, %v3375_v6  ;;  %v7983_v43 = vld [vmem:[#allocation40_spill] sm:$0xff]  ;;  %4450 = vmatpush.msra.mxu2 %v4423_v63  ;;  %v4541_v35 = vld [vmem:[#allocation8 + $0x3b0] sm:$0xff]  ;;  %4683 = vmatpush.msrb.mxu0 %v4678_v47  ;;  %v3472_v57 = vpop.f32.mrf.mxu2  ;;  %v4539_v63 = vld [vmem:[#allocation8 + $0x3a0] sm:$0xff] }
 0x49b   : > { %v7210_v61 = vld [vmem:[#allocation3 + $0x70] sm:$0xff]  ;;  %3670 = vst [vmem:[#allocation3 + $0x79] sm:$0xff] %v7207_v38  ;;  %3815 = vmatmul.f32.gmra.mxu0 %v7207_v38  ;;  %4560 = vmatpush.msra.mxu3 %v4541_v35  ;;  %v4677_v35 = vld [vmem:[#allocation8 + $0x460] sm:$0xff] }
 0x49c   : > { %v3002_v9 = vadd.f32 %v7982_v8, %v2872_v26  ;;  %v7212_v53 = vld [vmem:[#allocation3 + $0x6a] sm:$0xff]  ;;  %v3703_v51 = vmul.f32 %v7210_v61, %v7983_v43  ;;  %v4042_v29 = vmul.f32 %v7210_v61, %v7966_v45  ;;  %v3599_v13 = vpop.f32.mrf.mxu3  ;;  %4451 = vmatpush.msra.mxu2 %v4422_v30  ;;  %5187 = vmatpush.msrb.mxu1 %v4678_v47 }
 0x49d   : > { %v3913_v44 = vmul.f32 %v7212_v53, %v7984_v1  ;;  %v3619_v37 = vadd.f32 %v3599_v13, %v3489_v34  ;;  %v4540_v6 = vld [vmem:[#allocation8 + $0x3a8] sm:$0xff]  ;;  %v7988_v30 = vld [vmem:[#allocation43_spill] sm:$0xff]  ;;  %v7989_v13 = vld [vmem:[#allocation49_spill] sm:$0xff]  ;;  %4684 = vmatpush.msrb.mxu0 %v4677_v35 }
 0x49e   : > { %v3116_v14 = vadd.f32 %v7985_v15, %v3002_v9  ;;  %v7223_v26 = vpop.f32.mrf.mxu0  ;;  %4452 = vmatpush.msra.mxu2 %v4421_v32  ;;  %4561 = vmatpush.msra.mxu3 %v4540_v6 }
 0x49f   : > { %7986 = vst [vmem:[#allocation13_spill] sm:$0xff] %v7223_v26  ;;  %v3639_v8 = vadd.f32 %v6965_v58, %v3619_v37  ;;  %v4538_v37 = vld [vmem:[#allocation8 + $0x398] sm:$0xff]  ;;  %5188 = vmatpush.msrb.mxu1 %v4677_v35 }
 0x4a0   : > { %3877 = vmatmul.f32.gmra.mxu1 %v3703_v51  ;;  %v3246_v11 = vadd.f32 %v3228_v20, %v3116_v14  ;;  %4115 = vmatmul.f32.gmra.mxu3 %v4042_v29  ;;  %v4676_v35 = vld [vmem:[#allocation8 + $0x458] sm:$0xff] }
 0x4a1   : > { %3988 = vmatmul.f32.gmra.mxu2 %v3913_v44  ;;  %v7226_v15 = vmax.f32 %v3639_v8, 0.0  ;;  %v7987_v44 = vld [vmem:[#allocation44_spill] sm:$0xff]  ;;  %4562 = vmatpush.msra.mxu3 %v4539_v63 }
 0x4a2   : > { %v3376_v9 = vadd.f32 %v3358_v12, %v3246_v11  ;;  %v7228_v51 = vld [vmem:[#allocation3 + $0x78] sm:$0xff]  ;;  %4685 = vmatpush.msrb.mxu0 %v4676_v35  ;;  %5189 = vmatpush.msrb.mxu1 %v4676_v35 }
 0x4a3   : > { %v7230_v20 = vld [vmem:[#allocation3 + $0x72] sm:$0xff]  ;;  %3671 = vst [vmem:[#allocation3 + $0x81] sm:$0xff] %v7226_v15  ;;  %v3704_v29 = vmul.f32 %v7228_v51, %v7987_v44  ;;  %v4043_v47 = vmul.f32 %v7228_v51, %v7976_v62  ;;  %4193 = vmatmul.f32.vlgmr.msra.gmra.mxu0 %v7989_v13  ;;  %4563 = vmatpush.msra.mxu3 %v4538_v37 }
 0x4a4   : > { %v3490_v34 = vadd.f32 %v3472_v57, %v3376_v9  ;;  %v3914_v14 = vmul.f32 %v7230_v20, %v7988_v30  ;;  %v3602_v12 = vpop.f32.mrf.mxu3  ;;  %v4537_v11 = vld [vmem:[#allocation8 + $0x390] sm:$0xff]  ;;  %v7241_v57 = vpop.f32.mrf.mxu1  ;;  %v4536_v9 = vld [vmem:[#allocation8 + $0x388] sm:$0xff] }
 0x4a5   : > { %4564 = vmatpush.msra.mxu3 %v4537_v11  ;;  %v4675_v35 = vld [vmem:[#allocation8 + $0x450] sm:$0xff] }
 0x4a6   : > { %v3620_v32 = vadd.f32 %v3602_v12, %v3490_v34  ;;  %v3774_v8 = vpop.f32.mrf.mxu0  ;;  %v7990_v34 = vld [vmem:[#allocation47_spill] sm:$0xff]  ;;  %4686 = vmatpush.msrb.mxu0 %v4675_v35  ;;  %5190 = vmatpush.msrb.mxu1 %v4675_v35  ;;  %v7994_v35 = vld [vmem:[#allocation14_spill] sm:$0xff] }
 0x4a7   : > { %4565 = vmatpush.msra.mxu3 %v4536_v9  ;;  %v4535_v12 = vld [vmem:[#allocation8 + $0x380] sm:$0xff] }
 0x4a8   : > { %3880 = vmatmul.f32.gmra.mxu1 %v3704_v29  ;;  %4118 = vmatmul.f32.gmra.mxu3 %v4043_v47  ;;  %v3640_v6 = vadd.f32 %v6965_v58, %v3620_v32 }
 0x4a9   : > { %3991 = vmatmul.f32.gmra.mxu2 %v3914_v14  ;;  %v7991_v14 = vld [vmem:[#allocation12_spill] sm:$0xff]  ;;  %4566 = vmatpush.msra.mxu3 %v4535_v12  ;;  %v4276_v12 = vmul.f32 %v7028_v4, %v7923_v18  ;;  %v4277_v4 = vmul.f32 %v7047_v2, %v7925_v54 }
 0x4aa   : > { %v7243_v26 = vmax.f32 %v3640_v6, 0.0  ;;  %v7245_v63 = vld [vmem:[#allocation3 + $0x7a] sm:$0xff]  ;;  %v4274_v47 = vmul.f32 %v6993_v42, %v7991_v14  ;;  %v4275_v42 = vmul.f32 %v7010_v24, %v5702_v55  ;;  %v4405_v24 = vmul.f32 %v7026_v17, %v7926_v39  ;;  %v4673_v17 = vld [vmem:[#allocation8 + $0x440] sm:$0xff] }
 0x4ab   : > { %v7247_v13 = vld [vmem:[#allocation3 + $0x80] sm:$0xff]  ;;  %v3915_v29 = vmul.f32 %v7245_v63, %v7990_v34  ;;  %4196 = vmatmul.f32.gmra.mxu0 %v6980_v59  ;;  %v7992_v59 = vld [vmem:[#allocation11_spill] sm:$0xff]  ;;  %v4406_v39 = vmul.f32 %v7045_v7, %v7994_v35  ;;  %v7995_v7 = vld [vmem:[#allocation21_spill] sm:$0xff] }
 0x4ac   : > { %3672 = vst [vmem:[#allocation3 + $0x89] sm:$0xff] %v7243_v26  ;;  %v4044_v58 = vmul.f32 %v7247_v13, %v7983_v43  ;;  %v3839_v32 = vpop.f32.mrf.mxu1  ;;  %v4404_v9 = vmul.f32 %v7008_v36, %v7992_v59  ;;  %v4674_v36 = vld [vmem:[#allocation8 + $0x448] sm:$0xff]  ;;  %v4278_v35 = vmul.f32 %v7064_v41, %v7995_v7 }
 0x4ad   : > { %4687 = vmatpush.msrb.mxu0 %v4674_v36  ;;  %5191 = vmatpush.msrb.mxu1 %v4674_v36 }
 0x4af   : > { %4688 = vmatpush.msrb.mxu0 %v4673_v17  ;;  %5192 = vmatpush.msrb.mxu1 %v4673_v17 }
 0x4b0   : > { %4323 = vmatmul.f32.vlgmr.msra.gmra.mxu1 %v4274_v47  ;;  %4121 = vmatmul.f32.gmra.mxu3 %v4044_v58  ;;  %v3777_v37 = vpop.f32.mrf.mxu0 }
 0x4b1   : > { %3994 = vmatmul.f32.gmra.mxu2 %v3915_v29  ;;  %v7266_v29 = vpop.f32.mrf.mxu2 }
 0x4b3   : > { %v7257_v11 = vld [vmem:[#allocation3 + $0x88] sm:$0xff]  ;;  %4199 = vmatmul.f32.gmra.mxu0 %v6991_v3 }
 0x4b4   : > { %v4045_v6 = vmul.f32 %v7257_v11, %v7987_v44 }
 0x4b8   : > { %4326 = vmatmul.f32.gmra.mxu1 %v4275_v42  ;;  %4124 = vmatmul.f32.gmra.mxu3 %v4045_v6  ;;  %v3780_v58 = vpop.f32.mrf.mxu0 }
 0x4b9   : > { %4453 = vmatmul.f32.vlgmr.msra.gmra.mxu2 %v4404_v9 }
 0x4bb   : > { %v3842_v47 = vpop.f32.mrf.mxu1  ;;  %4202 = vmatmul.f32.gmra.mxu0 %v7006_v22 }
 0x4c0   : > { %4329 = vmatmul.f32.gmra.mxu1 %v4276_v12  ;;  %4567 = vmatmul.f32.vlgmr.msra.gmra.mxu3 %v6991_v3  ;;  %v3783_v42 = vpop.f32.mrf.mxu0  ;;  %v3840_v12 = vadd.f32 %v3839_v32, %v3774_v8  ;;  %v3843_v3 = vadd.f32 %v3842_v47, %v3777_v37  ;;  %v4672_v8 = vld [vmem:[#allocation8 + $0x438] sm:$0xff] }
 0x4c1   : > { %4456 = vmatmul.f32.gmra.mxu2 %v4405_v24  ;;  %v7274_v59 = vpop.f32.mrf.mxu3  ;;  %4689 = vmatpush.msrb.mxu0 %v4672_v8 }
 0x4c2   : > { %v3953_v6 = vpop.f32.mrf.mxu2  ;;  %7993 = vst [vmem:[#allocation24_spill] sm:$0xff] %v7274_v59  ;;  %v7996_v59 = vld [vmem:[#allocation16_spill] sm:$0xff]  ;;  %5193 = vmatpush.msrb.mxu1 %v4672_v8 }
 0x4c3   : > { %v3845_v9 = vpop.f32.mrf.mxu1  ;;  %4205 = vmatmul.f32.gmra.mxu0 %v7024_v46  ;;  %v3999_v24 = vadd.f32 %v3953_v6, %v3840_v12  ;;  %v4407_v17 = vmul.f32 %v7062_v60, %v7996_v59  ;;  %v7998_v59 = vld [vmem:[#allocation18_spill] sm:$0xff]  ;;  %v4671_v12 = vld [vmem:[#allocation8 + $0x430] sm:$0xff]  ;;  %v4670_v8 = vld [vmem:[#allocation8 + $0x428] sm:$0xff] }
 0x4c4   : > { %4690 = vmatpush.msrb.mxu0 %v4671_v12  ;;  %5194 = vmatpush.msrb.mxu1 %v4671_v12 }
 0x4c6   : > { %4691 = vmatpush.msrb.mxu0 %v4670_v8  ;;  %5195 = vmatpush.msrb.mxu1 %v4670_v8 }
 0x4c8   : > { %4332 = vmatmul.f32.gmra.mxu1 %v4277_v4  ;;  %4570 = vmatmul.f32.gmra.mxu3 %v7006_v22  ;;  %v3786_v18 = vpop.f32.mrf.mxu0  ;;  %v3846_v22 = vadd.f32 %v3845_v9, %v3780_v58  ;;  %v7997_v4 = vld [vmem:[#allocation23_spill] sm:$0xff] }
 0x4c9   : > { %4459 = vmatmul.f32.gmra.mxu2 %v4406_v39  ;;  %v4083_v55 = vpop.f32.mrf.mxu3  ;;  %v4279_v60 = vmul.f32 %v7085_v50, %v7997_v4  ;;  %v4408_v39 = vmul.f32 %v7083_v31, %v7998_v59 }
 0x4ca   : > { %v3956_v36 = vpop.f32.mrf.mxu2  ;;  %v7282_v2 = vadd.f32 %v4083_v55, %v3999_v24 }
 0x4cb   : > { %v4000_v44 = vadd.f32 %v3956_v36, %v3843_v3  ;;  %v3848_v54 = vpop.f32.mrf.mxu1  ;;  %4208 = vmatmul.f32.gmra.mxu0 %v7041_v23  ;;  %v7999_v36 = vld [vmem:[#allocation25_spill] sm:$0xff] }
 0x4cc   : > { %v4280_v31 = vmul.f32 %v7106_v27, %v7999_v36 }
 0x4d0   : > { %4335 = vmatmul.f32.gmra.mxu1 %v4278_v35  ;;  %4573 = vmatmul.f32.gmra.mxu3 %v7024_v46  ;;  %v3789_v55 = vpop.f32.mrf.mxu0  ;;  %v3849_v46 = vadd.f32 %v3848_v54, %v3783_v42  ;;  %v8000_v35 = vld [vmem:[#allocation20_spill] sm:$0xff] }
 0x4d1   : > { %4462 = vmatmul.f32.gmra.mxu2 %v4407_v17  ;;  %v4086_v47 = vpop.f32.mrf.mxu3  ;;  %v4409_v17 = vmul.f32 %v7104_v52, %v8000_v35  ;;  %v4281_v52 = vmul.f32 %v7128_v0, %v5841_v5  ;;  %v8002_v35 = vld [vmem:[#allocation26_spill] sm:$0xff] }
 0x4d2   : > { %v3959_v37 = vpop.f32.mrf.mxu2  ;;  %v7290_v6 = vadd.f32 %v4086_v47, %v4000_v44  ;;  %v4410_v47 = vmul.f32 %v7126_v56, %v7847_v33  ;;  %v4282_v33 = vmul.f32 %v7150_v28, %v7902_v40  ;;  %v4411_v56 = vmul.f32 %v7148_v21, %v7947_v16  ;;  %v8001_v16 = vld [vmem:[#allocation39_spill] sm:$0xff] }
 0x4d3   : > { %v4001_v32 = vadd.f32 %v3959_v37, %v3846_v22  ;;  %v3851_v41 = vpop.f32.mrf.mxu1  ;;  %4211 = vmatmul.f32.gmra.mxu0 %v7060_v49  ;;  %v4283_v21 = vmul.f32 %v8001_v16, %v7907_v25  ;;  %v8011_v16 = vld [vmem:[#allocation29_spill] sm:$0xff] }
 0x4d4   : > { %v3852_v54 = vadd.f32 %v3851_v41, %v3786_v18 }
 0x4d8   : > { %4338 = vmatmul.f32.gmra.mxu1 %v4279_v60  ;;  %4576 = vmatmul.f32.gmra.mxu3 %v7041_v23  ;;  %v3792_v44 = vpop.f32.mrf.mxu0  ;;  %v4669_v60 = vld [vmem:[#allocation8 + $0x420] sm:$0xff] }
 0x4d9   : > { %4465 = vmatmul.f32.gmra.mxu2 %v4408_v39  ;;  %v4089_v3 = vpop.f32.mrf.mxu3  ;;  %4692 = vmatpush.msrb.mxu0 %v4669_v60 }
 0x4da   : > { %v3962_v58 = vpop.f32.mrf.mxu2  ;;  %v7298_v24 = vadd.f32 %v4089_v3, %v4001_v32  ;;  %5196 = vmatpush.msrb.mxu1 %v4669_v60 }
 0x4db   : > { %v4002_v9 = vadd.f32 %v3962_v58, %v3849_v46  ;;  %v3854_v50 = vpop.f32.mrf.mxu1  ;;  %4214 = vmatmul.f32.gmra.mxu0 %v7080_v48  ;;  %v4668_v46 = vld [vmem:[#allocation8 + $0x418] sm:$0xff] }
 0x4dc   : > { %v3855_v18 = vadd.f32 %v3854_v50, %v3789_v55  ;;  %4693 = vmatpush.msrb.mxu0 %v4668_v46  ;;  %5197 = vmatpush.msrb.mxu1 %v4668_v46  ;;  %v4666_v46 = vld [vmem:[#allocation8 + $0x408] sm:$0xff] }
 0x4e0   : > { %4341 = vmatmul.f32.gmra.mxu1 %v4280_v31  ;;  %4579 = vmatmul.f32.gmra.mxu3 %v7060_v49  ;;  %v3795_v42 = vpop.f32.mrf.mxu0 }
 0x4e1   : > { %4468 = vmatmul.f32.gmra.mxu2 %v4409_v17  ;;  %v4092_v37 = vpop.f32.mrf.mxu3  ;;  %v8003_v17 = vld [vmem:[#allocation30_spill] sm:$0xff] }
 0x4e2   : > { %v3965_v23 = vpop.f32.mrf.mxu2  ;;  %v7306_v32 = vadd.f32 %v4092_v37, %v4002_v9  ;;  %v4412_v8 = vmul.f32 %v8003_v17, %v8002_v35  ;;  %v8012_v35 = vld [vmem:[#allocation48_spill] sm:$0xff]  ;;  %v4665_v17 = vld [vmem:[#allocation8 + $0x400] sm:$0xff] }
 0x4e3   : > { %v4003_v22 = vadd.f32 %v3965_v23, %v3852_v54  ;;  %v3857_v27 = vpop.f32.mrf.mxu1  ;;  %4217 = vmatmul.f32.gmra.mxu0 %v7101_v19  ;;  %v8004_v54 = vld [vmem:[#allocation50_spill] sm:$0xff]  ;;  %v4667_v23 = vld [vmem:[#allocation8 + $0x410] sm:$0xff] }
 0x4e4   : > { %4694 = vmatpush.msrb.mxu0 %v4667_v23  ;;  %5198 = vmatpush.msrb.mxu1 %v4667_v23 }
 0x4e6   : > { %4695 = vmatpush.msrb.mxu0 %v4666_v46  ;;  %5199 = vmatpush.msrb.mxu1 %v4666_v46 }
 0x4e8   : > { %4344 = vmatmul.f32.gmra.mxu1 %v4281_v52  ;;  %4582 = vmatmul.f32.gmra.mxu3 %v7080_v48  ;;  %v3798_v41 = vpop.f32.mrf.mxu0  ;;  %v3858_v48 = vadd.f32 %v3857_v27, %v3792_v44 }
 0x4e9   : > { %4471 = vmatmul.f32.gmra.mxu2 %v4410_v47  ;;  %v4095_v39 = vpop.f32.mrf.mxu3  ;;  %4696 = vmatpush.msrb.mxu0 %v4665_v17 }
 0x4ea   : > { %v3968_v49 = vpop.f32.mrf.mxu2  ;;  %v7314_v12 = vadd.f32 %v4095_v39, %v4003_v22  ;;  %v8008_v39 = vld [vmem:[#allocation35_spill] sm:$0xff]  ;;  %5200 = vmatpush.msrb.mxu1 %v4665_v17 }
 0x4eb   : > { %v4004_v59 = vadd.f32 %v3968_v49, %v3855_v18  ;;  %v3860_v0 = vpop.f32.mrf.mxu1  ;;  %4220 = vmatmul.f32.gmra.mxu0 %v7123_v10  ;;  %v8005_v18 = vld [vmem:[#allocation32_spill] sm:$0xff]  ;;  %v8006_v49 = vld [vmem:[#allocation38_spill] sm:$0xff] }
 0x4f0   : > { %4347 = vmatmul.f32.gmra.mxu1 %v4282_v33  ;;  %4585 = vmatmul.f32.gmra.mxu3 %v7101_v19  ;;  %v3801_v58 = vpop.f32.mrf.mxu0  ;;  %v3861_v19 = vadd.f32 %v3860_v0, %v3795_v42 }
 0x4f1   : > { %4474 = vmatmul.f32.gmra.mxu2 %v4411_v56  ;;  %v4098_v3 = vpop.f32.mrf.mxu3  ;;  %v8009_v56 = vld [vmem:[#allocation22_spill] sm:$0xff] }
 0x4f2   : > { %v3971_v55 = vpop.f32.mrf.mxu2  ;;  %v7322_v50 = vadd.f32 %v4098_v3, %v4004_v59  ;;  %v8007_v59 = vld [vmem:[#allocation27_spill] sm:$0xff]  ;;  %v8010_v3 = vld [vmem:[#allocation34_spill] sm:$0xff] }
 0x4f3   : > { %v4005_v9 = vadd.f32 %v3971_v55, %v3858_v48  ;;  %v3863_v28 = vpop.f32.mrf.mxu1  ;;  %4223 = vmatmul.f32.gmra.mxu0 %v8004_v54  ;;  %v4413_v33 = vmul.f32 %v8008_v39, %v8007_v59 }
 0x4f4   : > { %v3864_v31 = vadd.f32 %v3863_v28, %v3798_v41  ;;  %v4284_v41 = vmul.f32 %v8006_v49, %v8005_v18  ;;  %v4285_v28 = vmul.f32 %v7212_v53, %v8010_v3 }
 0x4f8   : > { %4350 = vmatmul.f32.gmra.mxu1 %v4283_v21  ;;  %4588 = vmatmul.f32.gmra.mxu3 %v7123_v10  ;;  %v3804_v22 = vpop.f32.mrf.mxu0  ;;  %v4414_v21 = vmul.f32 %v7210_v61, %v8011_v16 }
 0x4f9   : > { %4477 = vmatmul.f32.gmra.mxu2 %v4412_v8  ;;  %v4101_v27 = vpop.f32.mrf.mxu3 }
 0x4fa   : > { %v3974_v44 = vpop.f32.mrf.mxu2  ;;  %v7330_v52 = vadd.f32 %v4101_v27, %v4005_v9 }
 0x4fb   : > { %v4006_v37 = vadd.f32 %v3974_v44, %v3861_v19  ;;  %v3866_v47 = vpop.f32.mrf.mxu1  ;;  %4226 = vmatmul.f32.gmra.mxu0 %v8009_v56 }
 0x4fc   : > { %v3867_v60 = vadd.f32 %v3866_v47, %v3801_v58 }
 0x500   : > { %4353 = vmatmul.f32.gmra.mxu1 %v4284_v41  ;;  %4591 = vmatmul.f32.gmra.mxu3 %v8004_v54  ;;  %v3807_v42 = vpop.f32.mrf.mxu0 }
 0x501   : > { %4480 = vmatmul.f32.gmra.mxu2 %v4413_v33  ;;  %v4104_v48 = vpop.f32.mrf.mxu3 }
 0x502   : > { %v3977_v10 = vpop.f32.mrf.mxu2  ;;  %v7338_v55 = vadd.f32 %v4104_v48, %v4006_v37  ;;  %v8014_v37 = vld [vmem:[#allocation31_spill] sm:$0xff] }
 0x503   : > { %v4007_v0 = vadd.f32 %v3977_v10, %v3864_v31  ;;  %v3869_v58 = vpop.f32.mrf.mxu1  ;;  %4229 = vmatmul.f32.gmra.mxu0 %v8012_v35  ;;  %v4415_v27 = vmul.f32 %v7228_v51, %v8014_v37  ;;  %v4416_v51 = vmul.f32 %v7247_v13, %v7966_v45  ;;  %v7362_v10 = vld [vmem:[#allocation3 + $0x82] sm:$0xff]  ;;  %v4417_v45 = vmul.f32 %v7257_v11, %v7976_v62  ;;  %v8015_v62 = vld [vmem:[#allocation13_spill] sm:$0xff] }
 0x504   : > { %v3870_v9 = vadd.f32 %v3869_v58, %v3804_v22  ;;  %v8013_v22 = vld [vmem:[#allocation37_spill] sm:$0xff]  ;;  %v4288_v16 = vmul.f32 %v7362_v10, %v7988_v30  ;;  %v3837_v11 = vadd.f32 %v7241_v57, %v8015_v62 }
 0x505   : > { %v4286_v61 = vmul.f32 %v7230_v20, %v8013_v22 }
 0x506   : > { %v3998_v37 = vadd.f32 %v7266_v29, %v3837_v11 }
 0x508   : > { %4356 = vmatmul.f32.gmra.mxu1 %v4285_v28  ;;  %4594 = vmatmul.f32.gmra.mxu3 %v8009_v56  ;;  %v3810_v8 = vpop.f32.mrf.mxu0  ;;  %v4287_v56 = vmul.f32 %v7245_v63, %v7984_v1 }
 0x509   : > { %4483 = vmatmul.f32.gmra.mxu2 %v4414_v21  ;;  %v4107_v23 = vpop.f32.mrf.mxu3  ;;  %v7372_v21 = vld [vmem:[#allocation3 + $0x8a] sm:$0xff] }
 0x50a   : > { %v3980_v31 = vpop.f32.mrf.mxu2  ;;  %v7346_v19 = vadd.f32 %v4107_v23, %v4007_v0 }
 0x50b   : > { %v4008_v54 = vadd.f32 %v3980_v31, %v3867_v60  ;;  %v3872_v44 = vpop.f32.mrf.mxu1  ;;  %4232 = vmatmul.f32.gmra.mxu0 %v7207_v38 }
 0x50c   : > { %v3873_v53 = vadd.f32 %v3872_v44, %v3807_v42 }
 0x510   : > { %4359 = vmatmul.f32.gmra.mxu1 %v4286_v61  ;;  %4597 = vmatmul.f32.gmra.mxu3 %v8012_v35  ;;  %v3813_v49 = vpop.f32.mrf.mxu0  ;;  %v4402_v35 = vld [vmem:[#allocation3 + $0x90] sm:$0xff] }
 0x511   : > { %4486 = vmatmul.f32.gmra.mxu2 %v4415_v27  ;;  %v4110_v41 = vpop.f32.mrf.mxu3  ;;  %v4418_v61 = vmul.f32 %v4402_v35, %v7983_v43  ;;  %v8016_v27 = vld [vmem:[#allocation24_spill] sm:$0xff] }
 0x512   : > { %v3983_v47 = vpop.f32.mrf.mxu2  ;;  %v7354_v59 = vadd.f32 %v4110_v41, %v4008_v54  ;;  %v4647_v41 = vld [vmem:[#allocation3 + $0x9a] sm:$0xff] }
 0x513   : > { %v4009_v60 = vadd.f32 %v3983_v47, %v3870_v9  ;;  %4235 = vmatmul.f32.gmra.mxu0 %v7226_v15  ;;  %v4128_v47 = vadd.f32 %v8016_v27, %v3998_v37 }
 0x515   : > { %v3875_v39 = vpop.f32.mrf.mxu1 }
 0x516   : > { %v3876_v33 = vadd.f32 %v3875_v39, %v3810_v8 }
 0x518   : > { %4362 = vmatmul.f32.gmra.mxu1 %v4287_v56  ;;  %4600 = vmatmul.f32.gmra.mxu3 %v7207_v38  ;;  %v3816_v42 = vpop.f32.mrf.mxu0  ;;  %v4632_v38 = vld [vmem:[#allocation3 + $0x22] sm:$0xff] }
 0x519   : > { %4489 = vmatmul.f32.gmra.mxu2 %v4416_v51  ;;  %v4648_v54 = vmul.f32 %v4632_v38, %v7991_v14  ;;  %v4633_v14 = vld [vmem:[#allocation3 + $0x2a] sm:$0xff] }
 0x51a   : > { %v8017_v51 = vld [vmem:[#allocation15_spill] sm:$0xff] }
 0x51b   : > { %v4113_v48 = vpop.f32.mrf.mxu3  ;;  %4238 = vmatmul.f32.gmra.mxu0 %v7243_v26 }
 0x51c   : > { %v3986_v46 = vpop.f32.mrf.mxu2  ;;  %v7364_v58 = vadd.f32 %v4113_v48, %v4009_v60  ;;  %v4403_v60 = vld [vmem:[#allocation3 + $0x98] sm:$0xff] }
 0x51d   : > { %v4010_v0 = vadd.f32 %v3986_v46, %v3873_v53  ;;  %v3878_v9 = vpop.f32.mrf.mxu1  ;;  %v4649_v46 = vmul.f32 %v4633_v14, %v8017_v51  ;;  %v8020_v14 = vld [vmem:[#allocation19_spill] sm:$0xff] }
 0x51e   : > { %v3879_v28 = vadd.f32 %v3878_v9, %v3813_v49  ;;  %v5253_v9 = vld [vmem:[#allocation3] sm:$0xff] }
 0x520   : > { %4365 = vmatmul.f32.gmra.mxu1 %v4288_v16  ;;  %4603 = vmatmul.f32.gmra.mxu3 %v7226_v15  ;;  %v4194_v17 = vpop.f32.mrf.mxu0  ;;  %v4289_v15 = vmul.f32 %v7372_v21, %v7990_v34  ;;  %v4634_v16 = vld [vmem:[#allocation3 + $0x32] sm:$0xff] }
 0x521   : > { %4492 = vmatmul.f32.gmra.mxu2 %v4417_v45  ;;  %v4242_v56 = vadd.f32 %v4194_v17, %v4128_v47  ;;  %v8019_v17 = vld [vmem:[#allocation17_spill] sm:$0xff] }
 0x523   : > { %v4116_v8 = vpop.f32.mrf.mxu3  ;;  %4697 = vmatmul.f32.vlgmr.msrb.gmra.mxu0 %v4648_v54 }
 0x524   : > { %v3989_v13 = vpop.f32.mrf.mxu2  ;;  %v7375_v23 = vadd.f32 %v4116_v8, %v4010_v0  ;;  %v8018_v0 = vld [vmem:[#allocation44_spill] sm:$0xff] }
 0x525   : > { %v4011_v31 = vadd.f32 %v3989_v13, %v3876_v33  ;;  %v3881_v44 = vpop.f32.mrf.mxu1  ;;  %v4419_v48 = vmul.f32 %v4403_v60, %v8018_v0 }
 0x526   : > { %v3882_v53 = vadd.f32 %v3881_v44, %v3816_v42 }
 0x528   : > { %4368 = vmatmul.f32.gmra.mxu1 %v4289_v15  ;;  %4606 = vmatmul.f32.gmra.mxu3 %v7243_v26  ;;  %v4197_v57 = vpop.f32.mrf.mxu0  ;;  %v4663_v26 = vmul.f32 %v4647_v41, %v7990_v34  ;;  %v4635_v34 = vld [vmem:[#allocation3 + $0x3a] sm:$0xff] }
 0x529   : > { %4495 = vmatmul.f32.gmra.mxu2 %v4418_v61  ;;  %v4243_v35 = vadd.f32 %v4197_v57, %v7282_v2 }
 0x52b   : > { %v4119_v33 = vpop.f32.mrf.mxu3  ;;  %4700 = vmatmul.f32.gmra.mxu0 %v4649_v46 }
 0x52c   : > { %v3992_v49 = vpop.f32.mrf.mxu2  ;;  %v7386_v43 = vadd.f32 %v4119_v33, %v4011_v31  ;;  %v4650_v31 = vmul.f32 %v4634_v16, %v8019_v17 }
 0x52d   : > { %v4012_v39 = vadd.f32 %v3992_v49, %v3879_v28  ;;  %v4324_v42 = vpop.f32.mrf.mxu1  ;;  %v4636_v49 = vld [vmem:[#allocation3 + $0x42] sm:$0xff] }
 0x52e   : > { %v4372_v29 = vadd.f32 %v4324_v42, %v4242_v56  ;;  %v4652_v56 = vmul.f32 %v4636_v49, %v7995_v7  ;;  %v4637_v42 = vld [vmem:[#allocation3 + $0x4a] sm:$0xff]  ;;  %v4638_v7 = vld [vmem:[#allocation3 + $0x52] sm:$0xff] }
 0x52f   : > { %v4653_v16 = vmul.f32 %v4637_v42, %v7997_v4  ;;  %v4641_v49 = vld [vmem:[#allocation3 + $0x6a] sm:$0xff] }
 0x530   : > { %4742 = vmatmul.f32.vlgmr.msrb.gmra.mxu1 %v4663_v26  ;;  %4609 = vmatmul.f32.gmra.mxu3 %v5253_v9  ;;  %v4200_v28 = vpop.f32.mrf.mxu0 }
 0x531   : > { %4498 = vmatmul.f32.gmra.mxu2 %v4419_v48  ;;  %v4244_v61 = vadd.f32 %v4200_v28, %v7290_v6 }
 0x533   : > { %v4122_v13 = vpop.f32.mrf.mxu3  ;;  %4703 = vmatmul.f32.gmra.mxu0 %v4650_v31  ;;  %v4654_v31 = vmul.f32 %v4638_v7, %v7999_v36 }
 0x534   : > { %v3995_v45 = vpop.f32.mrf.mxu2  ;;  %v7392_v8 = vadd.f32 %v4122_v13, %v4012_v39 }
 0x535   : > { %v4013_v38 = vadd.f32 %v3995_v45, %v3882_v53  ;;  %v4327_v54 = vpop.f32.mrf.mxu1  ;;  %v4651_v53 = vmul.f32 %v4635_v34, %v8020_v14 }
 0x536   : > { %v4373_v44 = vadd.f32 %v4327_v54, %v4243_v35 }
 0x538   : > { %4612 = vmatmul.f32.gmra.mxu3 %v5253_v9  ;;  %v4203_v11 = vpop.f32.mrf.mxu0 }
 0x539   : > { %v4245_v57 = vadd.f32 %v4203_v11, %v7298_v24 }
 0x53b   : > { %v4125_v15 = vpop.f32.mrf.mxu3  ;;  %4706 = vmatmul.f32.gmra.mxu0 %v4651_v53 }
 0x53c   : > { %v4454_v62 = vpop.f32.mrf.mxu2  ;;  %v7396_v27 = vadd.f32 %v4125_v15, %v4013_v38 }
 0x53d   : > { %v4502_v37 = vadd.f32 %v4454_v62, %v4372_v29  ;;  %v4330_v2 = vpop.f32.mrf.mxu1 }
 0x53e   : > { %v4374_v47 = vadd.f32 %v4330_v2, %v4244_v61 }
 0x540   : > { %v4206_v41 = vpop.f32.mrf.mxu0 }
 0x541   : > { %v4246_v48 = vadd.f32 %v4206_v41, %v7306_v32  ;;  %v4639_v32 = vld [vmem:[#allocation3 + $0x5a] sm:$0xff] }
 0x542   : > { %v4655_v15 = vmul.f32 %v4639_v32, %v5841_v5  ;;  %v4657_v5 = vmul.f32 %v4641_v49, %v7907_v25 }
 0x543   : > { %v4568_v33 = vpop.f32.mrf.mxu3  ;;  %4709 = vmatmul.f32.gmra.mxu0 %v4652_v56 }
 0x544   : > { %v4457_v60 = vpop.f32.mrf.mxu2  ;;  %v7400_v51 = vadd.f32 %v4568_v33, %v4502_v37  ;;  %v4640_v37 = vld [vmem:[#allocation3 + $0x62] sm:$0xff]  ;;  %v4659_v33 = vmul.f32 %v7245_v63, %v8010_v3 }
 0x545   : > { %v4503_v39 = vadd.f32 %v4457_v60, %v4373_v44  ;;  %v4333_v6 = vpop.f32.mrf.mxu1  ;;  %v4656_v2 = vmul.f32 %v4640_v37, %v7902_v40 }
 0x546   : > { %v4375_v46 = vadd.f32 %v4333_v6, %v4245_v57 }
 0x548   : > { %v7402_v0 = vpop.f32.mrf.mxu0 }
 0x54b   : > { %v4571_v9 = vpop.f32.mrf.mxu3  ;;  %4712 = vmatmul.f32.gmra.mxu0 %v4653_v16 }
 0x54c   : > { %v4460_v29 = vpop.f32.mrf.mxu2  ;;  %v7406_v24 = vadd.f32 %v4571_v9, %v4503_v39 }
 0x54d   : > { %v4504_v26 = vadd.f32 %v4460_v29, %v4374_v47  ;;  %v4336_v45 = vpop.f32.mrf.mxu1 }
 0x54e   : > { %v4376_v28 = vadd.f32 %v4336_v45, %v4246_v48  ;;  %v4851_v45 = vld [vmem:[%s7627_s14] sm:$0xff] }
 0x550   : > { %v7408_v13 = vpop.f32.mrf.mxu0 }
 0x553   : > { %v4574_v17 = vpop.f32.mrf.mxu3  ;;  %4715 = vmatmul.f32.gmra.mxu0 %v4654_v31 }
 0x554   : > { %v4463_v38 = vpop.f32.mrf.mxu2  ;;  %v7411_v54 = vadd.f32 %v4574_v17, %v4504_v26 }
 0x555   : > { %v4505_v35 = vadd.f32 %v4463_v38, %v4375_v46 }
 0x558   : > { %v4215_v34 = vpop.f32.mrf.mxu0 }
 0x559   : > { %v7414_v11 = vadd.f32 %v4215_v34, %v7330_v52 }
 0x55b   : > { %v4577_v62 = vpop.f32.mrf.mxu3  ;;  %4718 = vmatmul.f32.gmra.mxu0 %v4655_v15 }
 0x55c   : > { %v4466_v44 = vpop.f32.mrf.mxu2  ;;  %v7417_v61 = vadd.f32 %v4577_v62, %v4505_v35 }
 0x55d   : > { %v4506_v4 = vadd.f32 %v4466_v44, %v4376_v28  ;;  %v4799_v28 = vld [vmem:[%s7626_s13 + $0x8] sm:$0xff] }
 0x560   : > { %v4218_v14 = vpop.f32.mrf.mxu0 }
 0x561   : > { %v7420_v36 = vadd.f32 %v4218_v14, %v7338_v55  ;;  %v4658_v55 = vmul.f32 %v7230_v20, %v8005_v18  ;;  %v4661_v18 = vmul.f32 %v7372_v21, %v7984_v1  ;;  %v7460_v1 = vld [vmem:[%s7625_s12] ss:$0 sm:$0xff]  ;;  %v4800_v14 = vld [vmem:[%s7626_s13 + $0x10] sm:$0xff] }
 0x563   : > { %v4580_v53 = vpop.f32.mrf.mxu3  ;;  %4721 = vmatmul.f32.gmra.mxu0 %v4656_v2 }
 0x564   : > { %v7423_v47 = vadd.f32 %v4580_v53, %v4506_v4  ;;  %v4469_v46 = vpop.f32.mrf.mxu2  ;;  %v4853_v53 = vld [vmem:[%s7627_s14 + $0x10] sm:$0xff] }
 0x568   : > { %v4221_v60 = vpop.f32.mrf.mxu0 }
 0x569   : > { %v7426_v52 = vadd.f32 %v4221_v60, %v7346_v19 }
 0x56b   : > { %4724 = vmatmul.f32.gmra.mxu0 %v4657_v5  ;;  %v4583_v29 = vpop.f32.mrf.mxu3 }
 0x570   : > { %v4224_v41 = vpop.f32.mrf.mxu0 }
 0x571   : > { %v7430_v57 = vadd.f32 %v4224_v41, %v7354_v59  ;;  %v4660_v59 = vmul.f32 %v7362_v10, %v8013_v22  ;;  %v4339_v10 = vpop.f32.mrf.mxu1 }
 0x573   : > { %4727 = vmatmul.f32.gmra.mxu0 %v4658_v55  ;;  %v7472_v16 = vpop.f32.mrf.mxu3 }
 0x578   : > { %v4227_v40 = vpop.f32.mrf.mxu0 }
 0x579   : > { %v7435_v39 = vadd.f32 %v4227_v40, %v7364_v58  ;;  %v4646_v58 = vld [vmem:[#allocation3 + $0x92] sm:$0xff] }
 0x57a   : > { %v4662_v3 = vmul.f32 %v4646_v58, %v7988_v30 }
 0x57b   : > { %4730 = vmatmul.f32.gmra.mxu0 %v4659_v33  ;;  %v4589_v49 = vpop.f32.mrf.mxu3 }
 0x580   : > { %v4230_v19 = vpop.f32.mrf.mxu0 }
 0x581   : > { %v7440_v25 = vadd.f32 %v4230_v19, %v7375_v23 }
 0x583   : > { %4733 = vmatmul.f32.gmra.mxu0 %v4660_v59  ;;  %v4801_v59 = vld [vmem:[%s7626_s13 + $0x18] sm:$0xff] }
 0x588   : > { %v4233_v56 = vpop.f32.mrf.mxu0 }
 0x589   : > { %v7445_v20 = vadd.f32 %v4233_v56, %v7386_v43  ;;  %v4854_v56 = vld [vmem:[%s7627_s14 + $0x18] sm:$0xff] }
 0x58b   : > { %4736 = vmatmul.f32.gmra.mxu0 %v4661_v18 }
 0x590   : > { %v4236_v6 = vpop.f32.mrf.mxu0 }
 0x591   : > { %v7450_v63 = vadd.f32 %v4236_v6, %v7392_v8  ;;  %v7463_v8 = vpop.f32.mrf.mxu1 }
 0x593   : > { %4739 = vmatmul.f32.gmra.mxu0 %v4662_v3 }
 0x598   : > { %v4239_v23 = vpop.f32.mrf.mxu0 }
 0x599   : > { %v7454_v22 = vadd.f32 %v4239_v23, %v7396_v27  ;;  %v7466_v27 = vpop.f32.mrf.mxu2  ;;  %v4345_v62 = vpop.f32.mrf.mxu1 }
 0x59a   : > { %v4592_v23 = vpop.f32.mrf.mxu3 }
 0x5a0   : > { %v4698_v43 = vpop.f32.mrf.mxu0 }
 0x5a1   : > { %v4746_v42 = vadd.f32 %v4698_v43, %v7400_v51  ;;  %v4798_v51 = vld [vmem:[%s7626_s13] sm:$0xff]  ;;  %v4475_v37 = vpop.f32.mrf.mxu2  ;;  %v4348_v19 = vpop.f32.mrf.mxu1 }
 0x5a3   : > { %v4766_v21 = vadd.f32 %v7460_v1, %v4746_v42 }
 0x5a5   : > { %v4782_v26 = vmax.f32 %v4766_v21, 0.0 }
 0x5a7   : > { %v4814_v38 = vmul.f32 %v4798_v51, %v4782_v26  ;;  %v4867_v35 = vmul.f32 %v4851_v45, %v4782_v26  ;;  %v4802_v51 = vld [vmem:[%s7626_s13 + $0x20] sm:$0xff] }
 0x5a8   : > { %v4701_v30 = vpop.f32.mrf.mxu0 }
 0x5a9   : > { %v4747_v48 = vadd.f32 %v4701_v30, %v7406_v24  ;;  %v4852_v24 = vld [vmem:[%s7627_s14 + $0x8] sm:$0xff]  ;;  %v4478_v58 = vpop.f32.mrf.mxu2 }
 0x5ab   : > { %v4767_v9 = vadd.f32 %v7460_v1, %v4747_v48 }
 0x5ad   : > { %v4783_v7 = vmax.f32 %v4767_v9, 0.0  ;;  %v4855_v9 = vld [vmem:[%s7627_s14 + $0x20] sm:$0xff] }
 0x5af   : > { %v4815_v17 = vmul.f32 %v4799_v28, %v4783_v7  ;;  %v4868_v31 = vmul.f32 %v4852_v24, %v4783_v7  ;;  %v4351_v24 = vpop.f32.mrf.mxu1 }
 0x5b0   : > { %v4704_v32 = vpop.f32.mrf.mxu0 }
 0x5b1   : > { %v4830_v44 = vadd.f32 %v4815_v17, %v4814_v38  ;;  %v4883_v34 = vadd.f32 %v4868_v31, %v4867_v35  ;;  %v4748_v4 = vadd.f32 %v4704_v32, %v7411_v54  ;;  %v4481_v38 = vpop.f32.mrf.mxu2  ;;  %v4595_v32 = vpop.f32.mrf.mxu3 }
 0x5b3   : > { %v4768_v15 = vadd.f32 %v7460_v1, %v4748_v4 }
 0x5b5   : > { %v4784_v2 = vmax.f32 %v4768_v15, 0.0 }
 0x5b7   : > { %v4816_v60 = vmul.f32 %v4800_v14, %v4784_v2  ;;  %v4869_v5 = vmul.f32 %v4853_v53, %v4784_v2  ;;  %v4354_v53 = vpop.f32.mrf.mxu1 }
 0x5b8   : > { %v4707_v41 = vpop.f32.mrf.mxu0 }
 0x5b9   : > { %v4831_v55 = vadd.f32 %v4830_v44, %v4816_v60  ;;  %v4884_v40 = vadd.f32 %v4883_v34, %v4869_v5  ;;  %v4749_v54 = vadd.f32 %v4707_v41, %v7417_v61  ;;  %v4247_v61 = vadd.f32 %v7402_v0, %v7314_v12  ;;  %v4484_v41 = vpop.f32.mrf.mxu2 }
 0x5bb   : > { %v4769_v33 = vadd.f32 %v7460_v1, %v4749_v54  ;;  %v4377_v48 = vadd.f32 %v4339_v10, %v4247_v61  ;;  %v4598_v54 = vpop.f32.mrf.mxu3 }
 0x5bd   : > { %v4785_v18 = vmax.f32 %v4769_v33, 0.0  ;;  %v4507_v45 = vadd.f32 %v4469_v46, %v4377_v48  ;;  %v4803_v46 = vld [vmem:[%s7626_s13 + $0x28] sm:$0xff]  ;;  %v4805_v48 = vld [vmem:[%s7626_s13 + $0x38] sm:$0xff] }
 0x5bf   : > { %v4817_v6 = vmul.f32 %v4801_v59, %v4785_v18  ;;  %v4870_v3 = vmul.f32 %v4854_v56, %v4785_v18  ;;  %v4621_v7 = vadd.f32 %v4583_v29, %v4507_v45  ;;  %v4856_v29 = vld [vmem:[%s7627_s14 + $0x28] sm:$0xff] }
 0x5c0   : > { %v4710_v43 = vpop.f32.mrf.mxu0 }
 0x5c1   : > { %v4832_v42 = vadd.f32 %v4831_v55, %v4817_v6  ;;  %v4885_v21 = vadd.f32 %v4884_v40, %v4870_v3  ;;  %v4750_v30 = vadd.f32 %v4710_v43, %v7423_v47  ;;  %v4248_v47 = vadd.f32 %v7408_v13, %v7322_v50 }
 0x5c2   : > { %v4379_v55 = vadd.f32 %v4345_v62, %v7414_v11  ;;  %v4357_v62 = vpop.f32.mrf.mxu1 }
 0x5c3   : > { %v4770_v26 = vadd.f32 %v7460_v1, %v4750_v30  ;;  %v4378_v44 = vadd.f32 %v7463_v8, %v4248_v47  ;;  %v4487_v30 = vpop.f32.mrf.mxu2 }
 0x5c4   : > { %v4509_v33 = vadd.f32 %v4475_v37, %v4379_v55  ;;  %v4858_v37 = vld [vmem:[%s7627_s14 + $0x38] sm:$0xff] }
 0x5c5   : > { %v4786_v28 = vmax.f32 %v4770_v26, 0.0  ;;  %v4508_v4 = vadd.f32 %v7466_v27, %v4378_v44  ;;  %v4804_v27 = vld [vmem:[%s7626_s13 + $0x30] sm:$0xff] }
 0x5c6   : > { %v4623_v56 = vadd.f32 %v4589_v49, %v4509_v33 }
 0x5c7   : > { %v4818_v12 = vmul.f32 %v4802_v51, %v4786_v28  ;;  %v4871_v0 = vmul.f32 %v4855_v9, %v4786_v28  ;;  %v4622_v50 = vadd.f32 %v7472_v16, %v4508_v4  ;;  %v4857_v16 = vld [vmem:[%s7627_s14 + $0x30] sm:$0xff]  ;;  %v4601_v51 = vpop.f32.mrf.mxu3 }
 0x5c8   : > { %v4713_v35 = vpop.f32.mrf.mxu0 }
 0x5c9   : > { %v4833_v10 = vadd.f32 %v4832_v42, %v4818_v12  ;;  %v4886_v17 = vadd.f32 %v4885_v21, %v4871_v0  ;;  %v4751_v31 = vadd.f32 %v4713_v35, %v4621_v7  ;;  %v4380_v42 = vadd.f32 %v4348_v19, %v7420_v36 }
 0x5ca   : > { %v4381_v0 = vadd.f32 %v4351_v24, %v7426_v52  ;;  %v4360_v47 = vpop.f32.mrf.mxu1 }
 0x5cb   : > { %v4771_v34 = vadd.f32 %v7460_v1, %v4751_v31  ;;  %v4510_v49 = vadd.f32 %v4478_v58, %v4380_v42  ;;  %v4859_v58 = vld [vmem:[%s7627_s14 + $0x40] sm:$0xff]  ;;  %v4490_v31 = vpop.f32.mrf.mxu2 }
 0x5cd   : > { %v4787_v15 = vmax.f32 %v4771_v34, 0.0  ;;  %v4624_v9 = vadd.f32 %v4592_v23, %v4510_v49  ;;  %v4511_v23 = vadd.f32 %v4481_v38, %v4381_v0  ;;  %v4860_v38 = vld [vmem:[%s7627_s14 + $0x48] sm:$0xff] }
 0x5cf   : > { %v4819_v13 = vmul.f32 %v4803_v46, %v4787_v15  ;;  %v4872_v14 = vmul.f32 %v4856_v29, %v4787_v15  ;;  %v4625_v44 = vadd.f32 %v4595_v32, %v4511_v23  ;;  %v4604_v29 = vpop.f32.mrf.mxu3  ;;  %v4810_v23 = vld [vmem:[%s7626_s13 + $0x60] sm:$0xff] }
 0x5d0   : > { %v4716_v2 = vpop.f32.mrf.mxu0 }
 0x5d1   : > { %v4834_v8 = vadd.f32 %v4833_v10, %v4819_v13  ;;  %v4887_v60 = vadd.f32 %v4886_v17, %v4872_v14  ;;  %v4752_v5 = vadd.f32 %v4716_v2, %v4622_v50  ;;  %v4806_v10 = vld [vmem:[%s7626_s13 + $0x40] sm:$0xff]  ;;  %v4382_v50 = vadd.f32 %v4354_v53, %v7430_v57  ;;  %v4807_v14 = vld [vmem:[%s7626_s13 + $0x48] sm:$0xff] }
 0x5d3   : > { %v4772_v40 = vadd.f32 %v7460_v1, %v4752_v5  ;;  %v4512_v32 = vadd.f32 %v4484_v41, %v4382_v50  ;;  %v4861_v41 = vld [vmem:[%s7627_s14 + $0x50] sm:$0xff] }
 0x5d5   : > { %v4788_v59 = vmax.f32 %v4772_v40, 0.0  ;;  %v4493_v40 = vpop.f32.mrf.mxu2 }
 0x5d7   : > { %v4820_v18 = vmul.f32 %v4804_v27, %v4788_v59  ;;  %v4873_v6 = vmul.f32 %v4857_v16, %v4788_v59  ;;  %v4607_v33 = vpop.f32.mrf.mxu3  ;;  %v4383_v59 = vadd.f32 %v4357_v62, %v7435_v39 }
 0x5d8   : > { %v4719_v3 = vpop.f32.mrf.mxu0 }
 0x5d9   : > { %v4835_v43 = vadd.f32 %v4834_v8, %v4820_v18  ;;  %v4888_v61 = vadd.f32 %v4887_v60, %v4873_v6  ;;  %v4753_v11 = vadd.f32 %v4719_v3, %v4623_v56  ;;  %v4363_v8 = vpop.f32.mrf.mxu1  ;;  %v4626_v60 = vadd.f32 %v4598_v54, %v4512_v32  ;;  %v4808_v18 = vld [vmem:[%s7626_s13 + $0x50] sm:$0xff] }
 0x5da   : > { %v4513_v54 = vadd.f32 %v4487_v30, %v4383_v59  ;;  %v4862_v30 = vld [vmem:[%s7627_s14 + $0x58] sm:$0xff] }
 0x5db   : > { %v4773_v21 = vadd.f32 %v7460_v1, %v4753_v11 }
 0x5dc   : > { %v4627_v3 = vadd.f32 %v4601_v51, %v4513_v54 }
 0x5dd   : > { %v4789_v26 = vmax.f32 %v4773_v21, 0.0  ;;  %v4496_v62 = vpop.f32.mrf.mxu2 }
 0x5df   : > { %v4821_v45 = vmul.f32 %v4805_v48, %v4789_v26  ;;  %v4874_v28 = vmul.f32 %v4858_v37, %v4789_v26  ;;  %v4384_v37 = vadd.f32 %v4360_v47, %v7440_v25  ;;  %v4610_v26 = vpop.f32.mrf.mxu3  ;;  %v4385_v47 = vadd.f32 %v4363_v8, %v7445_v20  ;;  %v4864_v8 = vld [vmem:[%s7627_s14 + $0x68] sm:$0xff] }
 0x5e0   : > { %v4722_v7 = vpop.f32.mrf.mxu0 }
 0x5e1   : > { %v4836_v12 = vadd.f32 %v4835_v43, %v4821_v45  ;;  %v4889_v36 = vadd.f32 %v4888_v61, %v4874_v28  ;;  %v4754_v19 = vadd.f32 %v4722_v7, %v4624_v9  ;;  %v4366_v11 = vpop.f32.mrf.mxu1  ;;  %v4809_v9 = vld [vmem:[%s7626_s13 + $0x58] sm:$0xff]  ;;  %v4514_v51 = vadd.f32 %v4490_v31, %v4384_v37 }
 0x5e2   : > { %v4515_v31 = vadd.f32 %v4493_v40, %v4385_v47  ;;  %v4911_v47 = vlaneseq }
 0x5e3   : > { %v4774_v35 = vadd.f32 %v7460_v1, %v4754_v19  ;;  %v4628_v28 = vadd.f32 %v4604_v29, %v4514_v51 }
 0x5e4   : > { %v4629_v29 = vadd.f32 %v4607_v33, %v4515_v31 }
 0x5e5   : > { %v4790_v17 = vmax.f32 %v4774_v35, 0.0 }
 0x5e7   : > { %v4822_v34 = vmul.f32 %v4806_v10, %v4790_v17  ;;  %v4875_v46 = vmul.f32 %v4859_v58, %v4790_v17  ;;  %v4499_v58 = vpop.f32.mrf.mxu2  ;;  %v4863_v17 = vld [vmem:[%s7627_s14 + $0x60] sm:$0xff] }
 0x5e8   : > { %v4725_v4 = vpop.f32.mrf.mxu0 }
 0x5e9   : > { %v4837_v52 = vadd.f32 %v4836_v12, %v4822_v34  ;;  %v4890_v24 = vadd.f32 %v4889_v36, %v4875_v46  ;;  %v4755_v15 = vadd.f32 %v4725_v4, %v4625_v44  ;;  %v4369_v35 = vpop.f32.mrf.mxu1  ;;  %v4613_v46 = vpop.f32.mrf.mxu3 }
 0x5ea   : > { %v4387_v44 = vadd.f32 %v4369_v35, %v7454_v22  ;;  %v4811_v22 = vld [vmem:[%s7626_s13 + $0x68] sm:$0xff] }
 0x5eb   : > { %v4775_v13 = vadd.f32 %v7460_v1, %v4755_v15 }
 0x5ec   : > { %v4517_v4 = vadd.f32 %v4499_v58, %v4387_v44  ;;  %v5250_v58 = vld [vmem:[%s7629_s16] ss:$0 sm:$0xff] }
 0x5ed   : > { %v4791_v2 = vmax.f32 %v4775_v13, 0.0 }
 0x5ee   : > { %v4631_v15 = vadd.f32 %v4613_v46, %v4517_v4 }
 0x5ef   : > { %v4823_v5 = vmul.f32 %v4807_v14, %v4791_v2  ;;  %v4876_v55 = vmul.f32 %v4860_v38, %v4791_v2  ;;  %v4386_v38 = vadd.f32 %v4366_v11, %v7450_v63 }
 0x5f0   : > { %v4728_v27 = vpop.f32.mrf.mxu0 }
 0x5f1   : > { %v4838_v16 = vadd.f32 %v4837_v52, %v4823_v5  ;;  %v4891_v57 = vadd.f32 %v4890_v24, %v4876_v55  ;;  %v4756_v53 = vadd.f32 %v4728_v27, %v4626_v60  ;;  %v4743_v2 = vpop.f32.mrf.mxu1  ;;  %v4516_v60 = vadd.f32 %v4496_v62, %v4386_v38 }
 0x5f2   : > { %v4761_v5 = vadd.f32 %v4743_v2, %v4631_v15 }
 0x5f3   : > { %v4776_v56 = vadd.f32 %v7460_v1, %v4756_v53  ;;  %v4630_v40 = vadd.f32 %v4610_v26, %v4516_v60 }
 0x5f4   : > { %v4781_v63 = vadd.f32 %v7460_v1, %v4761_v5 }
 0x5f5   : > { %v4792_v6 = vmax.f32 %v4776_v56, 0.0 }
 0x5f6   : > { %v4797_v54 = vmax.f32 %v4781_v63, 0.0 }
 0x5f7   : > { %v4824_v43 = vmul.f32 %v4808_v18, %v4792_v6  ;;  %v4877_v61 = vmul.f32 %v4861_v41, %v4792_v6  ;;  %v4812_v18 = vld [vmem:[%s7626_s13 + $0x70] sm:$0xff] }
 0x5f8   : > { %v4731_v42 = vpop.f32.mrf.mxu0  ;;  %v4865_v41 = vld [vmem:[%s7627_s14 + $0x70] sm:$0xff] }
 0x5f9   : > { %v4839_v21 = vadd.f32 %v4838_v16, %v4824_v43  ;;  %v4892_v48 = vadd.f32 %v4891_v57, %v4877_v61  ;;  %v4757_v39 = vadd.f32 %v4731_v42, %v4627_v3  ;;  %v4813_v3 = vld [vmem:[%s7626_s13 + $0x78] sm:$0xff] }
 0x5fa   : > { %v4866_v43 = vld [vmem:[%s7627_s14 + $0x78] sm:$0xff]  ;;  %v4829_v11 = vmul.f32 %v4813_v3, %v4797_v54 }
 0x5fb   : > { %v4777_v49 = vadd.f32 %v7460_v1, %v4757_v39  ;;  %v4882_v42 = vmul.f32 %v4866_v43, %v4797_v54 }
 0x5fd   : > { %v4793_v45 = vmax.f32 %v4777_v49, 0.0 }
 0x5ff   : > { %v4825_v7 = vmul.f32 %v4809_v9, %v4793_v45  ;;  %v4878_v12 = vmul.f32 %v4862_v30, %v4793_v45 }
 0x600   : > { %v4734_v36 = vpop.f32.mrf.mxu0 }
 0x601   : > { %v4840_v19 = vadd.f32 %v4839_v21, %v4825_v7  ;;  %v4893_v0 = vadd.f32 %v4892_v48, %v4878_v12  ;;  %v4758_v25 = vadd.f32 %v4734_v36, %v4628_v28  ;;  %v4904_v36 = vld [vmem:[%s7628_s15] sm:$0xff] }
 0x603   : > { %v4778_v10 = vadd.f32 %v7460_v1, %v4758_v25 }
 0x605   : > { %v4794_v34 = vmax.f32 %v4778_v10, 0.0  ;;  %v4912_v10 = vand.u32 127, %v4911_v47 }
 0x607   : > { %v4826_v52 = vmul.f32 %v4810_v23, %v4794_v34  ;;  %v4879_v20 = vmul.f32 %v4863_v17, %v4794_v34  ;;  %vm4913_vm4 = vcmp.eq.s32.totalorder %v4912_v10, 0 }
 0x608   : > { %v4737_v24 = vpop.f32.mrf.mxu0 }
 0x609   : > { %v4841_v50 = vadd.f32 %v4840_v19, %v4826_v52  ;;  %v4894_v13 = vadd.f32 %v4893_v0, %v4879_v20  ;;  %v4759_v14 = vadd.f32 %v4737_v24, %v4629_v29 }
 0x60b   : > { %v4779_v32 = vadd.f32 %v7460_v1, %v4759_v14 }
 0x60d   : > { %v4795_v55 = vmax.f32 %v4779_v32, 0.0 }
 0x60f   : > { %v4827_v27 = vmul.f32 %v4811_v22, %v4795_v55  ;;  %v4880_v16 = vmul.f32 %v4864_v8, %v4795_v55 }
 0x610   : > { %v4740_v57 = vpop.f32.mrf.mxu0 }
 0x611   : > { %v4842_v53 = vadd.f32 %v4841_v50, %v4827_v27  ;;  %v4895_v33 = vadd.f32 %v4894_v13, %v4880_v16  ;;  %v4760_v59 = vadd.f32 %v4740_v57, %v4630_v40 }
 0x613   : > { %v4780_v56 = vadd.f32 %v7460_v1, %v4760_v59 }
 0x615   : > { %v4796_v6 = vmax.f32 %v4780_v56, 0.0 }
 0x617   : > { %v4828_v61 = vmul.f32 %v4812_v18, %v4796_v6  ;;  %v4881_v1 = vmul.f32 %v4865_v41, %v4796_v6 }
 0x619   : > { %v4843_v21 = vadd.f32 %v4842_v53, %v4828_v61  ;;  %v4896_v48 = vadd.f32 %v4895_v33, %v4881_v1 }
 0x61b   : > { %v4844_v39 = vadd.f32 %v4843_v21, %v4829_v11  ;;  %v4897_v62 = vadd.f32 %v4896_v48, %v4882_v42 }
 0x61d   : > { %v4898_v37 = vrot.slane %v4897_v62, 4  ;;  %v4845_v49 = vrot.slane %v4844_v39, 4 }
 0x61f   : > { %v4899_v26 = vadd.f32 %v4898_v37, %v4897_v62  ;;  %v4846_v9 = vadd.f32 %v4845_v49, %v4844_v39 }
 0x621   : > { %v4900_v30 = vrot.slane %v4899_v26, 2  ;;  %v4847_v51 = vrot.slane %v4846_v9, 2 }
 0x623   : > { %v4901_v45 = vadd.f32 %v4900_v30, %v4899_v26  ;;  %v4848_v28 = vadd.f32 %v4847_v51, %v4846_v9 }
 0x625   : > { %v4902_v7 = vrot.slane %v4901_v45, 1  ;;  %v4849_v12 = vrot.slane %v4848_v28, 1 }
 0x627   : > { %v4903_v19 = vadd.f32 %v4902_v7, %v4901_v45  ;;  %v4850_v0 = vadd.f32 %v4849_v12, %v4848_v28 }
 0x629   : > { %v4908_v25 = vmul.f32 %v4904_v36, %v4903_v19  ;;  %v4905_v35 = vmul.f32 %v4904_v36, %v4850_v0 }
 0x62b   : > { %4909 = vadd.xlane.f32.xlu2 %v4908_v25  ;;  %4906 = vadd.xlane.f32.xlu1 %v4905_v35 }
 0x69e   : > { %v4910_v23 = vpop.xlane.xlu2 %4909  ;;  %v4907_v17 = vpop.xlane.xlu1 %4906 }
 0x69f   : > { %v4914_v31 = vsel %vm4913_vm4, %v4907_v17, %v4910_v23 }
 0x6a0   : > { %v4919_v44 = vadd.f32 %v5250_v58, %v4914_v31 }
 0x6a2   : > { %4921 = vst.msk [vmem:[%s596_s27] sm:$0xff] %vm4920_vm5, %v4919_v44 }
 0x6a3 PF: > { %s29_s24 = sadd.s32 1, %s5358_s24  }
 0x6a4   : > { %p26_p7 = scmp.ge.s32.totalorder %s29_s24, 4  }
 0x6a6   :  { %28 = sbr.rel (!%p26_p7) target bundleno = 6 (0x6), region = 155 }
 0x6ab   :  { %4941 = vsyncpa [#allocation5], 1 }
 0x6ac   :  { %4943 = vsyncpa [#allocation5 + $0x1], 1 }
 0x6ad   :  { %4944 = vsyncpa [#allocation7], 1 }

</bundles_post_ra>
